<compile_context>
chip_gen: v7x
topology: tpu7x:2x2x1
jax: 0.10.0
libtpu: 0.0.40
codegen_flags: <defaults>
</compile_context>

<pallas_src>
import functools

import numpy as np
import jax
import jax.numpy as jnp
from jax.experimental import pallas as pl
from jax.experimental.pallas import tpu as pltpu


# ----------------------------------------------------------------------------
# Kernel: one flow (ResidualCouplingLayer + folded Flip) per grid step.
# Grid = (batch, flow); the coupling halves are carried across the flow axis
# in the resident output blocks (index map constant in f).
# ----------------------------------------------------------------------------
def _coupling_flow_kernel(
    x0_ref, x1_ref, mask_ref,
    pre_w_ref, pre_b_ref,
    in_w_t_ref, in_b_t_ref, in_w_s_ref, in_b_s_ref,
    rs_res_w_ref, rs_res_b_ref, rs_skip_w_ref, rs_skip_b_ref,
    post_w_ref, post_b_ref,
    out0_ref, out1_ref,
    xp_ref,                                     # bf16 zero-haloed conv scratch
    *, n_layers, kernel_size, dilation_rate, hidden, half_pad, maxpad, seq_len,
):
    f32 = jnp.float32
    bf16 = jnp.bfloat16
    T, H, K = seq_len, hidden, kernel_size
    f = pl.program_id(1)

    # Initialise the carried state from the (resident) inputs at the first
    # flow of every batch element.  Gating on the *arbitrary* flow axis is
    # megacore-safe (each core sees f == 0 for its own batch indices).
    @pl.when(f == 0)
    def _():
        out0_ref[...] = x0_ref[...]
        out1_ref[...] = x1_ref[...]

    mask = mask_ref[0]                                  # (T, 1)
    mask_h = jnp.broadcast_to(mask, (T, H))             # hoisted broadcasts
    mask_c = jnp.broadcast_to(mask, (T, half_pad))

    u = out0_ref[0]                                     # (T, half_pad) pass-through half
    v = out1_ref[0]                                     # (T, half_pad) transformed half

    def mxu(a_bf16, w_bf16):
        return jnp.dot(a_bf16, w_bf16, preferred_element_type=f32)

    # Zero only the two halo strips (the centre is rewritten every layer);
    # the zero halo implements the dilated conv's zero padding.
    if maxpad > 0:
        zeros_halo = jnp.zeros((maxpad, H), bf16)
        xp_ref[pl.ds(0, maxpad), :] = zeros_halo
        xp_ref[pl.ds(maxpad + T, maxpad), :] = zeros_halo

    # pre: 1x1 conv on the pass-through half (Flip already folded into weights)
    h = (mxu(u.astype(bf16), pre_w_ref[0]) + pre_b_ref[0]) * mask_h   # (T, H) f32

    # WN: gated dilated convs + res/skip 1x1 convs, all fused.
    skip = None
    for i in range(n_layers):
        d = dilation_rate ** i
        pad = d * (K - 1) // 2

        # current activation into the centre of the haloed bf16 buffer
        xp_ref[pl.ds(maxpad, T), :] = h.astype(bf16)

        # dilated conv = K shifted matmuls; tanh / sigmoid column halves are
        # separate lane-aligned accumulators (no mid-vreg slicing at H).
        off0 = maxpad - pad
        tap0 = xp_ref[pl.ds(off0, T), :]                 # (T, H) bf16, no cast
        acc_t = mxu(tap0, in_w_t_ref[0, i * K])
        acc_s = mxu(tap0, in_w_s_ref[0, i * K])
        for j in range(1, K):
            tap = xp_ref[pl.ds(off0 + j * d, T), :]
            acc_t = acc_t + mxu(tap, in_w_t_ref[0, i * K + j])
            acc_s = acc_s + mxu(tap, in_w_s_ref[0, i * K + j])

        # fused_add_tanh_sigmoid_multiply (g=None); sigmoid via EUP reciprocal
        t_act = jnp.tanh(acc_t + in_b_t_ref[0, i])
        s_act = pl.reciprocal(1.0 + jnp.exp(-(acc_s + in_b_s_ref[0, i])), approx=True)
        acts = (t_act * s_act).astype(bf16)              # (T, H)

        sk = mxu(acts, rs_skip_w_ref[0, i]) + rs_skip_b_ref[0, i]
        skip = sk if skip is None else skip + sk
        if i < n_layers - 1:                             # last layer is skip-only
            h = (h + mxu(acts, rs_res_w_ref[0, i]) + rs_res_b_ref[0, i]) * mask_h

    skip = skip * mask_h

    # post: 1x1 conv -> m (mean_only => logs == 0, exp(logs) == 1).
    # Flip() is folded offline, so the flow epilogue is just swap + affine:
    #   new_x0 = perm(m) + x1*mask ;  new_x1 = x0
    m = (mxu(skip.astype(bf16), post_w_ref[0]) + post_b_ref[0]) * mask_c
    out0_ref[0] = m + v * mask_c
    out1_ref[0] = u


# ----------------------------------------------------------------------------
# Wrapper
# ----------------------------------------------------------------------------
def residual_coupling_block_forward(x, x_mask, params, cfg):
    """x: (B, C, T), x_mask: (B, 1, T) -> (B, C, T)  (forward, reverse=False)."""
    B, C, T = x.shape
    H = cfg["hidden_channels"]
    K = cfg["kernel_size"]
    L = cfg["n_layers"]
    Fl = cfg["n_flows"]
    dil = cfg["dilation_rate"]
    half = C // 2
    half_pad = ((half + 127) // 128) * 128               # lane-align coupling halves
    maxpad = max((dil ** i) * (K - 1) // 2 for i in range(L))
    maxpad8 = ((maxpad + 7) // 8) * 8                    # sublane-aligned halo
    cpad = half_pad - half

    bf16 = jnp.bfloat16
    f32 = jnp.float32

    # ---- Fold Flip() into pre / post weights ---------------------------------
    # Stored state (U, V) is a per-flow half-channel permutation of the true
    # (x0, x1); for odd flows the permutation is a channel reversal, folded as
    # reversed pre input-rows and reversed post output-cols.  No in-kernel
    # permutation is ever needed; the (identity for even n_flows) final
    # permutation is applied in the wrapper.
    pre_w_n = jnp.asarray(params["pre_w"], f32)          # (Fl, half, H)
    post_w_n = jnp.asarray(params["post_w"], f32)        # (Fl, H, half)
    post_b_n = jnp.asarray(params["post_b"], f32)        # (Fl, 1, half)
    odd = (jnp.arange(Fl) % 2 == 1)[:, None, None]
    pre_w_eff = jnp.where(odd, pre_w_n[:, ::-1, :], pre_w_n)
    post_w_eff = jnp.where(odd, post_w_n[:, :, ::-1], post_w_n)
    post_b_eff = jnp.where(odd, post_b_n[:, :, ::-1], post_b_n)

    pre_w_eff = jnp.pad(pre_w_eff, ((0, 0), (0, cpad), (0, 0))).astype(bf16)
    post_w_eff = jnp.pad(post_w_eff, ((0, 0), (0, 0), (0, cpad))).astype(bf16)
    post_b_eff = jnp.pad(post_b_eff, ((0, 0), (0, 0), (0, cpad)))

    pre_b = jnp.asarray(params["pre_b"], f32)
    in_w_t = jnp.asarray(params["in_w_t"], bf16)
    in_w_s = jnp.asarray(params["in_w_s"], bf16)
    in_b_t = jnp.asarray(params["in_b_t"], f32)
    in_b_s = jnp.asarray(params["in_b_s"], f32)
    rs_res_w = jnp.asarray(params["rs_res_w"], bf16)
    rs_res_b = jnp.asarray(params["rs_res_b"], f32)
    rs_skip_w = jnp.asarray(params["rs_skip_w"], bf16)
    rs_skip_b = jnp.asarray(params["rs_skip_b"], f32)

    # ---- Inputs: channels-last, split halves, lane-padded --------------------
    x_tc = jnp.transpose(x, (0, 2, 1)).astype(f32)       # (B, T, C)
    x0 = jnp.pad(x_tc[..., :half], ((0, 0), (0, 0), (0, cpad)))
    x1 = jnp.pad(x_tc[..., half:], ((0, 0), (0, 0), (0, cpad)))
    m_tc = jnp.transpose(x_mask, (0, 2, 1)).astype(f32)  # (B, T, 1)

    kernel = functools.partial(
        _coupling_flow_kernel,
        n_layers=L, kernel_size=K, dilation_rate=dil,
        hidden=H, half_pad=half_pad, maxpad=maxpad8, seq_len=T)

    def flow_spec(a):
        nd = a.ndim
        return pl.BlockSpec((1,) + a.shape[1:],
                            lambda b, f, _nd=nd: (f,) + (0,) * (_nd - 1))

    batch_spec = pl.BlockSpec((1, T, half_pad), lambda b, f: (b, 0, 0))
    mask_spec = pl.BlockSpec((1, T, 1), lambda b, f: (b, 0, 0))

    out0, out1 = pl.pallas_call(
        kernel,
        out_shape=(jax.ShapeDtypeStruct((B, T, half_pad), f32),
                   jax.ShapeDtypeStruct((B, T, half_pad), f32)),
        grid=(B, Fl),
        in_specs=[
            batch_spec, batch_spec, mask_spec,
            flow_spec(pre_w_eff), flow_spec(pre_b),
            flow_spec(in_w_t), flow_spec(in_b_t),
            flow_spec(in_w_s), flow_spec(in_b_s),
            flow_spec(rs_res_w), flow_spec(rs_res_b),
            flow_spec(rs_skip_w), flow_spec(rs_skip_b),
            flow_spec(post_w_eff), flow_spec(post_b_eff),
        ],
        out_specs=(batch_spec, batch_spec),
        scratch_shapes=[pltpu.VMEM((T + 2 * maxpad8, H), jnp.bfloat16)],
        compiler_params=pltpu.CompilerParams(
            dimension_semantics=("parallel", "arbitrary"),
            vmem_limit_bytes=48 * 1024 * 1024),
    )(x0, x1, m_tc,
      pre_w_eff, pre_b, in_w_t, in_b_t, in_w_s, in_b_s,
      rs_res_w, rs_res_b, rs_skip_w, rs_skip_b, post_w_eff, post_b_eff)

    # ---- Final (statically known) permutation + layout back to (B, C, T) -----
    y0 = out0[..., :half]
    y1 = out1[..., :half]
    if Fl % 2 == 1:
        y0 = jnp.flip(y0, axis=-1)
        y1 = jnp.flip(y1, axis=-1)
    y = jnp.concatenate([y0, y1], axis=-1)               # (B, T, C)
    return jnp.transpose(y, (0, 2, 1))


# ----------------------------------------------------------------------------
# Synthetic parameters (deterministic).  Weights are stored in the
# channels-last matmul layout: per-tap weight is (C_in, C_out) = the transpose
# of torch Conv1d weight[:, :, k].  The in_layer (tanh/sigmoid) and res_skip
# (res/skip) column halves are stored as separate arrays.
# ----------------------------------------------------------------------------
def init_params(key, cfg):
    C = cfg["channels"]
    half = C // 2
    H = cfg["hidden_channels"]
    K = cfg["kernel_size"]
    L = cfg["n_layers"]
    Fl = cfg["n_flows"]

    ks = jax.random.split(key, 12)
    nrm = lambda k, shape, s: jax.random.normal(k, shape, jnp.float32) * s

    pre_w = nrm(ks[0], (Fl, half, H), half ** -0.5)
    pre_b = nrm(ks[1], (Fl, 1, H), 0.01)
    in_w_t = nrm(ks[2], (Fl, L * K, H, H), (H * K) ** -0.5)
    in_w_s = nrm(ks[3], (Fl, L * K, H, H), (H * K) ** -0.5)
    in_b_t = nrm(ks[4], (Fl, L, 1, H), 0.01)
    in_b_s = nrm(ks[5], (Fl, L, 1, H), 0.01)
    rs_res_w = nrm(ks[6], (Fl, L, H, H), H ** -0.5)
    rs_res_b = nrm(ks[7], (Fl, L, 1, H), 0.01)
    rs_skip_w = nrm(ks[8], (Fl, L, H, H), H ** -0.5)
    rs_skip_b = nrm(ks[9], (Fl, L, 1, H), 0.01)
    # PyTorch zero-inits `post`; small random weights keep the WN path
    # non-trivial without changing forward semantics.
    post_w = nrm(ks[10], (Fl, H, half), 0.1 * H ** -0.5)
    post_b = jnp.zeros((Fl, 1, half), jnp.float32)

    # The last WN layer of each flow is skip-only (res_skip_channels == H in
    # PyTorch); its residual slot is unused — zero it for clarity.
    rs_res_w = rs_res_w.at[:, L - 1].set(0.0)
    rs_res_b = rs_res_b.at[:, L - 1].set(0.0)

    return dict(pre_w=pre_w, pre_b=pre_b,
                in_w_t=in_w_t, in_b_t=in_b_t, in_w_s=in_w_s, in_b_s=in_b_s,
                rs_res_w=rs_res_w, rs_res_b=rs_res_b,
                rs_skip_w=rs_skip_w, rs_skip_b=rs_skip_b,
                post_w=post_w, post_b=post_b)


# ----------------------------------------------------------------------------
# Pure-numpy reference (float64) of ResidualCouplingBlock.forward(reverse=False)
# with the literal per-flow Flip (no folding), matching module semantics.
# ----------------------------------------------------------------------------
def reference_forward(x, x_mask, params, cfg):
    C = cfg["channels"]
    half = C // 2
    H = cfg["hidden_channels"]
    K = cfg["kernel_size"]
    L = cfg["n_layers"]
    Fl = cfg["n_flows"]
    dil = cfg["dilation_rate"]

    def qw(w):  # bf16 round-trip: matches weight precision fed to the kernel
        return np.asarray(jnp.asarray(w).astype(jnp.bfloat16).astype(jnp.float32),
                          np.float64)

    f64 = lambda a: np.asarray(a, np.float64)
    pre_w, post_w = qw(params["pre_w"]), qw(params["post_w"])
    in_w_t, in_w_s = qw(params["in_w_t"]), qw(params["in_w_s"])
    rs_res_w, rs_skip_w = qw(params["rs_res_w"]), qw(params["rs_skip_w"])
    pre_b, post_b = f64(params["pre_b"]), f64(params["post_b"])
    in_b_t, in_b_s = f64(params["in_b_t"]), f64(params["in_b_s"])
    rs_res_b, rs_skip_b = f64(params["rs_res_b"]), f64(params["rs_skip_b"])

    cur = np.transpose(f64(x), (0, 2, 1))                # (B, T, C)
    mask = np.transpose(f64(x_mask), (0, 2, 1))          # (B, T, 1)
    B, T, _ = cur.shape

    for f in range(Fl):
        x0, x1 = cur[..., :half], cur[..., half:]
        h = (x0 @ pre_w[f] + pre_b[f]) * mask
        skip = np.zeros((B, T, H))
        for i in range(L):
            d = dil ** i
            pad = d * (K - 1) // 2
            hp = np.pad(h, ((0, 0), (pad, pad), (0, 0)))
            a_t = np.zeros((B, T, H))
            a_s = np.zeros((B, T, H))
            for j in range(K):
                win = hp[:, j * d:j * d + T, :]
                a_t = a_t + win @ in_w_t[f, i * K + j]
                a_s = a_s + win @ in_w_s[f, i * K + j]
            a_t = a_t + in_b_t[f, i]
            a_s = a_s + in_b_s[f, i]
            acts = np.tanh(a_t) * (1.0 / (1.0 + np.exp(-a_s)))
            if i < L - 1:
                h = (h + acts @ rs_res_w[f, i] + rs_res_b[f, i]) * mask
            skip = skip + acts @ rs_skip_w[f, i] + rs_skip_b[f, i]
        skip = skip * mask
        m = (skip @ post_w[f] + post_b[f]) * mask
        x1 = m + x1 * mask                               # mean_only -> logs = 0
        cur = np.concatenate([x0, x1], axis=-1)[..., ::-1]   # coupling + Flip
    return np.transpose(cur, (0, 2, 1))


# ----------------------------------------------------------------------------
if __name__ == "__main__":
    cfg = dict(
        channels=4,            # flow channels (split into 2 + 2)
        hidden_channels=32,
        kernel_size=5,
        dilation_rate=1,
        n_layers=4,
        n_flows=4,
        gin_channels=0,        # no conditioning
    )

    key = jax.random.PRNGKey(0)
    k_param, k_x = jax.random.split(key)
    params = init_params(k_param, cfg)

    B, T = 2, 16
    C = cfg["channels"]
    x = jax.random.normal(k_x, (B, C, T), jnp.float32)
    x_lengths = jnp.array([T, 11], dtype=jnp.int32)
    x_mask = (jnp.arange(T)[None, None, :] < x_lengths[:, None, None]).astype(jnp.float32)

    fwd = jax.jit(lambda xx, mm: residual_coupling_block_forward(xx, mm, params, cfg))
    y = fwd(x, x_mask)
    jax.block_until_ready(y)

    assert y.shape == (B, C, T)
    y_ref = reference_forward(x, x_mask, params, cfg)
    np.testing.assert_allclose(np.asarray(y, np.float64), y_ref, rtol=5e-2, atol=1e-1)
    print("KERNEL_OK")
</pallas_src>

<mosaic_0001>
module attributes {stable_mosaic.version = 11 : i64} {
  func.func @_coupling_flow_kernel(%arg0: i32, %arg1: i32, %arg2: memref<1x16x128xf32, #tpu.memory_space<vmem>>, %arg3: memref<1x16x128xf32, #tpu.memory_space<vmem>>, %arg4: memref<1x16x1xf32, #tpu.memory_space<vmem>>, %arg5: memref<1x128x32xbf16, #tpu.memory_space<vmem>>, %arg6: memref<1x1x32xf32, #tpu.memory_space<vmem>>, %arg7: memref<1x20x32x32xbf16, #tpu.memory_space<vmem>>, %arg8: memref<1x4x1x32xf32, #tpu.memory_space<vmem>>, %arg9: memref<1x20x32x32xbf16, #tpu.memory_space<vmem>>, %arg10: memref<1x4x1x32xf32, #tpu.memory_space<vmem>>, %arg11: memref<1x4x32x32xbf16, #tpu.memory_space<vmem>>, %arg12: memref<1x4x1x32xf32, #tpu.memory_space<vmem>>, %arg13: memref<1x4x32x32xbf16, #tpu.memory_space<vmem>>, %arg14: memref<1x4x1x32xf32, #tpu.memory_space<vmem>>, %arg15: memref<1x32x128xbf16, #tpu.memory_space<vmem>>, %arg16: memref<1x1x128xf32, #tpu.memory_space<vmem>>, %arg17: memref<1x16x128xf32, #tpu.memory_space<vmem>>, %arg18: memref<1x16x128xf32, #tpu.memory_space<vmem>>, %arg19: memref<32x32xbf16, #tpu.memory_space<vmem>>) attributes {dimension_semantics = [#tpu.dimension_semantics<parallel>, #tpu.dimension_semantics<arbitrary>], iteration_bounds = array<i64: 2, 4>, scalar_prefetch = 0 : i64, scratch_operands = 1 : i64, tpu.core_type = #tpu.core_type<tc>, window_params = [{transform_indices = @transform_0, window_bounds = array<i64: 1, 16, 128>}, {transform_indices = @transform_1, window_bounds = array<i64: 1, 16, 128>}, {transform_indices = @transform_2, window_bounds = array<i64: 1, 16, 1>}, {transform_indices = @transform_3, window_bounds = array<i64: 1, 128, 32>}, {transform_indices = @transform_4, window_bounds = array<i64: 1, 1, 32>}, {transform_indices = @transform_5, window_bounds = array<i64: 1, 20, 32, 32>}, {transform_indices = @transform_6, window_bounds = array<i64: 1, 4, 1, 32>}, {transform_indices = @transform_7, window_bounds = array<i64: 1, 20, 32, 32>}, {transform_indices = @transform_8, window_bounds = array<i64: 1, 4, 1, 32>}, {transform_indices = @transform_9, window_bounds = array<i64: 1, 4, 32, 32>}, {transform_indices = @transform_10, window_bounds = array<i64: 1, 4, 1, 32>}, {transform_indices = @transform_11, window_bounds = array<i64: 1, 4, 32, 32>}, {transform_indices = @transform_12, window_bounds = array<i64: 1, 4, 1, 32>}, {transform_indices = @transform_13, window_bounds = array<i64: 1, 32, 128>}, {transform_indices = @transform_14, window_bounds = array<i64: 1, 1, 128>}, {transform_indices = @transform_15, window_bounds = array<i64: 1, 16, 128>}, {transform_indices = @transform_16, window_bounds = array<i64: 1, 16, 128>}]} {
    %c0_i32 = arith.constant 0 : i32
    %0 = arith.cmpi eq, %arg1, %c0_i32 : i32
    %1 = arith.extui %0 : i1 to i32
    %c0_i32_0 = arith.constant 0 : i32
    %2 = arith.cmpi ne, %1, %c0_i32_0 : i32
    scf.if %2 {
      %c0_364 = arith.constant 0 : index
      %c0_365 = arith.constant 0 : index
      %c0_366 = arith.constant 0 : index
      %349 = vector.load %arg2[%c0_364, %c0_365, %c0_366] : memref<1x16x128xf32, #tpu.memory_space<vmem>>, vector<1x16x128xf32>
      %c0_367 = arith.constant 0 : index
      %c0_368 = arith.constant 0 : index
      %c0_369 = arith.constant 0 : index
      %350 = vector.load %arg17[%c0_367, %c0_368, %c0_369] : memref<1x16x128xf32, #tpu.memory_space<vmem>>, vector<1x16x128xf32>
      tpu.vector_store %arg17[%c0_367, %c0_368, %c0_369], %349 {strides = array<i32>} : memref<1x16x128xf32, #tpu.memory_space<vmem>>, vector<1x16x128xf32>,
      %c0_370 = arith.constant 0 : index
      %c0_371 = arith.constant 0 : index
      %c0_372 = arith.constant 0 : index
      %351 = vector.load %arg3[%c0_370, %c0_371, %c0_372] : memref<1x16x128xf32, #tpu.memory_space<vmem>>, vector<1x16x128xf32>
      %c0_373 = arith.constant 0 : index
      %c0_374 = arith.constant 0 : index
      %c0_375 = arith.constant 0 : index
      %352 = vector.load %arg18[%c0_373, %c0_374, %c0_375] : memref<1x16x128xf32, #tpu.memory_space<vmem>>, vector<1x16x128xf32>
      tpu.vector_store %arg18[%c0_373, %c0_374, %c0_375], %351 {strides = array<i32>} : memref<1x16x128xf32, #tpu.memory_space<vmem>>, vector<1x16x128xf32>,
    } else {
    }
    %c0 = arith.constant 0 : index
    %c0_1 = arith.constant 0 : index
    %c0_2 = arith.constant 0 : index
    %3 = vector.load %arg4[%c0, %c0_1, %c0_2] : memref<1x16x1xf32, #tpu.memory_space<vmem>>, vector<1x16x1xf32>
    %4 = vector.shape_cast %3 : vector<1x16x1xf32> to vector<16x1xf32>
    %5 = vector.shape_cast %4 : vector<16x1xf32> to vector<16x1xf32>
    %6 = vector.broadcast %5 : vector<16x1xf32> to vector<16x32xf32>
    %7 = vector.shape_cast %4 : vector<16x1xf32> to vector<16x1xf32>
    %8 = vector.broadcast %7 : vector<16x1xf32> to vector<16x128xf32>
    %c0_3 = arith.constant 0 : index
    %c0_4 = arith.constant 0 : index
    %c0_5 = arith.constant 0 : index
    %9 = vector.load %arg17[%c0_3, %c0_4, %c0_5] : memref<1x16x128xf32, #tpu.memory_space<vmem>>, vector<1x16x128xf32>
    %10 = vector.shape_cast %9 : vector<1x16x128xf32> to vector<16x128xf32>
    %c0_6 = arith.constant 0 : index
    %c0_7 = arith.constant 0 : index
    %c0_8 = arith.constant 0 : index
    %11 = vector.load %arg18[%c0_6, %c0_7, %c0_8] : memref<1x16x128xf32, #tpu.memory_space<vmem>>, vector<1x16x128xf32>
    %12 = vector.shape_cast %11 : vector<1x16x128xf32> to vector<16x128xf32>
    %cst = arith.constant 0.000000e+00 : bf16
    %13 = vector.broadcast %cst : bf16 to vector<8x32xbf16>
    %c0_9 = arith.constant 0 : index
    %c0_10 = arith.constant 0 : index
    %14 = vector.load %arg19[%c0_9, %c0_10] : memref<32x32xbf16, #tpu.memory_space<vmem>>, vector<8x32xbf16>
    tpu.vector_store %arg19[%c0_9, %c0_10], %13 {strides = array<i32>} : memref<32x32xbf16, #tpu.memory_space<vmem>>, vector<8x32xbf16>,
    %c24 = arith.constant 24 : index
    %c0_11 = arith.constant 0 : index
    %15 = vector.load %arg19[%c24, %c0_11] : memref<32x32xbf16, #tpu.memory_space<vmem>>, vector<8x32xbf16>
    tpu.vector_store %arg19[%c24, %c0_11], %13 {strides = array<i32>} : memref<32x32xbf16, #tpu.memory_space<vmem>>, vector<8x32xbf16>,
    %16 = arith.truncf %10 : vector<16x128xf32> to vector<16x128xbf16>
    %c0_12 = arith.constant 0 : index
    %c0_13 = arith.constant 0 : index
    %c0_14 = arith.constant 0 : index
    %17 = vector.load %arg5[%c0_12, %c0_13, %c0_14] : memref<1x128x32xbf16, #tpu.memory_space<vmem>>, vector<1x128x32xbf16>
    %18 = vector.shape_cast %17 : vector<1x128x32xbf16> to vector<128x32xbf16>
    %cst_15 = arith.constant dense<0.000000e+00> : vector<16x32xf32>
    %19 = tpu.matmul %16, %18, %cst_15 {dimension_numbers = #tpu.dot_dimension_numbers<[1], [0], [0], [1], [0, 0, 1, 1], [], []>} : vector<16x128xbf16>, vector<128x32xbf16>, vector<16x32xf32> -> vector<16x32xf32>
    %c0_16 = arith.constant 0 : index
    %c0_17 = arith.constant 0 : index
    %c0_18 = arith.constant 0 : index
    %20 = vector.load %arg6[%c0_16, %c0_17, %c0_18] : memref<1x1x32xf32, #tpu.memory_space<vmem>>, vector<1x1x32xf32>
    %21 = vector.shape_cast %20 : vector<1x1x32xf32> to vector<1x32xf32>
    %22 = vector.broadcast %21 : vector<1x32xf32> to vector<16x32xf32>
    %23 = arith.addf %19, %22 : vector<16x32xf32>
    %24 = arith.mulf %23, %6 : vector<16x32xf32>
    %25 = arith.truncf %24 : vector<16x32xf32> to vector<16x32xbf16>
    %c8 = arith.constant 8 : index
    %c0_19 = arith.constant 0 : index
    %26 = vector.load %arg19[%c8, %c0_19] : memref<32x32xbf16, #tpu.memory_space<vmem>>, vector<16x32xbf16>
    tpu.vector_store %arg19[%c8, %c0_19], %25 {strides = array<i32>} : memref<32x32xbf16, #tpu.memory_space<vmem>>, vector<16x32xbf16>,
    %c6 = arith.constant 6 : index
    %c0_20 = arith.constant 0 : index
    %27 = vector.load %arg19[%c6, %c0_20] : memref<32x32xbf16, #tpu.memory_space<vmem>>, vector<16x32xbf16>
    %c0_21 = arith.constant 0 : index
    %c0_22 = arith.constant 0 : index
    %c0_23 = arith.constant 0 : index
    %c0_24 = arith.constant 0 : index
    %28 = vector.load %arg7[%c0_21, %c0_22, %c0_23, %c0_24] : memref<1x20x32x32xbf16, #tpu.memory_space<vmem>>, vector<1x1x32x32xbf16>
    %29 = vector.shape_cast %28 : vector<1x1x32x32xbf16> to vector<32x32xbf16>
    %cst_25 = arith.constant dense<0.000000e+00> : vector<16x32xf32>
    %30 = tpu.matmul %27, %29, %cst_25 {dimension_numbers = #tpu.dot_dimension_numbers<[1], [0], [0], [1], [0, 0, 1, 1], [], []>} : vector<16x32xbf16>, vector<32x32xbf16>, vector<16x32xf32> -> vector<16x32xf32>
    %c0_26 = arith.constant 0 : index
    %c0_27 = arith.constant 0 : index
    %c0_28 = arith.constant 0 : index
    %c0_29 = arith.constant 0 : index
    %31 = vector.load %arg9[%c0_26, %c0_27, %c0_28, %c0_29] : memref<1x20x32x32xbf16, #tpu.memory_space<vmem>>, vector<1x1x32x32xbf16>
    %32 = vector.shape_cast %31 : vector<1x1x32x32xbf16> to vector<32x32xbf16>
    %cst_30 = arith.constant dense<0.000000e+00> : vector<16x32xf32>
    %33 = tpu.matmul %27, %32, %cst_30 {dimension_numbers = #tpu.dot_dimension_numbers<[1], [0], [0], [1], [0, 0, 1, 1], [], []>} : vector<16x32xbf16>, vector<32x32xbf16>, vector<16x32xf32> -> vector<16x32xf32>
    %c7 = arith.constant 7 : index
    %c0_31 = arith.constant 0 : index
    %34 = vector.load %arg19[%c7, %c0_31] : memref<32x32xbf16, #tpu.memory_space<vmem>>, vector<16x32xbf16>
    %c0_32 = arith.constant 0 : index
    %c1 = arith.constant 1 : index
    %c0_33 = arith.constant 0 : index
    %c0_34 = arith.constant 0 : index
    %35 = vector.load %arg7[%c0_32, %c1, %c0_33, %c0_34] : memref<1x20x32x32xbf16, #tpu.memory_space<vmem>>, vector<1x1x32x32xbf16>
    %36 = vector.shape_cast %35 : vector<1x1x32x32xbf16> to vector<32x32xbf16>
    %cst_35 = arith.constant dense<0.000000e+00> : vector<16x32xf32>
    %37 = tpu.matmul %34, %36, %cst_35 {dimension_numbers = #tpu.dot_dimension_numbers<[1], [0], [0], [1], [0, 0, 1, 1], [], []>} : vector<16x32xbf16>, vector<32x32xbf16>, vector<16x32xf32> -> vector<16x32xf32>
    %38 = arith.addf %30, %37 : vector<16x32xf32>
    %c0_36 = arith.constant 0 : index
    %c1_37 = arith.constant 1 : index
    %c0_38 = arith.constant 0 : index
    %c0_39 = arith.constant 0 : index
    %39 = vector.load %arg9[%c0_36, %c1_37, %c0_38, %c0_39] : memref<1x20x32x32xbf16, #tpu.memory_space<vmem>>, vector<1x1x32x32xbf16>
    %40 = vector.shape_cast %39 : vector<1x1x32x32xbf16> to vector<32x32xbf16>
    %cst_40 = arith.constant dense<0.000000e+00> : vector<16x32xf32>
    %41 = tpu.matmul %34, %40, %cst_40 {dimension_numbers = #tpu.dot_dimension_numbers<[1], [0], [0], [1], [0, 0, 1, 1], [], []>} : vector<16x32xbf16>, vector<32x32xbf16>, vector<16x32xf32> -> vector<16x32xf32>
    %42 = arith.addf %33, %41 : vector<16x32xf32>
    %c8_41 = arith.constant 8 : index
    %c0_42 = arith.constant 0 : index
    %43 = vector.load %arg19[%c8_41, %c0_42] : memref<32x32xbf16, #tpu.memory_space<vmem>>, vector<16x32xbf16>
    %c0_43 = arith.constant 0 : index
    %c2 = arith.constant 2 : index
    %c0_44 = arith.constant 0 : index
    %c0_45 = arith.constant 0 : index
    %44 = vector.load %arg7[%c0_43, %c2, %c0_44, %c0_45] : memref<1x20x32x32xbf16, #tpu.memory_space<vmem>>, vector<1x1x32x32xbf16>
    %45 = vector.shape_cast %44 : vector<1x1x32x32xbf16> to vector<32x32xbf16>
    %cst_46 = arith.constant dense<0.000000e+00> : vector<16x32xf32>
    %46 = tpu.matmul %43, %45, %cst_46 {dimension_numbers = #tpu.dot_dimension_numbers<[1], [0], [0], [1], [0, 0, 1, 1], [], []>} : vector<16x32xbf16>, vector<32x32xbf16>, vector<16x32xf32> -> vector<16x32xf32>
    %47 = arith.addf %38, %46 : vector<16x32xf32>
    %c0_47 = arith.constant 0 : index
    %c2_48 = arith.constant 2 : index
    %c0_49 = arith.constant 0 : index
    %c0_50 = arith.constant 0 : index
    %48 = vector.load %arg9[%c0_47, %c2_48, %c0_49, %c0_50] : memref<1x20x32x32xbf16, #tpu.memory_space<vmem>>, vector<1x1x32x32xbf16>
    %49 = vector.shape_cast %48 : vector<1x1x32x32xbf16> to vector<32x32xbf16>
    %cst_51 = arith.constant dense<0.000000e+00> : vector<16x32xf32>
    %50 = tpu.matmul %43, %49, %cst_51 {dimension_numbers = #tpu.dot_dimension_numbers<[1], [0], [0], [1], [0, 0, 1, 1], [], []>} : vector<16x32xbf16>, vector<32x32xbf16>, vector<16x32xf32> -> vector<16x32xf32>
    %51 = arith.addf %42, %50 : vector<16x32xf32>
    %c9 = arith.constant 9 : index
    %c0_52 = arith.constant 0 : index
    %52 = vector.load %arg19[%c9, %c0_52] : memref<32x32xbf16, #tpu.memory_space<vmem>>, vector<16x32xbf16>
    %c0_53 = arith.constant 0 : index
    %c3 = arith.constant 3 : index
    %c0_54 = arith.constant 0 : index
    %c0_55 = arith.constant 0 : index
    %53 = vector.load %arg7[%c0_53, %c3, %c0_54, %c0_55] : memref<1x20x32x32xbf16, #tpu.memory_space<vmem>>, vector<1x1x32x32xbf16>
    %54 = vector.shape_cast %53 : vector<1x1x32x32xbf16> to vector<32x32xbf16>
    %cst_56 = arith.constant dense<0.000000e+00> : vector<16x32xf32>
    %55 = tpu.matmul %52, %54, %cst_56 {dimension_numbers = #tpu.dot_dimension_numbers<[1], [0], [0], [1], [0, 0, 1, 1], [], []>} : vector<16x32xbf16>, vector<32x32xbf16>, vector<16x32xf32> -> vector<16x32xf32>
    %56 = arith.addf %47, %55 : vector<16x32xf32>
    %c0_57 = arith.constant 0 : index
    %c3_58 = arith.constant 3 : index
    %c0_59 = arith.constant 0 : index
    %c0_60 = arith.constant 0 : index
    %57 = vector.load %arg9[%c0_57, %c3_58, %c0_59, %c0_60] : memref<1x20x32x32xbf16, #tpu.memory_space<vmem>>, vector<1x1x32x32xbf16>
    %58 = vector.shape_cast %57 : vector<1x1x32x32xbf16> to vector<32x32xbf16>
    %cst_61 = arith.constant dense<0.000000e+00> : vector<16x32xf32>
    %59 = tpu.matmul %52, %58, %cst_61 {dimension_numbers = #tpu.dot_dimension_numbers<[1], [0], [0], [1], [0, 0, 1, 1], [], []>} : vector<16x32xbf16>, vector<32x32xbf16>, vector<16x32xf32> -> vector<16x32xf32>
    %60 = arith.addf %51, %59 : vector<16x32xf32>
    %c10 = arith.constant 10 : index
    %c0_62 = arith.constant 0 : index
    %61 = vector.load %arg19[%c10, %c0_62] : memref<32x32xbf16, #tpu.memory_space<vmem>>, vector<16x32xbf16>
    %c0_63 = arith.constant 0 : index
    %c4 = arith.constant 4 : index
    %c0_64 = arith.constant 0 : index
    %c0_65 = arith.constant 0 : index
    %62 = vector.load %arg7[%c0_63, %c4, %c0_64, %c0_65] : memref<1x20x32x32xbf16, #tpu.memory_space<vmem>>, vector<1x1x32x32xbf16>
    %63 = vector.shape_cast %62 : vector<1x1x32x32xbf16> to vector<32x32xbf16>
    %cst_66 = arith.constant dense<0.000000e+00> : vector<16x32xf32>
    %64 = tpu.matmul %61, %63, %cst_66 {dimension_numbers = #tpu.dot_dimension_numbers<[1], [0], [0], [1], [0, 0, 1, 1], [], []>} : vector<16x32xbf16>, vector<32x32xbf16>, vector<16x32xf32> -> vector<16x32xf32>
    %65 = arith.addf %56, %64 : vector<16x32xf32>
    %c0_67 = arith.constant 0 : index
    %c4_68 = arith.constant 4 : index
    %c0_69 = arith.constant 0 : index
    %c0_70 = arith.constant 0 : index
    %66 = vector.load %arg9[%c0_67, %c4_68, %c0_69, %c0_70] : memref<1x20x32x32xbf16, #tpu.memory_space<vmem>>, vector<1x1x32x32xbf16>
    %67 = vector.shape_cast %66 : vector<1x1x32x32xbf16> to vector<32x32xbf16>
    %cst_71 = arith.constant dense<0.000000e+00> : vector<16x32xf32>
    %68 = tpu.matmul %61, %67, %cst_71 {dimension_numbers = #tpu.dot_dimension_numbers<[1], [0], [0], [1], [0, 0, 1, 1], [], []>} : vector<16x32xbf16>, vector<32x32xbf16>, vector<16x32xf32> -> vector<16x32xf32>
    %69 = arith.addf %60, %68 : vector<16x32xf32>
    %c0_72 = arith.constant 0 : index
    %c0_73 = arith.constant 0 : index
    %c0_74 = arith.constant 0 : index
    %c0_75 = arith.constant 0 : index
    %70 = vector.load %arg8[%c0_72, %c0_73, %c0_74, %c0_75] : memref<1x4x1x32xf32, #tpu.memory_space<vmem>>, vector<1x1x1x32xf32>
    %71 = vector.shape_cast %70 : vector<1x1x1x32xf32> to vector<1x32xf32>
    %72 = vector.broadcast %71 : vector<1x32xf32> to vector<16x32xf32>
    %73 = arith.addf %65, %72 : vector<16x32xf32>
    %74 = math.tanh %73 : vector<16x32xf32>
    %c0_76 = arith.constant 0 : index
    %c0_77 = arith.constant 0 : index
    %c0_78 = arith.constant 0 : index
    %c0_79 = arith.constant 0 : index
    %75 = vector.load %arg10[%c0_76, %c0_77, %c0_78, %c0_79] : memref<1x4x1x32xf32, #tpu.memory_space<vmem>>, vector<1x1x1x32xf32>
    %76 = vector.shape_cast %75 : vector<1x1x1x32xf32> to vector<1x32xf32>
    %77 = vector.broadcast %76 : vector<1x32xf32> to vector<16x32xf32>
    %78 = arith.addf %69, %77 : vector<16x32xf32>
    %cst_80 = arith.constant 0.000000e+00 : f32
    %79 = vector.broadcast %cst_80 : f32 to vector<16x32xf32>
    %80 = arith.subf %79, %78 : vector<16x32xf32>
    %81 = math.exp %80 : vector<16x32xf32>
    %cst_81 = arith.constant 1.000000e+00 : f32
    %82 = vector.broadcast %cst_81 : f32 to vector<16x32xf32>
    %83 = arith.addf %82, %81 : vector<16x32xf32>
    %84 = tpu.reciprocal %83 {approx = true} : vector<16x32xf32> -> vector<16x32xf32>
    %85 = arith.mulf %74, %84 : vector<16x32xf32>
    %86 = arith.truncf %85 : vector<16x32xf32> to vector<16x32xbf16>
    %c0_82 = arith.constant 0 : index
    %c0_83 = arith.constant 0 : index
    %c0_84 = arith.constant 0 : index
    %c0_85 = arith.constant 0 : index
    %87 = vector.load %arg13[%c0_82, %c0_83, %c0_84, %c0_85] : memref<1x4x32x32xbf16, #tpu.memory_space<vmem>>, vector<1x1x32x32xbf16>
    %88 = vector.shape_cast %87 : vector<1x1x32x32xbf16> to vector<32x32xbf16>
    %cst_86 = arith.constant dense<0.000000e+00> : vector<16x32xf32>
    %89 = tpu.matmul %86, %88, %cst_86 {dimension_numbers = #tpu.dot_dimension_numbers<[1], [0], [0], [1], [0, 0, 1, 1], [], []>} : vector<16x32xbf16>, vector<32x32xbf16>, vector<16x32xf32> -> vector<16x32xf32>
    %c0_87 = arith.constant 0 : index
    %c0_88 = arith.constant 0 : index
    %c0_89 = arith.constant 0 : index
    %c0_90 = arith.constant 0 : index
    %90 = vector.load %arg14[%c0_87, %c0_88, %c0_89, %c0_90] : memref<1x4x1x32xf32, #tpu.memory_space<vmem>>, vector<1x1x1x32xf32>
    %91 = vector.shape_cast %90 : vector<1x1x1x32xf32> to vector<1x32xf32>
    %92 = vector.broadcast %91 : vector<1x32xf32> to vector<16x32xf32>
    %93 = arith.addf %89, %92 : vector<16x32xf32>
    %c0_91 = arith.constant 0 : index
    %c0_92 = arith.constant 0 : index
    %c0_93 = arith.constant 0 : index
    %c0_94 = arith.constant 0 : index
    %94 = vector.load %arg11[%c0_91, %c0_92, %c0_93, %c0_94] : memref<1x4x32x32xbf16, #tpu.memory_space<vmem>>, vector<1x1x32x32xbf16>
    %95 = vector.shape_cast %94 : vector<1x1x32x32xbf16> to vector<32x32xbf16>
    %cst_95 = arith.constant dense<0.000000e+00> : vector<16x32xf32>
    %96 = tpu.matmul %86, %95, %cst_95 {dimension_numbers = #tpu.dot_dimension_numbers<[1], [0], [0], [1], [0, 0, 1, 1], [], []>} : vector<16x32xbf16>, vector<32x32xbf16>, vector<16x32xf32> -> vector<16x32xf32>
    %97 = arith.addf %24, %96 : vector<16x32xf32>
    %c0_96 = arith.constant 0 : index
    %c0_97 = arith.constant 0 : index
    %c0_98 = arith.constant 0 : index
    %c0_99 = arith.constant 0 : index
    %98 = vector.load %arg12[%c0_96, %c0_97, %c0_98, %c0_99] : memref<1x4x1x32xf32, #tpu.memory_space<vmem>>, vector<1x1x1x32xf32>
    %99 = vector.shape_cast %98 : vector<1x1x1x32xf32> to vector<1x32xf32>
    %100 = vector.broadcast %99 : vector<1x32xf32> to vector<16x32xf32>
    %101 = arith.addf %97, %100 : vector<16x32xf32>
    %102 = arith.mulf %101, %6 : vector<16x32xf32>
    %103 = arith.truncf %102 : vector<16x32xf32> to vector<16x32xbf16>
    %c8_100 = arith.constant 8 : index
    %c0_101 = arith.constant 0 : index
    %104 = vector.load %arg19[%c8_100, %c0_101] : memref<32x32xbf16, #tpu.memory_space<vmem>>, vector<16x32xbf16>
    tpu.vector_store %arg19[%c8_100, %c0_101], %103 {strides = array<i32>} : memref<32x32xbf16, #tpu.memory_space<vmem>>, vector<16x32xbf16>,
    %c6_102 = arith.constant 6 : index
    %c0_103 = arith.constant 0 : index
    %105 = vector.load %arg19[%c6_102, %c0_103] : memref<32x32xbf16, #tpu.memory_space<vmem>>, vector<16x32xbf16>
    %c0_104 = arith.constant 0 : index
    %c5 = arith.constant 5 : index
    %c0_105 = arith.constant 0 : index
    %c0_106 = arith.constant 0 : index
    %106 = vector.load %arg7[%c0_104, %c5, %c0_105, %c0_106] : memref<1x20x32x32xbf16, #tpu.memory_space<vmem>>, vector<1x1x32x32xbf16>
    %107 = vector.shape_cast %106 : vector<1x1x32x32xbf16> to vector<32x32xbf16>
    %cst_107 = arith.constant dense<0.000000e+00> : vector<16x32xf32>
    %108 = tpu.matmul %105, %107, %cst_107 {dimension_numbers = #tpu.dot_dimension_numbers<[1], [0], [0], [1], [0, 0, 1, 1], [], []>} : vector<16x32xbf16>, vector<32x32xbf16>, vector<16x32xf32> -> vector<16x32xf32>
    %c0_108 = arith.constant 0 : index
    %c5_109 = arith.constant 5 : index
    %c0_110 = arith.constant 0 : index
    %c0_111 = arith.constant 0 : index
    %109 = vector.load %arg9[%c0_108, %c5_109, %c0_110, %c0_111] : memref<1x20x32x32xbf16, #tpu.memory_space<vmem>>, vector<1x1x32x32xbf16>
    %110 = vector.shape_cast %109 : vector<1x1x32x32xbf16> to vector<32x32xbf16>
    %cst_112 = arith.constant dense<0.000000e+00> : vector<16x32xf32>
    %111 = tpu.matmul %105, %110, %cst_112 {dimension_numbers = #tpu.dot_dimension_numbers<[1], [0], [0], [1], [0, 0, 1, 1], [], []>} : vector<16x32xbf16>, vector<32x32xbf16>, vector<16x32xf32> -> vector<16x32xf32>
    %c7_113 = arith.constant 7 : index
    %c0_114 = arith.constant 0 : index
    %112 = vector.load %arg19[%c7_113, %c0_114] : memref<32x32xbf16, #tpu.memory_space<vmem>>, vector<16x32xbf16>
    %c0_115 = arith.constant 0 : index
    %c6_116 = arith.constant 6 : index
    %c0_117 = arith.constant 0 : index
    %c0_118 = arith.constant 0 : index
    %113 = vector.load %arg7[%c0_115, %c6_116, %c0_117, %c0_118] : memref<1x20x32x32xbf16, #tpu.memory_space<vmem>>, vector<1x1x32x32xbf16>
    %114 = vector.shape_cast %113 : vector<1x1x32x32xbf16> to vector<32x32xbf16>
    %cst_119 = arith.constant dense<0.000000e+00> : vector<16x32xf32>
    %115 = tpu.matmul %112, %114, %cst_119 {dimension_numbers = #tpu.dot_dimension_numbers<[1], [0], [0], [1], [0, 0, 1, 1], [], []>} : vector<16x32xbf16>, vector<32x32xbf16>, vector<16x32xf32> -> vector<16x32xf32>
    %116 = arith.addf %108, %115 : vector<16x32xf32>
    %c0_120 = arith.constant 0 : index
    %c6_121 = arith.constant 6 : index
    %c0_122 = arith.constant 0 : index
    %c0_123 = arith.constant 0 : index
    %117 = vector.load %arg9[%c0_120, %c6_121, %c0_122, %c0_123] : memref<1x20x32x32xbf16, #tpu.memory_space<vmem>>, vector<1x1x32x32xbf16>
    %118 = vector.shape_cast %117 : vector<1x1x32x32xbf16> to vector<32x32xbf16>
    %cst_124 = arith.constant dense<0.000000e+00> : vector<16x32xf32>
    %119 = tpu.matmul %112, %118, %cst_124 {dimension_numbers = #tpu.dot_dimension_numbers<[1], [0], [0], [1], [0, 0, 1, 1], [], []>} : vector<16x32xbf16>, vector<32x32xbf16>, vector<16x32xf32> -> vector<16x32xf32>
    %120 = arith.addf %111, %119 : vector<16x32xf32>
    %c8_125 = arith.constant 8 : index
    %c0_126 = arith.constant 0 : index
    %121 = vector.load %arg19[%c8_125, %c0_126] : memref<32x32xbf16, #tpu.memory_space<vmem>>, vector<16x32xbf16>
    %c0_127 = arith.constant 0 : index
    %c7_128 = arith.constant 7 : index
    %c0_129 = arith.constant 0 : index
    %c0_130 = arith.constant 0 : index
    %122 = vector.load %arg7[%c0_127, %c7_128, %c0_129, %c0_130] : memref<1x20x32x32xbf16, #tpu.memory_space<vmem>>, vector<1x1x32x32xbf16>
    %123 = vector.shape_cast %122 : vector<1x1x32x32xbf16> to vector<32x32xbf16>
    %cst_131 = arith.constant dense<0.000000e+00> : vector<16x32xf32>
    %124 = tpu.matmul %121, %123, %cst_131 {dimension_numbers = #tpu.dot_dimension_numbers<[1], [0], [0], [1], [0, 0, 1, 1], [], []>} : vector<16x32xbf16>, vector<32x32xbf16>, vector<16x32xf32> -> vector<16x32xf32>
    %125 = arith.addf %116, %124 : vector<16x32xf32>
    %c0_132 = arith.constant 0 : index
    %c7_133 = arith.constant 7 : index
    %c0_134 = arith.constant 0 : index
    %c0_135 = arith.constant 0 : index
    %126 = vector.load %arg9[%c0_132, %c7_133, %c0_134, %c0_135] : memref<1x20x32x32xbf16, #tpu.memory_space<vmem>>, vector<1x1x32x32xbf16>
    %127 = vector.shape_cast %126 : vector<1x1x32x32xbf16> to vector<32x32xbf16>
    %cst_136 = arith.constant dense<0.000000e+00> : vector<16x32xf32>
    %128 = tpu.matmul %121, %127, %cst_136 {dimension_numbers = #tpu.dot_dimension_numbers<[1], [0], [0], [1], [0, 0, 1, 1], [], []>} : vector<16x32xbf16>, vector<32x32xbf16>, vector<16x32xf32> -> vector<16x32xf32>
    %129 = arith.addf %120, %128 : vector<16x32xf32>
    %c9_137 = arith.constant 9 : index
    %c0_138 = arith.constant 0 : index
    %130 = vector.load %arg19[%c9_137, %c0_138] : memref<32x32xbf16, #tpu.memory_space<vmem>>, vector<16x32xbf16>
    %c0_139 = arith.constant 0 : index
    %c8_140 = arith.constant 8 : index
    %c0_141 = arith.constant 0 : index
    %c0_142 = arith.constant 0 : index
    %131 = vector.load %arg7[%c0_139, %c8_140, %c0_141, %c0_142] : memref<1x20x32x32xbf16, #tpu.memory_space<vmem>>, vector<1x1x32x32xbf16>
    %132 = vector.shape_cast %131 : vector<1x1x32x32xbf16> to vector<32x32xbf16>
    %cst_143 = arith.constant dense<0.000000e+00> : vector<16x32xf32>
    %133 = tpu.matmul %130, %132, %cst_143 {dimension_numbers = #tpu.dot_dimension_numbers<[1], [0], [0], [1], [0, 0, 1, 1], [], []>} : vector<16x32xbf16>, vector<32x32xbf16>, vector<16x32xf32> -> vector<16x32xf32>
    %134 = arith.addf %125, %133 : vector<16x32xf32>
    %c0_144 = arith.constant 0 : index
    %c8_145 = arith.constant 8 : index
    %c0_146 = arith.constant 0 : index
    %c0_147 = arith.constant 0 : index
    %135 = vector.load %arg9[%c0_144, %c8_145, %c0_146, %c0_147] : memref<1x20x32x32xbf16, #tpu.memory_space<vmem>>, vector<1x1x32x32xbf16>
    %136 = vector.shape_cast %135 : vector<1x1x32x32xbf16> to vector<32x32xbf16>
    %cst_148 = arith.constant dense<0.000000e+00> : vector<16x32xf32>
    %137 = tpu.matmul %130, %136, %cst_148 {dimension_numbers = #tpu.dot_dimension_numbers<[1], [0], [0], [1], [0, 0, 1, 1], [], []>} : vector<16x32xbf16>, vector<32x32xbf16>, vector<16x32xf32> -> vector<16x32xf32>
    %138 = arith.addf %129, %137 : vector<16x32xf32>
    %c10_149 = arith.constant 10 : index
    %c0_150 = arith.constant 0 : index
    %139 = vector.load %arg19[%c10_149, %c0_150] : memref<32x32xbf16, #tpu.memory_space<vmem>>, vector<16x32xbf16>
    %c0_151 = arith.constant 0 : index
    %c9_152 = arith.constant 9 : index
    %c0_153 = arith.constant 0 : index
    %c0_154 = arith.constant 0 : index
    %140 = vector.load %arg7[%c0_151, %c9_152, %c0_153, %c0_154] : memref<1x20x32x32xbf16, #tpu.memory_space<vmem>>, vector<1x1x32x32xbf16>
    %141 = vector.shape_cast %140 : vector<1x1x32x32xbf16> to vector<32x32xbf16>
    %cst_155 = arith.constant dense<0.000000e+00> : vector<16x32xf32>
    %142 = tpu.matmul %139, %141, %cst_155 {dimension_numbers = #tpu.dot_dimension_numbers<[1], [0], [0], [1], [0, 0, 1, 1], [], []>} : vector<16x32xbf16>, vector<32x32xbf16>, vector<16x32xf32> -> vector<16x32xf32>
    %143 = arith.addf %134, %142 : vector<16x32xf32>
    %c0_156 = arith.constant 0 : index
    %c9_157 = arith.constant 9 : index
    %c0_158 = arith.constant 0 : index
    %c0_159 = arith.constant 0 : index
    %144 = vector.load %arg9[%c0_156, %c9_157, %c0_158, %c0_159] : memref<1x20x32x32xbf16, #tpu.memory_space<vmem>>, vector<1x1x32x32xbf16>
    %145 = vector.shape_cast %144 : vector<1x1x32x32xbf16> to vector<32x32xbf16>
    %cst_160 = arith.constant dense<0.000000e+00> : vector<16x32xf32>
    %146 = tpu.matmul %139, %145, %cst_160 {dimension_numbers = #tpu.dot_dimension_numbers<[1], [0], [0], [1], [0, 0, 1, 1], [], []>} : vector<16x32xbf16>, vector<32x32xbf16>, vector<16x32xf32> -> vector<16x32xf32>
    %147 = arith.addf %138, %146 : vector<16x32xf32>
    %c0_161 = arith.constant 0 : index
    %c1_162 = arith.constant 1 : index
    %c0_163 = arith.constant 0 : index
    %c0_164 = arith.constant 0 : index
    %148 = vector.load %arg8[%c0_161, %c1_162, %c0_163, %c0_164] : memref<1x4x1x32xf32, #tpu.memory_space<vmem>>, vector<1x1x1x32xf32>
    %149 = vector.shape_cast %148 : vector<1x1x1x32xf32> to vector<1x32xf32>
    %150 = vector.broadcast %149 : vector<1x32xf32> to vector<16x32xf32>
    %151 = arith.addf %143, %150 : vector<16x32xf32>
    %152 = math.tanh %151 : vector<16x32xf32>
    %c0_165 = arith.constant 0 : index
    %c1_166 = arith.constant 1 : index
    %c0_167 = arith.constant 0 : index
    %c0_168 = arith.constant 0 : index
    %153 = vector.load %arg10[%c0_165, %c1_166, %c0_167, %c0_168] : memref<1x4x1x32xf32, #tpu.memory_space<vmem>>, vector<1x1x1x32xf32>
    %154 = vector.shape_cast %153 : vector<1x1x1x32xf32> to vector<1x32xf32>
    %155 = vector.broadcast %154 : vector<1x32xf32> to vector<16x32xf32>
    %156 = arith.addf %147, %155 : vector<16x32xf32>
    %cst_169 = arith.constant 0.000000e+00 : f32
    %157 = vector.broadcast %cst_169 : f32 to vector<16x32xf32>
    %158 = arith.subf %157, %156 : vector<16x32xf32>
    %159 = math.exp %158 : vector<16x32xf32>
    %cst_170 = arith.constant 1.000000e+00 : f32
    %160 = vector.broadcast %cst_170 : f32 to vector<16x32xf32>
    %161 = arith.addf %160, %159 : vector<16x32xf32>
    %162 = tpu.reciprocal %161 {approx = true} : vector<16x32xf32> -> vector<16x32xf32>
    %163 = arith.mulf %152, %162 : vector<16x32xf32>
    %164 = arith.truncf %163 : vector<16x32xf32> to vector<16x32xbf16>
    %c0_171 = arith.constant 0 : index
    %c1_172 = arith.constant 1 : index
    %c0_173 = arith.constant 0 : index
    %c0_174 = arith.constant 0 : index
    %165 = vector.load %arg13[%c0_171, %c1_172, %c0_173, %c0_174] : memref<1x4x32x32xbf16, #tpu.memory_space<vmem>>, vector<1x1x32x32xbf16>
    %166 = vector.shape_cast %165 : vector<1x1x32x32xbf16> to vector<32x32xbf16>
    %cst_175 = arith.constant dense<0.000000e+00> : vector<16x32xf32>
    %167 = tpu.matmul %164, %166, %cst_175 {dimension_numbers = #tpu.dot_dimension_numbers<[1], [0], [0], [1], [0, 0, 1, 1], [], []>} : vector<16x32xbf16>, vector<32x32xbf16>, vector<16x32xf32> -> vector<16x32xf32>
    %c0_176 = arith.constant 0 : index
    %c1_177 = arith.constant 1 : index
    %c0_178 = arith.constant 0 : index
    %c0_179 = arith.constant 0 : index
    %168 = vector.load %arg14[%c0_176, %c1_177, %c0_178, %c0_179] : memref<1x4x1x32xf32, #tpu.memory_space<vmem>>, vector<1x1x1x32xf32>
    %169 = vector.shape_cast %168 : vector<1x1x1x32xf32> to vector<1x32xf32>
    %170 = vector.broadcast %169 : vector<1x32xf32> to vector<16x32xf32>
    %171 = arith.addf %167, %170 : vector<16x32xf32>
    %172 = arith.addf %93, %171 : vector<16x32xf32>
    %c0_180 = arith.constant 0 : index
    %c1_181 = arith.constant 1 : index
    %c0_182 = arith.constant 0 : index
    %c0_183 = arith.constant 0 : index
    %173 = vector.load %arg11[%c0_180, %c1_181, %c0_182, %c0_183] : memref<1x4x32x32xbf16, #tpu.memory_space<vmem>>, vector<1x1x32x32xbf16>
    %174 = vector.shape_cast %173 : vector<1x1x32x32xbf16> to vector<32x32xbf16>
    %cst_184 = arith.constant dense<0.000000e+00> : vector<16x32xf32>
    %175 = tpu.matmul %164, %174, %cst_184 {dimension_numbers = #tpu.dot_dimension_numbers<[1], [0], [0], [1], [0, 0, 1, 1], [], []>} : vector<16x32xbf16>, vector<32x32xbf16>, vector<16x32xf32> -> vector<16x32xf32>
    %176 = arith.addf %102, %175 : vector<16x32xf32>
    %c0_185 = arith.constant 0 : index
    %c1_186 = arith.constant 1 : index
    %c0_187 = arith.constant 0 : index
    %c0_188 = arith.constant 0 : index
    %177 = vector.load %arg12[%c0_185, %c1_186, %c0_187, %c0_188] : memref<1x4x1x32xf32, #tpu.memory_space<vmem>>, vector<1x1x1x32xf32>
    %178 = vector.shape_cast %177 : vector<1x1x1x32xf32> to vector<1x32xf32>
    %179 = vector.broadcast %178 : vector<1x32xf32> to vector<16x32xf32>
    %180 = arith.addf %176, %179 : vector<16x32xf32>
    %181 = arith.mulf %180, %6 : vector<16x32xf32>
    %182 = arith.truncf %181 : vector<16x32xf32> to vector<16x32xbf16>
    %c8_189 = arith.constant 8 : index
    %c0_190 = arith.constant 0 : index
    %183 = vector.load %arg19[%c8_189, %c0_190] : memref<32x32xbf16, #tpu.memory_space<vmem>>, vector<16x32xbf16>
    tpu.vector_store %arg19[%c8_189, %c0_190], %182 {strides = array<i32>} : memref<32x32xbf16, #tpu.memory_space<vmem>>, vector<16x32xbf16>,
    %c6_191 = arith.constant 6 : index
    %c0_192 = arith.constant 0 : index
    %184 = vector.load %arg19[%c6_191, %c0_192] : memref<32x32xbf16, #tpu.memory_space<vmem>>, vector<16x32xbf16>
    %c0_193 = arith.constant 0 : index
    %c10_194 = arith.constant 10 : index
    %c0_195 = arith.constant 0 : index
    %c0_196 = arith.constant 0 : index
    %185 = vector.load %arg7[%c0_193, %c10_194, %c0_195, %c0_196] : memref<1x20x32x32xbf16, #tpu.memory_space<vmem>>, vector<1x1x32x32xbf16>
    %186 = vector.shape_cast %185 : vector<1x1x32x32xbf16> to vector<32x32xbf16>
    %cst_197 = arith.constant dense<0.000000e+00> : vector<16x32xf32>
    %187 = tpu.matmul %184, %186, %cst_197 {dimension_numbers = #tpu.dot_dimension_numbers<[1], [0], [0], [1], [0, 0, 1, 1], [], []>} : vector<16x32xbf16>, vector<32x32xbf16>, vector<16x32xf32> -> vector<16x32xf32>
    %c0_198 = arith.constant 0 : index
    %c10_199 = arith.constant 10 : index
    %c0_200 = arith.constant 0 : index
    %c0_201 = arith.constant 0 : index
    %188 = vector.load %arg9[%c0_198, %c10_199, %c0_200, %c0_201] : memref<1x20x32x32xbf16, #tpu.memory_space<vmem>>, vector<1x1x32x32xbf16>
    %189 = vector.shape_cast %188 : vector<1x1x32x32xbf16> to vector<32x32xbf16>
    %cst_202 = arith.constant dense<0.000000e+00> : vector<16x32xf32>
    %190 = tpu.matmul %184, %189, %cst_202 {dimension_numbers = #tpu.dot_dimension_numbers<[1], [0], [0], [1], [0, 0, 1, 1], [], []>} : vector<16x32xbf16>, vector<32x32xbf16>, vector<16x32xf32> -> vector<16x32xf32>
    %c7_203 = arith.constant 7 : index
    %c0_204 = arith.constant 0 : index
    %191 = vector.load %arg19[%c7_203, %c0_204] : memref<32x32xbf16, #tpu.memory_space<vmem>>, vector<16x32xbf16>
    %c0_205 = arith.constant 0 : index
    %c11 = arith.constant 11 : index
    %c0_206 = arith.constant 0 : index
    %c0_207 = arith.constant 0 : index
    %192 = vector.load %arg7[%c0_205, %c11, %c0_206, %c0_207] : memref<1x20x32x32xbf16, #tpu.memory_space<vmem>>, vector<1x1x32x32xbf16>
    %193 = vector.shape_cast %192 : vector<1x1x32x32xbf16> to vector<32x32xbf16>
    %cst_208 = arith.constant dense<0.000000e+00> : vector<16x32xf32>
    %194 = tpu.matmul %191, %193, %cst_208 {dimension_numbers = #tpu.dot_dimension_numbers<[1], [0], [0], [1], [0, 0, 1, 1], [], []>} : vector<16x32xbf16>, vector<32x32xbf16>, vector<16x32xf32> -> vector<16x32xf32>
    %195 = arith.addf %187, %194 : vector<16x32xf32>
    %c0_209 = arith.constant 0 : index
    %c11_210 = arith.constant 11 : index
    %c0_211 = arith.constant 0 : index
    %c0_212 = arith.constant 0 : index
    %196 = vector.load %arg9[%c0_209, %c11_210, %c0_211, %c0_212] : memref<1x20x32x32xbf16, #tpu.memory_space<vmem>>, vector<1x1x32x32xbf16>
    %197 = vector.shape_cast %196 : vector<1x1x32x32xbf16> to vector<32x32xbf16>
    %cst_213 = arith.constant dense<0.000000e+00> : vector<16x32xf32>
    %198 = tpu.matmul %191, %197, %cst_213 {dimension_numbers = #tpu.dot_dimension_numbers<[1], [0], [0], [1], [0, 0, 1, 1], [], []>} : vector<16x32xbf16>, vector<32x32xbf16>, vector<16x32xf32> -> vector<16x32xf32>
    %199 = arith.addf %190, %198 : vector<16x32xf32>
    %c8_214 = arith.constant 8 : index
    %c0_215 = arith.constant 0 : index
    %200 = vector.load %arg19[%c8_214, %c0_215] : memref<32x32xbf16, #tpu.memory_space<vmem>>, vector<16x32xbf16>
    %c0_216 = arith.constant 0 : index
    %c12 = arith.constant 12 : index
    %c0_217 = arith.constant 0 : index
    %c0_218 = arith.constant 0 : index
    %201 = vector.load %arg7[%c0_216, %c12, %c0_217, %c0_218] : memref<1x20x32x32xbf16, #tpu.memory_space<vmem>>, vector<1x1x32x32xbf16>
    %202 = vector.shape_cast %201 : vector<1x1x32x32xbf16> to vector<32x32xbf16>
    %cst_219 = arith.constant dense<0.000000e+00> : vector<16x32xf32>
    %203 = tpu.matmul %200, %202, %cst_219 {dimension_numbers = #tpu.dot_dimension_numbers<[1], [0], [0], [1], [0, 0, 1, 1], [], []>} : vector<16x32xbf16>, vector<32x32xbf16>, vector<16x32xf32> -> vector<16x32xf32>
    %204 = arith.addf %195, %203 : vector<16x32xf32>
    %c0_220 = arith.constant 0 : index
    %c12_221 = arith.constant 12 : index
    %c0_222 = arith.constant 0 : index
    %c0_223 = arith.constant 0 : index
    %205 = vector.load %arg9[%c0_220, %c12_221, %c0_222, %c0_223] : memref<1x20x32x32xbf16, #tpu.memory_space<vmem>>, vector<1x1x32x32xbf16>
    %206 = vector.shape_cast %205 : vector<1x1x32x32xbf16> to vector<32x32xbf16>
    %cst_224 = arith.constant dense<0.000000e+00> : vector<16x32xf32>
    %207 = tpu.matmul %200, %206, %cst_224 {dimension_numbers = #tpu.dot_dimension_numbers<[1], [0], [0], [1], [0, 0, 1, 1], [], []>} : vector<16x32xbf16>, vector<32x32xbf16>, vector<16x32xf32> -> vector<16x32xf32>
    %208 = arith.addf %199, %207 : vector<16x32xf32>
    %c9_225 = arith.constant 9 : index
    %c0_226 = arith.constant 0 : index
    %209 = vector.load %arg19[%c9_225, %c0_226] : memref<32x32xbf16, #tpu.memory_space<vmem>>, vector<16x32xbf16>
    %c0_227 = arith.constant 0 : index
    %c13 = arith.constant 13 : index
    %c0_228 = arith.constant 0 : index
    %c0_229 = arith.constant 0 : index
    %210 = vector.load %arg7[%c0_227, %c13, %c0_228, %c0_229] : memref<1x20x32x32xbf16, #tpu.memory_space<vmem>>, vector<1x1x32x32xbf16>
    %211 = vector.shape_cast %210 : vector<1x1x32x32xbf16> to vector<32x32xbf16>
    %cst_230 = arith.constant dense<0.000000e+00> : vector<16x32xf32>
    %212 = tpu.matmul %209, %211, %cst_230 {dimension_numbers = #tpu.dot_dimension_numbers<[1], [0], [0], [1], [0, 0, 1, 1], [], []>} : vector<16x32xbf16>, vector<32x32xbf16>, vector<16x32xf32> -> vector<16x32xf32>
    %213 = arith.addf %204, %212 : vector<16x32xf32>
    %c0_231 = arith.constant 0 : index
    %c13_232 = arith.constant 13 : index
    %c0_233 = arith.constant 0 : index
    %c0_234 = arith.constant 0 : index
    %214 = vector.load %arg9[%c0_231, %c13_232, %c0_233, %c0_234] : memref<1x20x32x32xbf16, #tpu.memory_space<vmem>>, vector<1x1x32x32xbf16>
    %215 = vector.shape_cast %214 : vector<1x1x32x32xbf16> to vector<32x32xbf16>
    %cst_235 = arith.constant dense<0.000000e+00> : vector<16x32xf32>
    %216 = tpu.matmul %209, %215, %cst_235 {dimension_numbers = #tpu.dot_dimension_numbers<[1], [0], [0], [1], [0, 0, 1, 1], [], []>} : vector<16x32xbf16>, vector<32x32xbf16>, vector<16x32xf32> -> vector<16x32xf32>
    %217 = arith.addf %208, %216 : vector<16x32xf32>
    %c10_236 = arith.constant 10 : index
    %c0_237 = arith.constant 0 : index
    %218 = vector.load %arg19[%c10_236, %c0_237] : memref<32x32xbf16, #tpu.memory_space<vmem>>, vector<16x32xbf16>
    %c0_238 = arith.constant 0 : index
    %c14 = arith.constant 14 : index
    %c0_239 = arith.constant 0 : index
    %c0_240 = arith.constant 0 : index
    %219 = vector.load %arg7[%c0_238, %c14, %c0_239, %c0_240] : memref<1x20x32x32xbf16, #tpu.memory_space<vmem>>, vector<1x1x32x32xbf16>
    %220 = vector.shape_cast %219 : vector<1x1x32x32xbf16> to vector<32x32xbf16>
    %cst_241 = arith.constant dense<0.000000e+00> : vector<16x32xf32>
    %221 = tpu.matmul %218, %220, %cst_241 {dimension_numbers = #tpu.dot_dimension_numbers<[1], [0], [0], [1], [0, 0, 1, 1], [], []>} : vector<16x32xbf16>, vector<32x32xbf16>, vector<16x32xf32> -> vector<16x32xf32>
    %222 = arith.addf %213, %221 : vector<16x32xf32>
    %c0_242 = arith.constant 0 : index
    %c14_243 = arith.constant 14 : index
    %c0_244 = arith.constant 0 : index
    %c0_245 = arith.constant 0 : index
    %223 = vector.load %arg9[%c0_242, %c14_243, %c0_244, %c0_245] : memref<1x20x32x32xbf16, #tpu.memory_space<vmem>>, vector<1x1x32x32xbf16>
    %224 = vector.shape_cast %223 : vector<1x1x32x32xbf16> to vector<32x32xbf16>
    %cst_246 = arith.constant dense<0.000000e+00> : vector<16x32xf32>
    %225 = tpu.matmul %218, %224, %cst_246 {dimension_numbers = #tpu.dot_dimension_numbers<[1], [0], [0], [1], [0, 0, 1, 1], [], []>} : vector<16x32xbf16>, vector<32x32xbf16>, vector<16x32xf32> -> vector<16x32xf32>
    %226 = arith.addf %217, %225 : vector<16x32xf32>
    %c0_247 = arith.constant 0 : index
    %c2_248 = arith.constant 2 : index
    %c0_249 = arith.constant 0 : index
    %c0_250 = arith.constant 0 : index
    %227 = vector.load %arg8[%c0_247, %c2_248, %c0_249, %c0_250] : memref<1x4x1x32xf32, #tpu.memory_space<vmem>>, vector<1x1x1x32xf32>
    %228 = vector.shape_cast %227 : vector<1x1x1x32xf32> to vector<1x32xf32>
    %229 = vector.broadcast %228 : vector<1x32xf32> to vector<16x32xf32>
    %230 = arith.addf %222, %229 : vector<16x32xf32>
    %231 = math.tanh %230 : vector<16x32xf32>
    %c0_251 = arith.constant 0 : index
    %c2_252 = arith.constant 2 : index
    %c0_253 = arith.constant 0 : index
    %c0_254 = arith.constant 0 : index
    %232 = vector.load %arg10[%c0_251, %c2_252, %c0_253, %c0_254] : memref<1x4x1x32xf32, #tpu.memory_space<vmem>>, vector<1x1x1x32xf32>
    %233 = vector.shape_cast %232 : vector<1x1x1x32xf32> to vector<1x32xf32>
    %234 = vector.broadcast %233 : vector<1x32xf32> to vector<16x32xf32>
    %235 = arith.addf %226, %234 : vector<16x32xf32>
    %cst_255 = arith.constant 0.000000e+00 : f32
    %236 = vector.broadcast %cst_255 : f32 to vector<16x32xf32>
    %237 = arith.subf %236, %235 : vector<16x32xf32>
    %238 = math.exp %237 : vector<16x32xf32>
    %cst_256 = arith.constant 1.000000e+00 : f32
    %239 = vector.broadcast %cst_256 : f32 to vector<16x32xf32>
    %240 = arith.addf %239, %238 : vector<16x32xf32>
    %241 = tpu.reciprocal %240 {approx = true} : vector<16x32xf32> -> vector<16x32xf32>
    %242 = arith.mulf %231, %241 : vector<16x32xf32>
    %243 = arith.truncf %242 : vector<16x32xf32> to vector<16x32xbf16>
    %c0_257 = arith.constant 0 : index
    %c2_258 = arith.constant 2 : index
    %c0_259 = arith.constant 0 : index
    %c0_260 = arith.constant 0 : index
    %244 = vector.load %arg13[%c0_257, %c2_258, %c0_259, %c0_260] : memref<1x4x32x32xbf16, #tpu.memory_space<vmem>>, vector<1x1x32x32xbf16>
    %245 = vector.shape_cast %244 : vector<1x1x32x32xbf16> to vector<32x32xbf16>
    %cst_261 = arith.constant dense<0.000000e+00> : vector<16x32xf32>
    %246 = tpu.matmul %243, %245, %cst_261 {dimension_numbers = #tpu.dot_dimension_numbers<[1], [0], [0], [1], [0, 0, 1, 1], [], []>} : vector<16x32xbf16>, vector<32x32xbf16>, vector<16x32xf32> -> vector<16x32xf32>
    %c0_262 = arith.constant 0 : index
    %c2_263 = arith.constant 2 : index
    %c0_264 = arith.constant 0 : index
    %c0_265 = arith.constant 0 : index
    %247 = vector.load %arg14[%c0_262, %c2_263, %c0_264, %c0_265] : memref<1x4x1x32xf32, #tpu.memory_space<vmem>>, vector<1x1x1x32xf32>
    %248 = vector.shape_cast %247 : vector<1x1x1x32xf32> to vector<1x32xf32>
    %249 = vector.broadcast %248 : vector<1x32xf32> to vector<16x32xf32>
    %250 = arith.addf %246, %249 : vector<16x32xf32>
    %251 = arith.addf %172, %250 : vector<16x32xf32>
    %c0_266 = arith.constant 0 : index
    %c2_267 = arith.constant 2 : index
    %c0_268 = arith.constant 0 : index
    %c0_269 = arith.constant 0 : index
    %252 = vector.load %arg11[%c0_266, %c2_267, %c0_268, %c0_269] : memref<1x4x32x32xbf16, #tpu.memory_space<vmem>>, vector<1x1x32x32xbf16>
    %253 = vector.shape_cast %252 : vector<1x1x32x32xbf16> to vector<32x32xbf16>
    %cst_270 = arith.constant dense<0.000000e+00> : vector<16x32xf32>
    %254 = tpu.matmul %243, %253, %cst_270 {dimension_numbers = #tpu.dot_dimension_numbers<[1], [0], [0], [1], [0, 0, 1, 1], [], []>} : vector<16x32xbf16>, vector<32x32xbf16>, vector<16x32xf32> -> vector<16x32xf32>
    %255 = arith.addf %181, %254 : vector<16x32xf32>
    %c0_271 = arith.constant 0 : index
    %c2_272 = arith.constant 2 : index
    %c0_273 = arith.constant 0 : index
    %c0_274 = arith.constant 0 : index
    %256 = vector.load %arg12[%c0_271, %c2_272, %c0_273, %c0_274] : memref<1x4x1x32xf32, #tpu.memory_space<vmem>>, vector<1x1x1x32xf32>
    %257 = vector.shape_cast %256 : vector<1x1x1x32xf32> to vector<1x32xf32>
    %258 = vector.broadcast %257 : vector<1x32xf32> to vector<16x32xf32>
    %259 = arith.addf %255, %258 : vector<16x32xf32>
    %260 = arith.mulf %259, %6 : vector<16x32xf32>
    %261 = arith.truncf %260 : vector<16x32xf32> to vector<16x32xbf16>
    %c8_275 = arith.constant 8 : index
    %c0_276 = arith.constant 0 : index
    %262 = vector.load %arg19[%c8_275, %c0_276] : memref<32x32xbf16, #tpu.memory_space<vmem>>, vector<16x32xbf16>
    tpu.vector_store %arg19[%c8_275, %c0_276], %261 {strides = array<i32>} : memref<32x32xbf16, #tpu.memory_space<vmem>>, vector<16x32xbf16>,
    %c6_277 = arith.constant 6 : index
    %c0_278 = arith.constant 0 : index
    %263 = vector.load %arg19[%c6_277, %c0_278] : memref<32x32xbf16, #tpu.memory_space<vmem>>, vector<16x32xbf16>
    %c0_279 = arith.constant 0 : index
    %c15 = arith.constant 15 : index
    %c0_280 = arith.constant 0 : index
    %c0_281 = arith.constant 0 : index
    %264 = vector.load %arg7[%c0_279, %c15, %c0_280, %c0_281] : memref<1x20x32x32xbf16, #tpu.memory_space<vmem>>, vector<1x1x32x32xbf16>
    %265 = vector.shape_cast %264 : vector<1x1x32x32xbf16> to vector<32x32xbf16>
    %cst_282 = arith.constant dense<0.000000e+00> : vector<16x32xf32>
    %266 = tpu.matmul %263, %265, %cst_282 {dimension_numbers = #tpu.dot_dimension_numbers<[1], [0], [0], [1], [0, 0, 1, 1], [], []>} : vector<16x32xbf16>, vector<32x32xbf16>, vector<16x32xf32> -> vector<16x32xf32>
    %c0_283 = arith.constant 0 : index
    %c15_284 = arith.constant 15 : index
    %c0_285 = arith.constant 0 : index
    %c0_286 = arith.constant 0 : index
    %267 = vector.load %arg9[%c0_283, %c15_284, %c0_285, %c0_286] : memref<1x20x32x32xbf16, #tpu.memory_space<vmem>>, vector<1x1x32x32xbf16>
    %268 = vector.shape_cast %267 : vector<1x1x32x32xbf16> to vector<32x32xbf16>
    %cst_287 = arith.constant dense<0.000000e+00> : vector<16x32xf32>
    %269 = tpu.matmul %263, %268, %cst_287 {dimension_numbers = #tpu.dot_dimension_numbers<[1], [0], [0], [1], [0, 0, 1, 1], [], []>} : vector<16x32xbf16>, vector<32x32xbf16>, vector<16x32xf32> -> vector<16x32xf32>
    %c7_288 = arith.constant 7 : index
    %c0_289 = arith.constant 0 : index
    %270 = vector.load %arg19[%c7_288, %c0_289] : memref<32x32xbf16, #tpu.memory_space<vmem>>, vector<16x32xbf16>
    %c0_290 = arith.constant 0 : index
    %c16 = arith.constant 16 : index
    %c0_291 = arith.constant 0 : index
    %c0_292 = arith.constant 0 : index
    %271 = vector.load %arg7[%c0_290, %c16, %c0_291, %c0_292] : memref<1x20x32x32xbf16, #tpu.memory_space<vmem>>, vector<1x1x32x32xbf16>
    %272 = vector.shape_cast %271 : vector<1x1x32x32xbf16> to vector<32x32xbf16>
    %cst_293 = arith.constant dense<0.000000e+00> : vector<16x32xf32>
    %273 = tpu.matmul %270, %272, %cst_293 {dimension_numbers = #tpu.dot_dimension_numbers<[1], [0], [0], [1], [0, 0, 1, 1], [], []>} : vector<16x32xbf16>, vector<32x32xbf16>, vector<16x32xf32> -> vector<16x32xf32>
    %274 = arith.addf %266, %273 : vector<16x32xf32>
    %c0_294 = arith.constant 0 : index
    %c16_295 = arith.constant 16 : index
    %c0_296 = arith.constant 0 : index
    %c0_297 = arith.constant 0 : index
    %275 = vector.load %arg9[%c0_294, %c16_295, %c0_296, %c0_297] : memref<1x20x32x32xbf16, #tpu.memory_space<vmem>>, vector<1x1x32x32xbf16>
    %276 = vector.shape_cast %275 : vector<1x1x32x32xbf16> to vector<32x32xbf16>
    %cst_298 = arith.constant dense<0.000000e+00> : vector<16x32xf32>
    %277 = tpu.matmul %270, %276, %cst_298 {dimension_numbers = #tpu.dot_dimension_numbers<[1], [0], [0], [1], [0, 0, 1, 1], [], []>} : vector<16x32xbf16>, vector<32x32xbf16>, vector<16x32xf32> -> vector<16x32xf32>
    %278 = arith.addf %269, %277 : vector<16x32xf32>
    %c8_299 = arith.constant 8 : index
    %c0_300 = arith.constant 0 : index
    %279 = vector.load %arg19[%c8_299, %c0_300] : memref<32x32xbf16, #tpu.memory_space<vmem>>, vector<16x32xbf16>
    %c0_301 = arith.constant 0 : index
    %c17 = arith.constant 17 : index
    %c0_302 = arith.constant 0 : index
    %c0_303 = arith.constant 0 : index
    %280 = vector.load %arg7[%c0_301, %c17, %c0_302, %c0_303] : memref<1x20x32x32xbf16, #tpu.memory_space<vmem>>, vector<1x1x32x32xbf16>
    %281 = vector.shape_cast %280 : vector<1x1x32x32xbf16> to vector<32x32xbf16>
    %cst_304 = arith.constant dense<0.000000e+00> : vector<16x32xf32>
    %282 = tpu.matmul %279, %281, %cst_304 {dimension_numbers = #tpu.dot_dimension_numbers<[1], [0], [0], [1], [0, 0, 1, 1], [], []>} : vector<16x32xbf16>, vector<32x32xbf16>, vector<16x32xf32> -> vector<16x32xf32>
    %283 = arith.addf %274, %282 : vector<16x32xf32>
    %c0_305 = arith.constant 0 : index
    %c17_306 = arith.constant 17 : index
    %c0_307 = arith.constant 0 : index
    %c0_308 = arith.constant 0 : index
    %284 = vector.load %arg9[%c0_305, %c17_306, %c0_307, %c0_308] : memref<1x20x32x32xbf16, #tpu.memory_space<vmem>>, vector<1x1x32x32xbf16>
    %285 = vector.shape_cast %284 : vector<1x1x32x32xbf16> to vector<32x32xbf16>
    %cst_309 = arith.constant dense<0.000000e+00> : vector<16x32xf32>
    %286 = tpu.matmul %279, %285, %cst_309 {dimension_numbers = #tpu.dot_dimension_numbers<[1], [0], [0], [1], [0, 0, 1, 1], [], []>} : vector<16x32xbf16>, vector<32x32xbf16>, vector<16x32xf32> -> vector<16x32xf32>
    %287 = arith.addf %278, %286 : vector<16x32xf32>
    %c9_310 = arith.constant 9 : index
    %c0_311 = arith.constant 0 : index
    %288 = vector.load %arg19[%c9_310, %c0_311] : memref<32x32xbf16, #tpu.memory_space<vmem>>, vector<16x32xbf16>
    %c0_312 = arith.constant 0 : index
    %c18 = arith.constant 18 : index
    %c0_313 = arith.constant 0 : index
    %c0_314 = arith.constant 0 : index
    %289 = vector.load %arg7[%c0_312, %c18, %c0_313, %c0_314] : memref<1x20x32x32xbf16, #tpu.memory_space<vmem>>, vector<1x1x32x32xbf16>
    %290 = vector.shape_cast %289 : vector<1x1x32x32xbf16> to vector<32x32xbf16>
    %cst_315 = arith.constant dense<0.000000e+00> : vector<16x32xf32>
    %291 = tpu.matmul %288, %290, %cst_315 {dimension_numbers = #tpu.dot_dimension_numbers<[1], [0], [0], [1], [0, 0, 1, 1], [], []>} : vector<16x32xbf16>, vector<32x32xbf16>, vector<16x32xf32> -> vector<16x32xf32>
    %292 = arith.addf %283, %291 : vector<16x32xf32>
    %c0_316 = arith.constant 0 : index
    %c18_317 = arith.constant 18 : index
    %c0_318 = arith.constant 0 : index
    %c0_319 = arith.constant 0 : index
    %293 = vector.load %arg9[%c0_316, %c18_317, %c0_318, %c0_319] : memref<1x20x32x32xbf16, #tpu.memory_space<vmem>>, vector<1x1x32x32xbf16>
    %294 = vector.shape_cast %293 : vector<1x1x32x32xbf16> to vector<32x32xbf16>
    %cst_320 = arith.constant dense<0.000000e+00> : vector<16x32xf32>
    %295 = tpu.matmul %288, %294, %cst_320 {dimension_numbers = #tpu.dot_dimension_numbers<[1], [0], [0], [1], [0, 0, 1, 1], [], []>} : vector<16x32xbf16>, vector<32x32xbf16>, vector<16x32xf32> -> vector<16x32xf32>
    %296 = arith.addf %287, %295 : vector<16x32xf32>
    %c10_321 = arith.constant 10 : index
    %c0_322 = arith.constant 0 : index
    %297 = vector.load %arg19[%c10_321, %c0_322] : memref<32x32xbf16, #tpu.memory_space<vmem>>, vector<16x32xbf16>
    %c0_323 = arith.constant 0 : index
    %c19 = arith.constant 19 : index
    %c0_324 = arith.constant 0 : index
    %c0_325 = arith.constant 0 : index
    %298 = vector.load %arg7[%c0_323, %c19, %c0_324, %c0_325] : memref<1x20x32x32xbf16, #tpu.memory_space<vmem>>, vector<1x1x32x32xbf16>
    %299 = vector.shape_cast %298 : vector<1x1x32x32xbf16> to vector<32x32xbf16>
    %cst_326 = arith.constant dense<0.000000e+00> : vector<16x32xf32>
    %300 = tpu.matmul %297, %299, %cst_326 {dimension_numbers = #tpu.dot_dimension_numbers<[1], [0], [0], [1], [0, 0, 1, 1], [], []>} : vector<16x32xbf16>, vector<32x32xbf16>, vector<16x32xf32> -> vector<16x32xf32>
    %301 = arith.addf %292, %300 : vector<16x32xf32>
    %c0_327 = arith.constant 0 : index
    %c19_328 = arith.constant 19 : index
    %c0_329 = arith.constant 0 : index
    %c0_330 = arith.constant 0 : index
    %302 = vector.load %arg9[%c0_327, %c19_328, %c0_329, %c0_330] : memref<1x20x32x32xbf16, #tpu.memory_space<vmem>>, vector<1x1x32x32xbf16>
    %303 = vector.shape_cast %302 : vector<1x1x32x32xbf16> to vector<32x32xbf16>
    %cst_331 = arith.constant dense<0.000000e+00> : vector<16x32xf32>
    %304 = tpu.matmul %297, %303, %cst_331 {dimension_numbers = #tpu.dot_dimension_numbers<[1], [0], [0], [1], [0, 0, 1, 1], [], []>} : vector<16x32xbf16>, vector<32x32xbf16>, vector<16x32xf32> -> vector<16x32xf32>
    %305 = arith.addf %296, %304 : vector<16x32xf32>
    %c0_332 = arith.constant 0 : index
    %c3_333 = arith.constant 3 : index
    %c0_334 = arith.constant 0 : index
    %c0_335 = arith.constant 0 : index
    %306 = vector.load %arg8[%c0_332, %c3_333, %c0_334, %c0_335] : memref<1x4x1x32xf32, #tpu.memory_space<vmem>>, vector<1x1x1x32xf32>
    %307 = vector.shape_cast %306 : vector<1x1x1x32xf32> to vector<1x32xf32>
    %308 = vector.broadcast %307 : vector<1x32xf32> to vector<16x32xf32>
    %309 = arith.addf %301, %308 : vector<16x32xf32>
    %310 = math.tanh %309 : vector<16x32xf32>
    %c0_336 = arith.constant 0 : index
    %c3_337 = arith.constant 3 : index
    %c0_338 = arith.constant 0 : index
    %c0_339 = arith.constant 0 : index
    %311 = vector.load %arg10[%c0_336, %c3_337, %c0_338, %c0_339] : memref<1x4x1x32xf32, #tpu.memory_space<vmem>>, vector<1x1x1x32xf32>
    %312 = vector.shape_cast %311 : vector<1x1x1x32xf32> to vector<1x32xf32>
    %313 = vector.broadcast %312 : vector<1x32xf32> to vector<16x32xf32>
    %314 = arith.addf %305, %313 : vector<16x32xf32>
    %cst_340 = arith.constant 0.000000e+00 : f32
    %315 = vector.broadcast %cst_340 : f32 to vector<16x32xf32>
    %316 = arith.subf %315, %314 : vector<16x32xf32>
    %317 = math.exp %316 : vector<16x32xf32>
    %cst_341 = arith.constant 1.000000e+00 : f32
    %318 = vector.broadcast %cst_341 : f32 to vector<16x32xf32>
    %319 = arith.addf %318, %317 : vector<16x32xf32>
    %320 = tpu.reciprocal %319 {approx = true} : vector<16x32xf32> -> vector<16x32xf32>
    %321 = arith.mulf %310, %320 : vector<16x32xf32>
    %322 = arith.truncf %321 : vector<16x32xf32> to vector<16x32xbf16>
    %c0_342 = arith.constant 0 : index
    %c3_343 = arith.constant 3 : index
    %c0_344 = arith.constant 0 : index
    %c0_345 = arith.constant 0 : index
    %323 = vector.load %arg13[%c0_342, %c3_343, %c0_344, %c0_345] : memref<1x4x32x32xbf16, #tpu.memory_space<vmem>>, vector<1x1x32x32xbf16>
    %324 = vector.shape_cast %323 : vector<1x1x32x32xbf16> to vector<32x32xbf16>
    %cst_346 = arith.constant dense<0.000000e+00> : vector<16x32xf32>
    %325 = tpu.matmul %322, %324, %cst_346 {dimension_numbers = #tpu.dot_dimension_numbers<[1], [0], [0], [1], [0, 0, 1, 1], [], []>} : vector<16x32xbf16>, vector<32x32xbf16>, vector<16x32xf32> -> vector<16x32xf32>
    %c0_347 = arith.constant 0 : index
    %c3_348 = arith.constant 3 : index
    %c0_349 = arith.constant 0 : index
    %c0_350 = arith.constant 0 : index
    %326 = vector.load %arg14[%c0_347, %c3_348, %c0_349, %c0_350] : memref<1x4x1x32xf32, #tpu.memory_space<vmem>>, vector<1x1x1x32xf32>
    %327 = vector.shape_cast %326 : vector<1x1x1x32xf32> to vector<1x32xf32>
    %328 = vector.broadcast %327 : vector<1x32xf32> to vector<16x32xf32>
    %329 = arith.addf %325, %328 : vector<16x32xf32>
    %330 = arith.addf %251, %329 : vector<16x32xf32>
    %331 = arith.mulf %330, %6 : vector<16x32xf32>
    %332 = arith.truncf %331 : vector<16x32xf32> to vector<16x32xbf16>
    %c0_351 = arith.constant 0 : index
    %c0_352 = arith.constant 0 : index
    %c0_353 = arith.constant 0 : index
    %333 = vector.load %arg15[%c0_351, %c0_352, %c0_353] : memref<1x32x128xbf16, #tpu.memory_space<vmem>>, vector<1x32x128xbf16>
    %334 = vector.shape_cast %333 : vector<1x32x128xbf16> to vector<32x128xbf16>
    %cst_354 = arith.constant dense<0.000000e+00> : vector<16x128xf32>
    %335 = tpu.matmul %332, %334, %cst_354 {dimension_numbers = #tpu.dot_dimension_numbers<[1], [0], [0], [1], [0, 0, 1, 1], [], []>} : vector<16x32xbf16>, vector<32x128xbf16>, vector<16x128xf32> -> vector<16x128xf32>
    %c0_355 = arith.constant 0 : index
    %c0_356 = arith.constant 0 : index
    %c0_357 = arith.constant 0 : index
    %336 = vector.load %arg16[%c0_355, %c0_356, %c0_357] : memref<1x1x128xf32, #tpu.memory_space<vmem>>, vector<1x1x128xf32>
    %337 = vector.shape_cast %336 : vector<1x1x128xf32> to vector<1x128xf32>
    %338 = vector.broadcast %337 : vector<1x128xf32> to vector<16x128xf32>
    %339 = arith.addf %335, %338 : vector<16x128xf32>
    %340 = arith.mulf %339, %8 : vector<16x128xf32>
    %341 = arith.mulf %12, %8 : vector<16x128xf32>
    %342 = arith.addf %340, %341 : vector<16x128xf32>
    %c0_358 = arith.constant 0 : index
    %c0_359 = arith.constant 0 : index
    %c0_360 = arith.constant 0 : index
    %343 = vector.load %arg17[%c0_358, %c0_359, %c0_360] : memref<1x16x128xf32, #tpu.memory_space<vmem>>, vector<1x16x128xf32>
    %344 = vector.shape_cast %343 : vector<1x16x128xf32> to vector<16x128xf32>
    %345 = vector.shape_cast %342 : vector<16x128xf32> to vector<1x16x128xf32>
    tpu.vector_store %arg17[%c0_358, %c0_359, %c0_360], %345 {strides = array<i32>} : memref<1x16x128xf32, #tpu.memory_space<vmem>>, vector<1x16x128xf32>,
    %c0_361 = arith.constant 0 : index
    %c0_362 = arith.constant 0 : index
    %c0_363 = arith.constant 0 : index
    %346 = vector.load %arg18[%c0_361, %c0_362, %c0_363] : memref<1x16x128xf32, #tpu.memory_space<vmem>>, vector<1x16x128xf32>
    %347 = vector.shape_cast %346 : vector<1x16x128xf32> to vector<16x128xf32>
    %348 = vector.shape_cast %10 : vector<16x128xf32> to vector<1x16x128xf32>
    tpu.vector_store %arg18[%c0_361, %c0_362, %c0_363], %348 {strides = array<i32>} : memref<1x16x128xf32, #tpu.memory_space<vmem>>, vector<1x16x128xf32>,
    return
  }
  func.func @transform_0(%arg0: i32, %arg1: i32) -> (i32, i32, i32) {
    %c0_i32 = arith.constant 0 : i32
    %c0_i32_0 = arith.constant 0 : i32
    %c0_i32_1 = arith.constant 0 : i32
    return %arg0, %c0_i32, %c0_i32_0 : i32, i32, i32
  }
  func.func @transform_1(%arg0: i32, %arg1: i32) -> (i32, i32, i32) {
    %c0_i32 = arith.constant 0 : i32
    %c0_i32_0 = arith.constant 0 : i32
    %c0_i32_1 = arith.constant 0 : i32
    return %arg0, %c0_i32, %c0_i32_0 : i32, i32, i32
  }
  func.func @transform_2(%arg0: i32, %arg1: i32) -> (i32, i32, i32) {
    %c0_i32 = arith.constant 0 : i32
    %c0_i32_0 = arith.constant 0 : i32
    %c0_i32_1 = arith.constant 0 : i32
    return %arg0, %c0_i32, %c0_i32_0 : i32, i32, i32
  }
  func.func @transform_3(%arg0: i32, %arg1: i32) -> (i32, i32, i32) {
    %c0_i32 = arith.constant 0 : i32
    %c0_i32_0 = arith.constant 0 : i32
    %c0_i32_1 = arith.constant 0 : i32
    return %arg1, %c0_i32, %c0_i32_0 : i32, i32, i32
  }
  func.func @transform_4(%arg0: i32, %arg1: i32) -> (i32, i32, i32) {
    %c0_i32 = arith.constant 0 : i32
    %c0_i32_0 = arith.constant 0 : i32
    %c0_i32_1 = arith.constant 0 : i32
    return %arg1, %c0_i32, %c0_i32_0 : i32, i32, i32
  }
  func.func @transform_5(%arg0: i32, %arg1: i32) -> (i32, i32, i32, i32) {
    %c0_i32 = arith.constant 0 : i32
    %c0_i32_0 = arith.constant 0 : i32
    %c0_i32_1 = arith.constant 0 : i32
    %c0_i32_2 = arith.constant 0 : i32
    return %arg1, %c0_i32, %c0_i32_0, %c0_i32_1 : i32, i32, i32, i32
  }
  func.func @transform_6(%arg0: i32, %arg1: i32) -> (i32, i32, i32, i32) {
    %c0_i32 = arith.constant 0 : i32
    %c0_i32_0 = arith.constant 0 : i32
    %c0_i32_1 = arith.constant 0 : i32
    %c0_i32_2 = arith.constant 0 : i32
    return %arg1, %c0_i32, %c0_i32_0, %c0_i32_1 : i32, i32, i32, i32
  }
  func.func @transform_7(%arg0: i32, %arg1: i32) -> (i32, i32, i32, i32) {
    %c0_i32 = arith.constant 0 : i32
    %c0_i32_0 = arith.constant 0 : i32
    %c0_i32_1 = arith.constant 0 : i32
    %c0_i32_2 = arith.constant 0 : i32
    return %arg1, %c0_i32, %c0_i32_0, %c0_i32_1 : i32, i32, i32, i32
  }
  func.func @transform_8(%arg0: i32, %arg1: i32) -> (i32, i32, i32, i32) {
    %c0_i32 = arith.constant 0 : i32
    %c0_i32_0 = arith.constant 0 : i32
    %c0_i32_1 = arith.constant 0 : i32
    %c0_i32_2 = arith.constant 0 : i32
    return %arg1, %c0_i32, %c0_i32_0, %c0_i32_1 : i32, i32, i32, i32
  }
  func.func @transform_9(%arg0: i32, %arg1: i32) -> (i32, i32, i32, i32) {
    %c0_i32 = arith.constant 0 : i32
    %c0_i32_0 = arith.constant 0 : i32
    %c0_i32_1 = arith.constant 0 : i32
    %c0_i32_2 = arith.constant 0 : i32
    return %arg1, %c0_i32, %c0_i32_0, %c0_i32_1 : i32, i32, i32, i32
  }
  func.func @transform_10(%arg0: i32, %arg1: i32) -> (i32, i32, i32, i32) {
    %c0_i32 = arith.constant 0 : i32
    %c0_i32_0 = arith.constant 0 : i32
    %c0_i32_1 = arith.constant 0 : i32
    %c0_i32_2 = arith.constant 0 : i32
    return %arg1, %c0_i32, %c0_i32_0, %c0_i32_1 : i32, i32, i32, i32
  }
  func.func @transform_11(%arg0: i32, %arg1: i32) -> (i32, i32, i32, i32) {
    %c0_i32 = arith.constant 0 : i32
    %c0_i32_0 = arith.constant 0 : i32
    %c0_i32_1 = arith.constant 0 : i32
    %c0_i32_2 = arith.constant 0 : i32
    return %arg1, %c0_i32, %c0_i32_0, %c0_i32_1 : i32, i32, i32, i32
  }
  func.func @transform_12(%arg0: i32, %arg1: i32) -> (i32, i32, i32, i32) {
    %c0_i32 = arith.constant 0 : i32
    %c0_i32_0 = arith.constant 0 : i32
    %c0_i32_1 = arith.constant 0 : i32
    %c0_i32_2 = arith.constant 0 : i32
    return %arg1, %c0_i32, %c0_i32_0, %c0_i32_1 : i32, i32, i32, i32
  }
  func.func @transform_13(%arg0: i32, %arg1: i32) -> (i32, i32, i32) {
    %c0_i32 = arith.constant 0 : i32
    %c0_i32_0 = arith.constant 0 : i32
    %c0_i32_1 = arith.constant 0 : i32
    return %arg1, %c0_i32, %c0_i32_0 : i32, i32, i32
  }
  func.func @transform_14(%arg0: i32, %arg1: i32) -> (i32, i32, i32) {
    %c0_i32 = arith.constant 0 : i32
    %c0_i32_0 = arith.constant 0 : i32
    %c0_i32_1 = arith.constant 0 : i32
    return %arg1, %c0_i32, %c0_i32_0 : i32, i32, i32
  }
  func.func @transform_15(%arg0: i32, %arg1: i32) -> (i32, i32, i32) {
    %c0_i32 = arith.constant 0 : i32
    %c0_i32_0 = arith.constant 0 : i32
    %c0_i32_1 = arith.constant 0 : i32
    return %arg0, %c0_i32, %c0_i32_0 : i32, i32, i32
  }
  func.func @transform_16(%arg0: i32, %arg1: i32) -> (i32, i32, i32) {
    %c0_i32 = arith.constant 0 : i32
    %c0_i32_0 = arith.constant 0 : i32
    %c0_i32_1 = arith.constant 0 : i32
    return %arg0, %c0_i32, %c0_i32_0 : i32, i32, i32
  }
}

</mosaic_0001>

<bundles_post_ra>
// kernel: _lambda_.1
= control target key start
LH: loop header
LB: loop body
LE: loop exit
PB: predicated region body
PF: predicated region fallthrough
CT: control target
= control target key end

     0   :  { %s6867_s0 = inlined_call_operand.vmem [shape: f32[2,16,128], index: 0, kind: input, shape index: {}]   ;;  %s6868_s1 = inlined_call_operand.vmem [shape: f32[2,16,128], index: 1, kind: input, shape index: {}]   ;;  %s6869_s2 = inlined_call_operand.vmem [shape: f32[2,16,1], index: 2, kind: input, shape index: {}]   ;;  %s6870_s3 = inlined_call_operand.vmem [shape: bf16[4,128,32], index: 3, kind: input, shape index: {}]   ;;  %s6871_s4 = inlined_call_operand.vmem [shape: f32[4,1,32], index: 4, kind: input, shape index: {}]   ;;  %s6872_s5 = inlined_call_operand.hbm [shape: bf16[4,20,32,32], index: 5, kind: input, shape index: {}]   ;;  %s6873_s6 = inlined_call_operand.vmem [shape: f32[4,4,1,32], index: 6, kind: input, shape index: {}]   ;;  %s6874_s7 = inlined_call_operand.hbm [shape: bf16[4,20,32,32], index: 7, kind: input, shape index: {}]   ;;  %s6875_s8 = inlined_call_operand.vmem [shape: f32[4,4,1,32], index: 8, kind: input, shape index: {}]   ;;  %s6876_s9 = inlined_call_operand.vmem [shape: bf16[4,4,32,32], index: 9, kind: input, shape index: {}]   ;;  %s6877_s10 = inlined_call_operand.vmem [shape: f32[4,4,1,32], index: 10, kind: input, shape index: {}]   ;;  %s6878_s11 = inlined_call_operand.vmem [shape: bf16[4,4,32,32], index: 11, kind: input, shape index: {}]   ;;  %s6879_s12 = inlined_call_operand.vmem [shape: f32[4,4,1,32], index: 12, kind: input, shape index: {}]   ;;  %s6880_s13 = inlined_call_operand.vmem [shape: bf16[4,32,128], index: 13, kind: input, shape index: {}]   ;;  %s6881_s14 = inlined_call_operand.vmem [shape: f32[4,1,128], index: 14, kind: input, shape index: {}]   ;;  %s6882_s15 = inlined_call_operand.vmem [shape: f32[2,16,128], index: 15, kind: output, shape index: {0}]   ;;  %s6883_s16 = inlined_call_operand.vmem [shape: f32[2,16,128], index: 16, kind: output, shape index: {1}]  }
   0x1   :  { %6897 = sst [smem:[#allocation21_spill]] %s6867_s0 }
   0x2   :  { %6898 = sst [smem:[#allocation22_spill]] %s6868_s1 }
   0x3   :  { %6899 = sst [smem:[#allocation23_spill]] %s6869_s2 }
   0x4   :  { %6900 = sst [smem:[#allocation24_spill]] %s6870_s3 }
   0x5   :  { %6901 = sst [smem:[#allocation25_spill]] %s6872_s5 }
   0x6   :  { %6902 = sst [smem:[#allocation26_spill]] %s6873_s6 }
   0x7   :  { %6903 = sst [smem:[#allocation27_spill]] %s6874_s7 }
   0x8   :  { %6904 = sst [smem:[#allocation28_spill]] %s6875_s8 }
   0x9   :  { %6905 = sst [smem:[#allocation29_spill]] %s6876_s9 }
   0xa   :  { %6906 = sst [smem:[#allocation30_spill]] %s6877_s10 }
   0xb   :  { %6907 = sst [smem:[#allocation31_spill]] %s6878_s11 }
   0xc   :  { %6908 = sst [smem:[#allocation32_spill]] %s6879_s12 }
   0xd   :  { %6909 = sst [smem:[#allocation33_spill]] %s6880_s13 }
   0xe   :  { %6910 = sst [smem:[#allocation34_spill]] %s6881_s14 }
   0xf   :  { %6911 = sst [smem:[#allocation35_spill]] %s6882_s15 }
  0x10   :  { %6912 = sst [smem:[#allocation36_spill]] %s6883_s16 }
  0x11   :  { %22 = vsyncpa [#allocation4], 0 }
  0x12   :  { %24 = vsyncpa [#allocation4 + $0x1], 0 }
  0x13   :  { %25 = vsyncpa [#allocation6], 0 }
  0x14   :  { %27 = vsyncpa [#allocation6 + $0x1], 0  ;;  %s6096_s21 = smov 0   ;;  %s6098_s22 = smov 0  }
  0x15   :  { %s6100_s23 = smov 0   ;;  %s6102_s24 = smov 0  }
  0x16   :  { %s6104_s25 = smov 0   ;;  %s6106_s26 = smov 0  }
  0x17   :  { %s6108_s27 = smov 0   ;;  %s6110_s28 = smov 0  }
  0x18 LB: > { %6913 = sst [smem:[#allocation9_spill]] %s5978_s22  ;;  %s4663_s29 = sadd.s32 4294967295, %s6002_s28   ;;  %s6002_s28 = sphi %s6110_s28, %s33_s28   ;;  %s5998_s27 = sphi %s6108_s27, %s6960_s27   ;;  %s5994_s26 = sphi %s6106_s26, %s6959_s26   ;;  %s5990_s25 = sphi %s6104_s25, %s6958_s25   ;;  %s5986_s24 = sphi %s6102_s24, %s6957_s24   ;;  %s5982_s23 = sphi %s6100_s23, %s6956_s23   ;;  %s5978_s22 = sphi %s6098_s22, %s6955_s22   ;;  %s5974_s21 = sphi %s6096_s21, %s6954_s21  }
  0x19   : > { %6914 = sst [smem:[#allocation10_spill]] %s5982_s23  ;;  %s42_s30 = sadd.s32 1, %s5994_s26 }
  0x1a   : > { %6915 = sst [smem:[#allocation11_spill]] %s5994_s26  ;;  %p43_p0 = scmp.ge.s32.totalorder %s42_s30, 4 }
  0x1b   : > { %6916 = sst [smem:[#allocation12_spill]] %s5998_s27  ;;  %s45_s0 = sadd.s32 1, %s5998_s27 }
  0x1c   : > { %6917 = sst [smem:[#allocation13_spill]] %s6002_s28  ;;  %s182_s17 = sadd.s32 1, %s5982_s23 }
  0x1d   : > { %p189_p1 = scmp.ne.s32.totalorder %s5982_s23, %s5978_s22  ;;  %s6962_s30 = smov (%p43_p0, %s42_s30), 0 }
  0x1e   : > { %6918 = sst [smem:[#allocation14_spill]] %s6962_s30  ;;  %s6964_s0 = smov (!%p43_p0, %s45_s0), %s5998_s27 }
  0x1f   : > { %s179_s18 = ssub.s32 %s5994_s26, %s6962_s30  ;;  %p190_p2 = scmp.eq.s32.totalorder %s6002_s28, 0 }
  0x20   : > { %p47_p3 = scmp.ge.s32.totalorder %s6964_s0, 2  ;;  %p180_p4 = scmp.eq.s32.totalorder %s179_s18, 0 }
  0x21   : > { %p191_p5 = por %p190_p2, %p189_p1  ;;  %p195_p6 = scmp.ne.s32.totalorder %s5978_s22, %s5974_s21 }
  0x22   : > { %s6966_s0 = smov (%p47_p3, %s6964_s0), 0  ;;  %p196_p7 = scmp.eq.s32.totalorder %s4663_s29, 0 }
  0x23   : > { %6919 = sst [smem:[#allocation15_spill]] %s6966_s0  ;;  %p5649_p8 = scmp.lt.s32.totalorder %s6002_s28, 8 }
  0x24   : > { %s6150_s19 = scalar_select %p180_p4, %s5982_s23, %s182_s17  }
  0x25   : > { %s6154_s20 = sand.u32 1, %s5982_s23   ;;  %p6156_p9 = por %p196_p7, %p195_p6 }
  0x26   : > { %6920 = sst [smem:[#allocation16_spill]] %s6150_s19  ;;  %s5633_s30 = smul.u32 320, %s6154_s20 }
  0x27   : > { %s6921_s27 = scalar_select %p6156_p9, 1, 0 }
  0x28   : > { %p6161_p10 = pnand %p5649_p8, %p191_p5  ;;  %s6887_s21 = smul.u32 5120, %s5994_s26 }
  0x29   : > { %s6923_s5 = sld [smem:[#allocation25_spill]]  ;;  %s547_s19 = scalar_lea.vmem [#allocation3], %s5633_s30 }
  0x2a   : > { %s554_s23 = sshll.u32 %s547_s19, 4  ;;  %s544_s16 = scalar_lea.sflag [#allocation4], %s6154_s20  ;;  %s6175_s23 = int_to_ptr.vmem [resolvable:$true] %s554_s23 }
  0x2b   : > { %p5874_p12 = pneg %p6161_p10 }
  0x2f   : > { %s6171_s0 = scalar_lea.hbm %s6923_s5, %s6887_s21  ;;  %s5877_s21 = scalar_lea.hbm %s6923_s5, 20480 }
  0x30   : > { %s5872_s15 = scalar_lea.hbm %s6171_s0, 5120  ;;  %p5878_p1 = scmp.lt.u32.totalorder %s6171_s0, %s6923_s5 }
  0x31   : > { %p5873_p11 = scmp.ne.s32.totalorder %s6171_s0, %s5872_s15  ;;  %p5879_p2 = scmp.lt.u32.totalorder %s5877_s21, %s5872_s15 }
  0x32   : > { %p5881_p4 = scmp.lt.u32.totalorder %s5872_s15, %s6171_s0 }
  0x33   : > { %p5875_p13 = pnand %p5874_p12, %p5873_p11  ;;  %p5880_p3 = por %p5879_p2, %p5878_p1 }
  0x35   : > { %p5876_p0 = pneg %p5875_p13  ;;  %p5882_p5 = por %p5881_p4, %p5880_p3 }
  0x37   : > { %p5883_p6 = pnand %p5882_p5, %p5876_p0 }
  0x39   : > { %5886 = shalt.err (!%p5883_p6)
}
  0x3a   : > { %s5887_s19 = scalar_lea.vmem %s6175_s23, 5120  ;;  %s6004_s29 = smov [#allocation3]  }
  0x3b   : > { %p5888_p7 = scmp.ne.s32.totalorder %s6175_s23, %s5887_s19  ;;  %s5892_s17 = sshll.u32 %s6004_s29, 4  ;;  %s5893_s17 = int_to_ptr.vmem [resolvable:$false] %s5892_s17 }
  0x3c   : > { %s5894_s13 = scalar_lea.vmem %s5893_s17, 10240  ;;  %p5895_p13 = scmp.lt.s32.totalorder %s6175_s23, %s5893_s17 }
  0x3d   : > { %p5890_p8 = pnand %p5888_p7, %p5874_p12  ;;  %p5896_p1 = scmp.lt.s32.totalorder %s5894_s13, %s5887_s19 }
  0x3f   : > { %p5891_p11 = pneg %p5890_p8  ;;  %p5897_p2 = por %p5896_p1, %p5895_p13 }
  0x41   : > { %p5898_p3 = pnand %p5897_p2, %p5891_p11 }
  0x43   : > { %5901 = shalt.err (!%p5898_p3)
}
  0x44   : > { %s6888_s14 = smov 64   ;;  %s6006_s15 = smov 4  }
  0x45   : > { %5645 = dma.hbm_to_vmem [thread:$0]  (!%p6161_p10), %s6171_s0, 5120, %s6175_s23, %s544_s16, %s6888_s14, %s6888_s14, %s6006_s15  }
  0x46   : > { %p4669_p0 = scmp.ge.s32.totalorder %s6002_s28, 1  ;;  %p641_p4 = scmp.lt.s32.totalorder %s6002_s28, 9 }
  0x47   : > { %s6925_s19 = smul.u32 5120, %s5994_s26  ;;  %s6926_s7 = sld [smem:[#allocation27_spill]] }
  0x48   : > { %p6210_p5 = pnand %p4669_p0, %p641_p4  ;;  %s575_s5 = scalar_lea.vmem [#allocation5], %s5633_s30 }
  0x49   : > { %s582_s12 = sshll.u32 %s575_s5, 4  ;;  %s572_s16 = scalar_lea.sflag [#allocation6], %s6154_s20  ;;  %s6223_s12 = int_to_ptr.vmem [resolvable:$true] %s582_s12 }
  0x4d   : > { %s6219_s13 = scalar_lea.hbm %s6926_s7, %s6925_s19  ;;  %s5907_s19 = scalar_lea.hbm %s6926_s7, 20480 }
  0x4e   : > { %s5902_s23 = scalar_lea.hbm %s6219_s13, 5120  ;;  %p5908_p11 = scmp.lt.u32.totalorder %s6219_s13, %s6926_s7 }
  0x4f   : > { %p5903_p6 = scmp.ne.s32.totalorder %s6219_s13, %s5902_s23  ;;  %p5909_p13 = scmp.lt.u32.totalorder %s5907_s19, %s5902_s23 }
  0x50   : > { %p5911_p2 = scmp.lt.u32.totalorder %s5902_s23, %s6219_s13 }
  0x51   : > { %p5905_p7 = pnand %p5903_p6, %p5874_p12  ;;  %p5910_p1 = por %p5909_p13, %p5908_p11 }
  0x53   : > { %p5906_p8 = pneg %p5905_p7  ;;  %p5912_p3 = por %p5911_p2, %p5910_p1 }
  0x55   : > { %p5913_p0 = pnand %p5912_p3, %p5906_p8 }
  0x57   : > { %5916 = shalt.err (!%p5913_p0)
}
  0x58   : > { %s5917_s5 = scalar_lea.vmem %s6223_s12, 5120  ;;  %s6007_s30 = smov [#allocation5]  }
  0x59   : > { %p5918_p4 = scmp.ne.s32.totalorder %s6223_s12, %s5917_s5  ;;  %s5922_s0 = sshll.u32 %s6007_s30, 4  ;;  %s5923_s0 = int_to_ptr.vmem [resolvable:$false] %s5922_s0 }
  0x5a   : > { %s5924_s14 = scalar_lea.vmem %s5923_s0, 10240  ;;  %p5925_p9 = scmp.lt.s32.totalorder %s6223_s12, %s5923_s0 }
  0x5b   : > { %p5920_p6 = pnand %p5918_p4, %p5874_p12  ;;  %p5926_p11 = scmp.lt.s32.totalorder %s5924_s14, %s5917_s5 }
  0x5d   : > { %p5921_p7 = pneg %p5920_p6  ;;  %p5927_p13 = por %p5926_p11, %p5925_p9 }
  0x5f   : > { %p5928_p1 = pnand %p5927_p13, %p5921_p7 }
  0x61   : > { %5931 = shalt.err (!%p5928_p1)
}
  0x62   : > { %s6927_s23 = smov 64   ;;  %645 = sbr.rel (%p6210_p5) target bundleno = 2705 (0xa91), region = 80 }
  0x63   : > { %5648 = dma.hbm_to_vmem [thread:$0]  (!%p6161_p10), %s6219_s13, 5120, %s6223_s12, %s572_s16, %s6927_s23, %s6927_s23, %s6006_s15  }
  0x69   : > { %s647_s29 = sand.u32 1, %s5978_s22   ;;  %p6928_p9 = scmp.ne.s32.totalorder %s6921_s27, 0 }
  0x6a   : > { %s5637_s19 = smul.u32 320, %s647_s29  ;;  %s648_s17 = scalar_lea.sflag [#allocation4], %s647_s29 }
  0x6c   : > { %s6257_s5 = scalar_lea.vmem [#allocation3], %s5637_s19 }
  0x6d   : > { %5965 = dma.done.wait (%p6928_p9), %s648_s17, 5120  }
  0x6e   : > { %5967 = vsyncadd (%p6928_p9), %s648_s17, 4294962176  ;;  %s657_s20 = scalar_lea.sflag [#allocation6], %s647_s29  ;;  %s6263_s18 = scalar_lea.vmem [#allocation5], %s5637_s19 }
  0x6f   : > { %5969 = dma.done.wait (%p6928_p9), %s657_s20, 5120  }
  0x70   : > { %5971 = vsyncadd (%p6928_p9), %s657_s20, 4294962176  ;;  %p776_p10 = scmp.lt.s32.totalorder %s5990_s25, 1  ;;  %p791_p12 = scmp.lt.s32.totalorder %s5986_s24, 3 }
  0x71   : > { %s6929_s16 = sld [smem:[#allocation21_spill]]  ;;  %s6930_s1 = sld [smem:[#allocation22_spill]] }
  0x72   : > { %s6968_s25 = smov (!%p776_p10, %s5990_s25), 1  ;;  %s6931_s2 = sld [smem:[#allocation23_spill]] }
  0x73   : > { %s6273_s12 = scalar_select %p791_p12, %s5986_s24, 3 }
  0x74   : > { %s5047_s15 = sshll.u32 %s6968_s25, 4  ;;  %s6932_s3 = sld [smem:[#allocation24_spill]] }
  0x75   : > { %s5050_s17 = sshll.u32 %s6273_s12, 6  ;;  %s4678_s13 = sshll.u32 %s6273_s12, 2 }
  0x76   : > { %s6933_s9 = sld [smem:[#allocation29_spill]]  ;;  %s6935_s6 = sld [smem:[#allocation26_spill]] }
  0x77   : > { %s780_s27 = scalar_lea.vmem %s6929_s16, %s5047_s15  ;;  %s785_s14 = scalar_lea.vmem %s6930_s1, %s5047_s15 }
  0x78   : > { %s6284_s19 = scalar_lea.vmem %s6931_s2, %s5047_s15  ;;  %s6937_s8 = sld [smem:[#allocation28_spill]] }
  0x79   : > { %s6939_s10 = sld [smem:[#allocation30_spill]]  ;;  %s6941_s11 = sld [smem:[#allocation31_spill]] }
  0x7a   : > { %s6290_s26 = scalar_lea.vmem %s6932_s3, %s5050_s17  ;;  %s6942_s0 = sld [smem:[#allocation32_spill]] }
  0x7b   : > { %s6943_s2 = sld [smem:[#allocation33_spill]]  ;;  %s6944_s20 = sld [smem:[#allocation34_spill]] }
  0x7c   : > { %s6300_s30 = scalar_lea.vmem %s6933_s9, %s5050_s17  ;;  %s6305_s29 = scalar_lea.vmem %s6935_s6, %s4678_s13 }
  0x7d   : > { %6934 = sst [smem:[#allocation17_spill]] %s6300_s30  ;;  %s5053_s6 = sshll.u32 %s6273_s12, 4 }
  0x7e   : > { %6936 = sst [smem:[#allocation18_spill]] %s6305_s29  ;;  %s6310_s7 = scalar_lea.vmem %s6937_s8, %s4678_s13 }
  0x7f   : > { %6938 = sst [smem:[#allocation19_spill]] %s6310_s7  ;;  %s6315_s22 = scalar_lea.vmem %s6939_s10, %s4678_s13 }
  0x80   : > { %6940 = sst [smem:[#allocation20_spill]] %s6315_s22  ;;  %s6320_s28 = scalar_lea.vmem %s6941_s11, %s5050_s17 }
  0x81   : > { %s6325_s23 = scalar_lea.vmem %s6942_s0, %s4678_s13  ;;  %s6331_s8 = scalar_lea.vmem %s6943_s2, %s5053_s6 }
  0x82   : > { %s832_s10 = scalar_lea.vmem %s6944_s20, %s6273_s12  ;;  %s6945_s21 = sld [smem:[#allocation35_spill]] }
  0x83   : > { %s6946_s9 = sld [smem:[#allocation36_spill]]  ;;  %p4692_p5 = scmp.ne.s32.totalorder %s5986_s24, 0 }
  0x84   : > { %v848_v0 = vld [vmem:[%s780_s27] sm:$0xff] (!%p4692_p5)  ;;  %v849_v1 = vld [vmem:[%s780_s27 + $0x8] sm:$0xff] (!%p4692_p5) }
  0x85   : > { %847 = sbr.rel (%p4692_p5) target bundleno = 140 (0x8c), region = 92  ;;  %v852_v2 = vld [vmem:[%s785_s14] sm:$0xff] (!%p4692_p5)  ;;  %v853_v3 = vld [vmem:[%s785_s14 + $0x8] sm:$0xff] (!%p4692_p5) }
  0x88   : > { %s6340_s17 = scalar_lea.vmem %s6945_s21, %s5047_s15 }
  0x89   : > { %s6345_s13 = scalar_lea.vmem %s6946_s9, %s5047_s15  ;;  %850 = vst [vmem:[%s6340_s17] sm:$0xff] (!%p4692_p5), %v848_v0  ;;  %851 = vst [vmem:[%s6340_s17 + $0x8] sm:$0xff] (!%p4692_p5), %v849_v1 }
  0x8a   : > { %854 = vst [vmem:[%s6345_s13] sm:$0xff] (!%p4692_p5), %v852_v2  ;;  %855 = vst [vmem:[%s6345_s13 + $0x8] sm:$0xff] (!%p4692_p5), %v853_v3 }
  0x8c PF: > { %v5720_v4 = vld [vmem:[%s6290_s26] sm:$0xff]   ;;  %v6008_v5 = vmov 0.0   ;;  %v5721_v6 = vld [vmem:[%s6290_s26 + $0x8] sm:$0xff]   ;;  %vm6009_vm0 = vmmov 0   ;;  %vm872_vm1 = vcmask 257024   ;;  %v6010_v7 = vmov 0   ;;  %s6947_s24 = scalar_lea.vmem %s6871_s4, %s6273_s12 }
  0x8d   : > { %5209 = vmatprep.subr.bf16.mxu0 %v6008_v5  ;;  %5229 = vmatprep.subr.bf16.mxu1 %v6008_v5  ;;  %vm874_vm2 = vcmask 261124   ;;  %873 = vst.msk [vmem:[#allocation2] sm:$0xf] %vm872_vm1, %v6010_v7  ;;  %v5722_v8 = vld [vmem:[%s6290_s26 + $0x10] sm:$0xff]   ;;  %v856_v9 = vld [vmem:[%s6284_s19] sm:$0xff]  ;;  %v5723_v10 = vld [vmem:[%s6290_s26 + $0x18] sm:$0xff]  }
  0x8e   : > { %5210 = vmatpush3.bf16.msra.mxu0 %v5720_v4  ;;  %5225 = vmatprep.mubr.msk.bf16.mxu0 %vm6009_vm0, %v6008_v5  ;;  %875 = vst.msk [vmem:[#allocation2 + $0x8] sm:$0xf0] %vm874_vm2, %v6010_v7  ;;  %v857_v11 = vld [vmem:[%s6284_s19 + $0x8] sm:$0xff]  ;;  %v5724_v12 = vld [vmem:[%s6290_s26 + $0x20] sm:$0xff]   ;;  %v5726_v14 = vld [vmem:[%s6290_s26 + $0x30] sm:$0xff]   ;;  %vm1043_vm3 = vcmask 261120  }
  0x8f   : > { %5211 = vmatprep.subr.bf16.mxu0 %v6008_v5  ;;  %5719 = vset.pattern.permute.xlu0 %v6010_v7  ;;  %v5725_v13 = vld [vmem:[%s6290_s26 + $0x28] sm:$0xff]   ;;  %v5727_v15 = vld [vmem:[%s6290_s26 + $0x38] sm:$0xff]   ;;  %v5728_v21 = vld [vmem:[%s6257_s5 + $0x20] sm:$0xff]   ;;  %vm1269_vm4 = vcmask 1043456   ;;  %vm1013_vm5 = vsmask.f32 4352 }
  0x90   : > { %5233 = vmatprep.mubr.msk.bf16.mxu1 %vm6009_vm0, %v6008_v5  ;;  %860 = vperm.xlu0 %5719, %v856_v9   ;;  %v868_v16 = vld [vmem:[%s6340_s17] sm:$0xff]  ;;  %v869_v17 = vld [vmem:[%s6340_s17 + $0x8] sm:$0xff]  ;;  %v5730_v23 = vld [vmem:[%s6257_s5 + $0x28] sm:$0xff]   ;;  %vm1397_vm6 = vsmask.f32 3328  ;;  %vm1090_vm7 = vcmask 1044480  }
  0x91   : > { %v876_v18 = vpack.c.bf16 %v869_v17, %v868_v16  ;;  %v6383_v19 = vld [vmem:[%s6345_s13] sm:$0xff]  ;;  %v6386_v20 = vld [vmem:[%s6345_s13 + $0x8] sm:$0xff]  ;;  %v5733_v0 = vld [vmem:[%s6257_s5] sm:$0xff]   ;;  %vm1541_vm8 = vcmask 1042432   ;;  %s6948_s26 = sld [smem:[#allocation17_spill]]  ;;  %s6949_s15 = sld [smem:[#allocation19_spill]] }
  0x92   : > { %5212 = vmatpush3.bf16.msra.mxu0 %v5721_v6  ;;  %4377 = vst [vmem:[%s6345_s13] sm:$0xff] %v868_v16  ;;  %4378 = vst [vmem:[%s6345_s13 + $0x8] sm:$0xff] %v869_v17  ;;  %v5729_v22 = vld [vmem:[%s6257_s5 + $0x10] sm:$0xff]   ;;  %v5731_v24 = vld [vmem:[%s6257_s5 + $0x18] sm:$0xff]   ;;  %s6950_s27 = sld [smem:[#allocation18_spill]]  ;;  %s6951_s14 = sld [smem:[#allocation20_spill]] }
  0x93   : > { %5213 = vmatprep.subr.bf16.mxu0 %v6008_v5  ;;  %5230 = vmatpush3.bf16.msra.mxu1 %v5729_v22  ;;  %v4693_v26 = vld [vmem:[%s6947_s24] ss:$0 sm:$0xff]  ;;  %v5734_v60 = vld [vmem:[%s6257_s5 + $0x38] sm:$0xff]   ;;  %v5736_v6 = vld [vmem:[%s6257_s5 + $0x40] sm:$0xff]  }
  0x94   : > { %865 = vperm.xlu0 %5719, %v857_v11   ;;  %5231 = vmatprep.subr.bf16.mxu1 %v6008_v5  ;;  %v5732_v38 = vld [vmem:[%s6257_s5 + $0x30] sm:$0xff]   ;;  %v5740_v22 = vld [vmem:[%s6263_s18] sm:$0xff]  }
  0x96   : > { %5214 = vmatpush3.bf16.msra.mxu0 %v5722_v8  ;;  %v5735_v8 = vld [vmem:[%s6257_s5 + $0x8] sm:$0xff]  }
  0x97   : > { %5215 = vmatprep.subr.bf16.mxu0 %v6008_v5  ;;  %5232 = vmatpush3.bf16.msra.mxu1 %v5731_v24  ;;  %v5742_v24 = vld [vmem:[%s6263_s18 + $0x20] sm:$0xff]  }
  0x98   : > { %5237 = vmatprep.subr.bf16.mxu1 %v6008_v5 }
  0x9a   : > { %5216 = vmatpush3.bf16.msra.mxu0 %v5723_v10 }
  0x9b   : > { %5217 = vmatprep.subr.bf16.mxu0 %v6008_v5 }
  0x9e   : > { %5218 = vmatpush3.bf16.msra.mxu0 %v5724_v12 }
  0x9f   : > { %5219 = vmatprep.subr.bf16.mxu0 %v6008_v5 }
  0xa2   : > { %5220 = vmatpush3.bf16.msra.mxu0 %v5725_v13  ;;  %v5738_v13 = vld [vmem:[%s6257_s5 + $0x48] sm:$0xff]  }
  0xa3   : > { %5221 = vmatprep.subr.bf16.mxu0 %v6008_v5 }
  0xa6   : > { %5222 = vmatpush3.bf16.msra.mxu0 %v5726_v14  ;;  %v5737_v14 = vld [vmem:[%s6263_s18 + $0x10] sm:$0xff]  }
  0xa7   : > { %5223 = vmatprep.subr.bf16.mxu0 %v6008_v5 }
  0xaa   : > { %5224 = vmatpush3.bf16.msra.mxu0 %v5727_v15 }
  0xab   : > { %5261 = vmatprep.subr.bf16.mxu0 %v6008_v5 }
  0xad   : > { %5226 = vmatmul.mubr.bf16.vlgmr.msra.gmra.mrb[0].mxu0 %v876_v18  ;;  %v5739_v18 = vld [vmem:[%s6263_s18 + $0x18] sm:$0xff]  }
  0xae   : > { %5265 = vmatprep.mubr.msk.bf16.mxu0 %vm6009_vm0, %v6008_v5  ;;  %5262 = vmatpush3.bf16.msra.mxu0 %v5728_v21 }
  0xaf   : > { %5263 = vmatprep.subr.bf16.mxu0 %v6008_v5 }
  0xb2   : > { %5264 = vmatpush3.bf16.msra.mxu0 %v5730_v23  ;;  %v5741_v23 = vld [vmem:[%s6263_s18 + $0x8] sm:$0xff]  }
  0xb3   : > { %5277 = vmatprep.subr.bf16.mxu0 %v6008_v5 }
 0x10f   : > { %v6398_v25 = vpop.permute.xlu0 %860 }
 0x113   : > { %v6405_v33 = vpop.permute.xlu0 %865 }
 0x180   : > { %v982_v27 = vpop.f32.mrb[0].mxu0 }
 0x181   : > { %v983_v28 = vadd.f32 %v4693_v26, %v982_v27  ;;  %v5227_v29 = vpop.f32.mrb[1].mxu0  ;;  %v5744_v27 = vld [vmem:[%s6263_s18 + $0x30] sm:$0xff]  }
 0x182   : > { %v985_v30 = vpop.f32.mrb[2].mxu0  ;;  %v5746_v29 = vld [vmem:[%s6263_s18 + $0x40] sm:$0xff]  }
 0x183   : > { %v986_v31 = vadd.f32 %v4693_v26, %v985_v30  ;;  %v5228_v32 = vpop.f32.mrb[3].mxu0  ;;  %v6408_v34 = vmul.f32 %v983_v28, %v6398_v25  ;;  %v5743_v26 = vld [vmem:[%s6263_s18 + $0x28] sm:$0xff]   ;;  %v5745_v28 = vld [vmem:[%s6263_s18 + $0x38] sm:$0xff]  }
 0x184   : > { %v5747_v30 = vld [vmem:[%s6263_s18 + $0x48] sm:$0xff]   ;;  %v5749_v32 = vld [vmem:[%s6320_s28] sm:$0xff]  }
 0x185   : > { %v6411_v35 = vmul.f32 %v986_v31, %v6405_v33  ;;  %v5748_v31 = vld [vmem:[%s6948_s26] sm:$0xff]  }
 0x187   : > { %v991_v36 = vpack.c.bf16 %v6411_v35, %v6408_v34 }
 0x189   : > { %v993_v37 = vrot.slane %v991_v36, 4  ;;  %v5750_v36 = vld [vmem:[%s6948_s26 + $0x8] sm:$0xff]  }
 0x18b   : > { %995 = vst.msk [vmem:[#allocation2] sm:$0xf0] %vm874_vm2, %v993_v37 }
 0x18c   : > { %996 = vst.msk [vmem:[#allocation2 + $0x8] sm:$0xf] %vm872_vm1, %v993_v37  ;;  %v5751_v37 = vld [vmem:[%s6320_s28 + $0x8] sm:$0xff]  }
 0x192   : > { %v1261_v40 = vld [vmem:[#allocation2] sm:$0xf0] }
 0x193   : > { %v1007_v39 = vld [vmem:[#allocation2 + $0x8] sm:$0xf]  ;;  %v997_v41 = vld [vmem:[#allocation2] sm:$0xf8]  ;;  %v1270_v42 = vrot.slane %v1261_v40, 4  ;;  %v1399_v49 = vshrl.u32 %v1261_v40, 16 }
 0x194   : > { %v1271_v43 = vrot.slane %v1007_v39, 4  ;;  %v1015_v44 = vshrl.u32 %v997_v41, 16  ;;  %v1018_v45 = vshll.u32 %v997_v41, 16  ;;  %v6418_v46 = vld [vmem:[#allocation2 + $0x8] sm:$0x1f]  ;;  %v1023_v47 = vshrl.u32 %v1007_v39, 16 }
 0x195   : > { %v1026_v48 = vshll.u32 %v1007_v39, 16  ;;  %v1402_v50 = vshll.u32 %v1261_v40, 16  ;;  %v1407_v54 = vshrl.u32 %v6418_v46, 16  ;;  %v1401_v57 = vrot.slane %v1399_v49, 4  ;;  %v998_v7 = vld [vmem:[#allocation2 + $0x8] sm:$0x7] }
 0x196   : > { %v6421_v51 = vsel %vm1269_vm4, %v1270_v42, %v1271_v43  ;;  %v1017_v52 = vrot.slane %v1015_v44, 3  ;;  %v1020_v53 = vrot.slane %v1018_v45, 4  ;;  %v1025_v55 = vrot.slane %v1023_v47, 3  ;;  %v1533_v12 = vld [vmem:[#allocation2] sm:$0xe0] }
 0x197   : > { %5266 = vmatmul.mubr.msk.bf16.vlgmr.msra.gmra.mrb[4].mxu0 %vm1043_vm3, %v6421_v51  ;;  %v1028_v56 = vrot.slane %v1026_v48, 4  ;;  %v1404_v58 = vrot.slane %v1402_v50, 5  ;;  %v1409_v61 = vrot.slane %v1407_v54, 4  ;;  %v1410_v62 = vshll.u32 %v6418_v46, 16 }
 0x198   : > { %5278 = vmatpush3.bf16.msra.mxu0 %v5732_v38  ;;  %v1021_v59 = vor.u32 %v1020_v53, %v1017_v52  ;;  %5281 = vmatprep.mubr.msk.bf16.mxu0 %vm6009_vm0, %v6008_v5  ;;  %v1091_v10 = vrot.slane %v997_v41, 3  ;;  %v1092_v11 = vrot.slane %v998_v7, 3  ;;  %v1542_v15 = vrot.slane %v1533_v12, 5 }
 0x199   : > { %v1029_v63 = vor.u32 %v1028_v56, %v1025_v55  ;;  %5279 = vmatprep.subr.bf16.mxu0 %v6008_v5  ;;  %v1405_v1 = vor.u32 %v1404_v58, %v1401_v57  ;;  %v1412_v2 = vrot.slane %v1410_v62, 5  ;;  %v1543_v16 = vrot.slane %v6418_v46, 5 }
 0x19a   : > { %v1093_v17 = vsel %vm1090_vm7, %v1091_v10, %v1092_v11 }
 0x19b   : > { %v1030_v3 = vsel %vm1013_vm5, %v1021_v59, %v1029_v63  ;;  %v1413_v4 = vor.u32 %v1412_v2, %v1409_v61  ;;  %v1544_v21 = vsel %vm1541_vm8, %v1542_v15, %v1543_v16 }
 0x19c   : > { %5234 = vmatmul.mubr.msk.bf16.vlgmr.msra.gmra.mrb[0].mxu1 %vm1043_vm3, %v1030_v3  ;;  %5280 = vmatpush3.bf16.msra.mxu0 %v5734_v60 }
 0x19d   : > { %5238 = vmatpush3.bf16.msra.mxu1 %v5733_v0  ;;  %5293 = vmatprep.subr.bf16.mxu0 %v6008_v5  ;;  %v1414_v9 = vsel %vm1397_vm6, %v1405_v1, %v1413_v4 }
 0x19e   : > { %5239 = vmatprep.subr.bf16.mxu1 %v6008_v5  ;;  %5241 = vmatprep.mubr.msk.bf16.mxu1 %vm6009_vm0, %v6008_v5 }
 0x19f   : > { %5282 = vmatmul.mubr.msk.bf16.vlgmr.msra.gmra.mrb[8].mxu0 %vm1043_vm3, %v1414_v9 }
 0x1a0   : > { %5294 = vmatpush3.bf16.msra.mxu0 %v5736_v6  ;;  %5297 = vmatprep.mubr.msk.bf16.mxu0 %vm6009_vm0, %v6008_v5 }
 0x1a1   : > { %5240 = vmatpush3.bf16.msra.mxu1 %v5735_v8  ;;  %5295 = vmatprep.subr.bf16.mxu0 %v6008_v5 }
 0x1a2   : > { %5245 = vmatprep.subr.bf16.mxu1 %v6008_v5 }
 0x1a4   : > { %5242 = vmatmul.mubr.msk.bf16.vlgmr.msra.gmra.mrb[4].mxu1 %vm1043_vm3, %v1093_v17  ;;  %5296 = vmatpush3.bf16.msra.mxu0 %v5738_v13 }
 0x1a5   : > { %5246 = vmatpush3.bf16.msra.mxu1 %v5737_v14  ;;  %5249 = vmatprep.mubr.msk.bf16.mxu1 %vm6009_vm0, %v6008_v5 }
 0x1a6   : > { %5247 = vmatprep.subr.bf16.mxu1 %v6008_v5  ;;  %5309 = vmatprep.subr.bf16.mxu0 %v6008_v5 }
 0x1a7   : > { %5298 = vmatmul.mubr.msk.bf16.vlgmr.msra.gmra.mrb[12].mxu0 %vm1043_vm3, %v1544_v21 }
 0x1a8   : > { %5313 = vmatprep.mubr.msk.bf16.mxu0 %vm6009_vm0, %v6008_v5  ;;  %5310 = vmatpush3.bf16.msra.mxu0 %v5749_v32 }
 0x1a9   : > { %5248 = vmatpush3.bf16.msra.mxu1 %v5739_v18  ;;  %5311 = vmatprep.subr.bf16.mxu0 %v6008_v5 }
 0x1aa   : > { %5253 = vmatprep.subr.bf16.mxu1 %v6008_v5 }
 0x1ac   : > { %5250 = vmatmul.mubr.msk.bf16.vlgmr.msra.gmra.mrb[8].mxu1 %vm1043_vm3, %v1030_v3  ;;  %5312 = vmatpush3.bf16.msra.mxu0 %v5751_v37 }
 0x1ad   : > { %5254 = vmatpush3.bf16.msra.mxu1 %v5740_v22  ;;  %5257 = vmatprep.mubr.msk.bf16.mxu1 %vm6009_vm0, %v6008_v5 }
 0x1ae   : > { %5255 = vmatprep.subr.bf16.mxu1 %v6008_v5  ;;  %5325 = vmatprep.subr.bf16.mxu0 %v6008_v5 }
 0x1b1   : > { %5256 = vmatpush3.bf16.msra.mxu1 %v5741_v23 }
 0x1b2   : > { %5269 = vmatprep.subr.bf16.mxu1 %v6008_v5 }
 0x1b4   : > { %5258 = vmatmul.mubr.msk.bf16.vlgmr.msra.gmra.mrb[12].mxu1 %vm1043_vm3, %v1093_v17 }
 0x1b5   : > { %5270 = vmatpush3.bf16.msra.mxu1 %v5742_v24  ;;  %5273 = vmatprep.mubr.msk.bf16.mxu1 %vm6009_vm0, %v6008_v5 }
 0x1b6   : > { %5271 = vmatprep.subr.bf16.mxu1 %v6008_v5 }
 0x1b9   : > { %5272 = vmatpush3.bf16.msra.mxu1 %v5743_v26 }
 0x1ba   : > { %5285 = vmatprep.subr.bf16.mxu1 %v6008_v5 }
 0x1bc   : > { %5274 = vmatmul.mubr.msk.bf16.vlgmr.msra.gmra.mrb[16].mxu1 %vm1043_vm3, %v6421_v51 }
 0x1bd   : > { %5286 = vmatpush3.bf16.msra.mxu1 %v5744_v27  ;;  %5289 = vmatprep.mubr.msk.bf16.mxu1 %vm6009_vm0, %v6008_v5 }
 0x1be   : > { %5287 = vmatprep.subr.bf16.mxu1 %v6008_v5 }
 0x1c1   : > { %5288 = vmatpush3.bf16.msra.mxu1 %v5745_v28 }
 0x1c2   : > { %5301 = vmatprep.subr.bf16.mxu1 %v6008_v5 }
 0x1c4   : > { %5290 = vmatmul.mubr.msk.bf16.vlgmr.msra.gmra.mrb[20].mxu1 %vm1043_vm3, %v1414_v9 }
 0x1c5   : > { %5302 = vmatpush3.bf16.msra.mxu1 %v5746_v29  ;;  %5305 = vmatprep.mubr.msk.bf16.mxu1 %vm6009_vm0, %v6008_v5  ;;  %v4765_v29 = vld [vmem:[%s6949_s15] ss:$0 sm:$0xff] }
 0x1c6   : > { %5303 = vmatprep.subr.bf16.mxu1 %v6008_v5 }
 0x1c9   : > { %5304 = vmatpush3.bf16.msra.mxu1 %v5747_v30 }
 0x1ca   : > { %5317 = vmatprep.subr.bf16.mxu1 %v6008_v5 }
 0x1cc   : > { %5306 = vmatmul.mubr.msk.bf16.vlgmr.msra.gmra.mrb[24].mxu1 %vm1043_vm3, %v1544_v21 }
 0x1cd   : > { %5321 = vmatprep.mubr.msk.bf16.mxu1 %vm6009_vm0, %v6008_v5  ;;  %5318 = vmatpush3.bf16.msra.mxu1 %v5748_v31 }
 0x1ce   : > { %5319 = vmatprep.subr.bf16.mxu1 %v6008_v5 }
 0x1d1   : > { %5320 = vmatpush3.bf16.msra.mxu1 %v5750_v36 }
 0x1d2   : > { %5333 = vmatprep.subr.bf16.mxu1 %v6008_v5 }
 0x26a   : > { %v1322_v38 = vpop.f32.mrb[4].mxu0 }
 0x26b   : > { %v5267_v39 = vpop.f32.mrb[5].mxu0 }
 0x26c   : > { %v1325_v40 = vpop.f32.mrb[6].mxu0 }
 0x26d   : > { %v5268_v41 = vpop.f32.mrb[7].mxu0 }
 0x26f   : > { %v1081_v42 = vpop.f32.mrb[0].mxu1 }
 0x270   : > { %v5235_v43 = vpop.f32.mrb[1].mxu1 }
 0x271   : > { %v1084_v44 = vpop.f32.mrb[2].mxu1 }
 0x272   : > { %v5236_v45 = vpop.f32.mrb[3].mxu1  ;;  %v1464_v46 = vpop.f32.mrb[8].mxu0 }
 0x273   : > { %v5283_v47 = vpop.f32.mrb[9].mxu0 }
 0x274   : > { %v1467_v48 = vpop.f32.mrb[10].mxu0 }
 0x275   : > { %v5284_v49 = vpop.f32.mrb[11].mxu0 }
 0x277   : > { %v1143_v50 = vpop.f32.mrb[4].mxu1 }
 0x278   : > { %v1144_v51 = vadd.f32 %v1143_v50, %v1081_v42  ;;  %v5243_v52 = vpop.f32.mrb[5].mxu1 }
 0x279   : > { %v1146_v53 = vpop.f32.mrb[6].mxu1 }
 0x27a   : > { %v1329_v54 = vadd.f32 %v1322_v38, %v1144_v51  ;;  %v1147_v55 = vadd.f32 %v1146_v53, %v1084_v44  ;;  %v5244_v56 = vpop.f32.mrb[7].mxu1  ;;  %v1594_v57 = vpop.f32.mrb[12].mxu0  ;;  %v4764_v44 = vld [vmem:[%s6950_s27] ss:$0 sm:$0xff] }
 0x27b   : > { %v5299_v58 = vpop.f32.mrb[13].mxu0 }
 0x27c   : > { %v1330_v59 = vadd.f32 %v1325_v40, %v1147_v55  ;;  %v1471_v60 = vadd.f32 %v1464_v46, %v1329_v54  ;;  %v1597_v61 = vpop.f32.mrb[14].mxu0  ;;  %v5752_v58 = vld [vmem:[%s6257_s5 + $0x50] sm:$0xff]  }
 0x27d   : > { %v5300_v62 = vpop.f32.mrb[15].mxu0 }
 0x27e   : > { %v1601_v63 = vadd.f32 %v1594_v57, %v1471_v60  ;;  %v1472_v0 = vadd.f32 %v1467_v48, %v1330_v59  ;;  %v5754_v59 = vld [vmem:[%s6257_s5 + $0x60] sm:$0xff]   ;;  %v5753_v60 = vld [vmem:[%s6257_s5 + $0x58] sm:$0xff]  }
 0x27f   : > { %v1201_v1 = vpop.f32.mrb[8].mxu1 }
 0x280   : > { %v1602_v2 = vadd.f32 %v1597_v61, %v1472_v0  ;;  %v5251_v3 = vpop.f32.mrb[9].mxu1  ;;  %v1670_v45 = vadd.f32 %v4764_v44, %v1601_v63  ;;  %v5756_v61 = vld [vmem:[%s6257_s5 + $0x68] sm:$0xff]   ;;  %v4773_v63 = vld [vmem:[%s6951_s14] ss:$0 sm:$0xff] }
 0x281   : > { %v1204_v4 = vpop.f32.mrb[10].mxu1 }
 0x282   : > { %v5252_v6 = vpop.f32.mrb[11].mxu1  ;;  %v1671_v47 = vadd.f32 %v4764_v44, %v1602_v2 }
 0x287   : > { %v1254_v7 = vpop.f32.mrb[12].mxu1 }
 0x288   : > { %v1255_v8 = vadd.f32 %v1254_v7, %v1201_v1  ;;  %v5259_v9 = vpop.f32.mrb[13].mxu1 }
 0x289   : > { %v1257_v10 = vpop.f32.mrb[14].mxu1 }
 0x28a   : > { %v1258_v11 = vadd.f32 %v1257_v10, %v1204_v4  ;;  %v5260_v12 = vpop.f32.mrb[15].mxu1 }
 0x28f   : > { %v1382_v13 = vpop.f32.mrb[16].mxu1 }
 0x290   : > { %v1389_v14 = vadd.f32 %v1382_v13, %v1255_v8  ;;  %v5275_v15 = vpop.f32.mrb[17].mxu1 }
 0x291   : > { %v1385_v16 = vpop.f32.mrb[18].mxu1  ;;  %v5755_v15 = vld [vmem:[%s6263_s18 + $0x50] sm:$0xff]  }
 0x292   : > { %v1390_v17 = vadd.f32 %v1385_v16, %v1258_v11  ;;  %v5276_v18 = vpop.f32.mrb[19].mxu1 }
 0x297   : > { %v1524_v21 = vpop.f32.mrb[20].mxu1 }
 0x298   : > { %v1531_v22 = vadd.f32 %v1524_v21, %v1389_v14  ;;  %v5291_v23 = vpop.f32.mrb[21].mxu1 }
 0x299   : > { %v1527_v24 = vpop.f32.mrb[22].mxu1 }
 0x29a   : > { %v1532_v26 = vadd.f32 %v1527_v24, %v1390_v17  ;;  %v5292_v27 = vpop.f32.mrb[23].mxu1 }
 0x29f   : > { %v1654_v28 = vpop.f32.mrb[24].mxu1 }
 0x2a0   : > { %v1661_v30 = vadd.f32 %v1654_v28, %v1531_v22  ;;  %v5307_v31 = vpop.f32.mrb[25].mxu1 }
 0x2a1   : > { %v1657_v32 = vpop.f32.mrb[26].mxu1  ;;  %v5758_v31 = vld [vmem:[%s6263_s18 + $0x60] sm:$0xff]  }
 0x2a2   : > { %v1681_v36 = vadd.f32 %v4765_v29, %v1661_v30  ;;  %v1662_v37 = vadd.f32 %v1657_v32, %v1532_v26  ;;  %v5308_v38 = vpop.f32.mrb[27].mxu1 }
 0x2a4   : > { %v1683_v39 = vsub.f32 0.0, %v1681_v36  ;;  %v1682_v40 = vadd.f32 %v4765_v29, %v1662_v37  ;;  %v5757_v29 = vld [vmem:[%s6263_s18 + $0x58] sm:$0xff]   ;;  %v5759_v36 = vld [vmem:[%s6263_s18 + $0x70] sm:$0xff]   ;;  %v5760_v37 = vld [vmem:[%s6263_s18 + $0x68] sm:$0xff]  }
 0x2a6   : > { %v1685_v41 = vmul.f32 1.442695, %v1683_v39  ;;  %v1684_v42 = vsub.f32 0.0, %v1682_v40  ;;  %v5761_v40 = vld [vmem:[%s6263_s18 + $0x78] sm:$0xff]  }
 0x2a8   : > { %5824 = vpow2.f32 %v1685_v41  ;;  %v1687_v43 = vmul.f32 1.442695, %v1684_v42  ;;  %v5762_v41 = vld [vmem:[%s6257_s5 + $0x70] sm:$0xff]  }
 0x2aa   : > { %5826 = vpow2.f32 %v1687_v43 }
 0x2ab   : > { %5828 = vtanh.f32 %v1670_v45 }
 0x2b2   : > { %v5825_v46 = vpop.eup %5824 }
 0x2b3   : > { %v1689_v48 = vadd.f32 1.0, %v5825_v46 }
 0x2b4   : > { %v5827_v49 = vpop.eup %5826 }
 0x2b5   : > { %5830 = vrcp.f32 %v1689_v48  ;;  %v1690_v50 = vadd.f32 1.0, %v5827_v49  ;;  %v5829_v51 = vpop.eup %5828  ;;  %v5763_v48 = vld [vmem:[%s6263_s18 + $0x80] sm:$0xff]  }
 0x2b6   : > { %5832 = vtanh.f32 %v1671_v47 }
 0x2b7   : > { %5834 = vrcp.f32 %v1690_v50  ;;  %v5764_v50 = vld [vmem:[%s6257_s5 + $0x78] sm:$0xff]  }
 0x2bf   : > { %v5831_v52 = vpop.eup %5830 }
 0x2c0   : > { %v5833_v53 = vpop.eup %5832  ;;  %v1693_v54 = vmul.f32 %v5831_v52, %v5829_v51 }
 0x2c1   : > { %v5835_v55 = vpop.eup %5834 }
 0x2c2   : > { %v1694_v56 = vmul.f32 %v5835_v55, %v5833_v53  ;;  %v5765_v55 = vld [vmem:[%s6263_s18 + $0x88] sm:$0xff]  }
 0x2c4   : > { %v1695_v57 = vpack.c.bf16 %v1694_v56, %v1693_v54  ;;  %v5766_v56 = vld [vmem:[%s6257_s5 + $0x80] sm:$0xff]  }
 0x2c6   : > { %5314 = vmatmul.mubr.msk.bf16.vlgmr.msra.gmra.mrb[16].mxu0 %vm1043_vm3, %v1695_v57  ;;  %5322 = vmatmul.mubr.msk.bf16.vlgmr.msra.gmra.mrb[28].mxu1 %vm1043_vm3, %v1695_v57 }
 0x2c7   : > { %5337 = vmatprep.mubr.msk.bf16.mxu1 %vm6009_vm0, %v6008_v5  ;;  %5329 = vmatprep.mubr.msk.bf16.mxu0 %vm6009_vm0, %v6008_v5 }
 0x2c8   : > { %5334 = vmatpush3.bf16.msra.mxu1 %v5752_v58  ;;  %5326 = vmatpush3.bf16.msra.mxu0 %v5754_v59  ;;  %v5767_v59 = vld [vmem:[%s6263_s18 + $0x90] sm:$0xff]  }
 0x2c9   : > { %5335 = vmatprep.subr.bf16.mxu1 %v6008_v5  ;;  %5327 = vmatprep.subr.bf16.mxu0 %v6008_v5 }
 0x2cc   : > { %5336 = vmatpush3.bf16.msra.mxu1 %v5753_v60  ;;  %5328 = vmatpush3.bf16.msra.mxu0 %v5756_v61  ;;  %v5768_v60 = vld [vmem:[%s6257_s5 + $0x88] sm:$0xff]  }
 0x2cd   : > { %5349 = vmatprep.subr.bf16.mxu1 %v6008_v5  ;;  %5341 = vmatprep.subr.bf16.mxu0 %v6008_v5 }
 0x399   : > { %v1813_v62 = vpop.f32.mrb[28].mxu1 }
 0x39a   : > { %v1820_v0 = vadd.f32 %v1813_v62, %v6408_v34  ;;  %v5323_v1 = vpop.f32.mrb[29].mxu1 }
 0x39b   : > { %v1816_v2 = vpop.f32.mrb[30].mxu1 }
 0x39c   : > { %v1829_v3 = vadd.f32 %v4773_v63, %v1820_v0  ;;  %v1821_v4 = vadd.f32 %v1816_v2, %v6411_v35  ;;  %v5324_v6 = vpop.f32.mrb[31].mxu1  ;;  %v5770_v0 = vld [vmem:[%s6257_s5 + $0x90] sm:$0xff]  }
 0x39d   : > { %v5772_v6 = vld [vmem:[%s6948_s26 + $0x10] sm:$0xff]  }
 0x39e   : > { %v1830_v7 = vadd.f32 %v4773_v63, %v1821_v4  ;;  %v6521_v8 = vmul.f32 %v1829_v3, %v6398_v25  ;;  %v5769_v63 = vld [vmem:[%s6263_s18 + $0x98] sm:$0xff]  }
 0x39f   : > { %v5771_v3 = vld [vmem:[%s6257_s5 + $0x98] sm:$0xff]  }
 0x3a0   : > { %v6524_v9 = vmul.f32 %v1830_v7, %v6405_v33  ;;  %v5773_v7 = vld [vmem:[%s6320_s28 + $0x10] sm:$0xff]  }
 0x3a2   : > { %v1833_v10 = vpack.c.bf16 %v6524_v9, %v6521_v8 }
 0x3a4   : > { %v1835_v11 = vrot.slane %v1833_v10, 4  ;;  %v5774_v10 = vld [vmem:[%s6948_s26 + $0x18] sm:$0xff]  }
 0x3a6   : > { %1837 = vst.msk [vmem:[#allocation2] sm:$0xf0] %vm874_vm2, %v1835_v11 }
 0x3a7   : > { %1838 = vst.msk [vmem:[#allocation2 + $0x8] sm:$0xf] %vm872_vm1, %v1835_v11  ;;  %v5775_v11 = vld [vmem:[%s6320_s28 + $0x18] sm:$0xff]  }
 0x3ad   : > { %v1839_v34 = vld [vmem:[#allocation2] sm:$0xf8] }
 0x3ae   : > { %v1840_v12 = vld [vmem:[#allocation2 + $0x8] sm:$0x7]  ;;  %v1932_v35 = vrot.slane %v1839_v34, 3  ;;  %v1858_v16 = vshrl.u32 %v1839_v34, 16  ;;  %v1861_v17 = vshll.u32 %v1839_v34, 16 }
 0x3af   : > { %v1851_v13 = vld [vmem:[#allocation2 + $0x8] sm:$0xf]  ;;  %v1933_v14 = vrot.slane %v1840_v12, 3  ;;  %v2102_v38 = vld [vmem:[#allocation2] sm:$0xf0] }
 0x3b0   : > { %v1866_v18 = vshrl.u32 %v1851_v13, 16  ;;  %v1869_v21 = vshll.u32 %v1851_v13, 16  ;;  %v1860_v23 = vrot.slane %v1858_v16, 3  ;;  %v1863_v24 = vrot.slane %v1861_v17, 4  ;;  %v6547_v39 = vld [vmem:[#allocation2 + $0x8] sm:$0x1f] }
 0x3b1   : > { %v1934_v22 = vsel %vm1090_vm7, %v1932_v35, %v1933_v14  ;;  %v2110_v42 = vrot.slane %v2102_v38, 4  ;;  %v2111_v43 = vrot.slane %v1851_v13, 4  ;;  %v2238_v44 = vshrl.u32 %v2102_v38, 16  ;;  %v2372_v62 = vld [vmem:[#allocation2] sm:$0xe0] }
 0x3b2   : > { %5338 = vmatmul.mubr.msk.bf16.vlgmr.msra.gmra.mrb[32].mxu1 %vm1043_vm3, %v1934_v22  ;;  %v1868_v26 = vrot.slane %v1866_v18, 3  ;;  %v1871_v27 = vrot.slane %v1869_v21, 4  ;;  %v1864_v28 = vor.u32 %v1863_v24, %v1860_v23  ;;  %v2241_v45 = vshll.u32 %v2102_v38, 16 }
 0x3b3   : > { %5350 = vmatpush3.bf16.msra.mxu1 %v5755_v15  ;;  %5353 = vmatprep.mubr.msk.bf16.mxu1 %vm6009_vm0, %v6008_v5  ;;  %v2246_v46 = vshrl.u32 %v6547_v39, 16  ;;  %v2249_v47 = vshll.u32 %v6547_v39, 16  ;;  %v2112_v49 = vsel %vm1269_vm4, %v2110_v42, %v2111_v43  ;;  %v2240_v51 = vrot.slane %v2238_v44, 4 }
 0x3b4   : > { %5351 = vmatprep.subr.bf16.mxu1 %v6008_v5  ;;  %v1872_v30 = vor.u32 %v1871_v27, %v1868_v26  ;;  %v2243_v52 = vrot.slane %v2241_v45, 5  ;;  %v2380_v1 = vrot.slane %v2372_v62, 5  ;;  %v2381_v2 = vrot.slane %v6547_v39, 5 }
 0x3b5   : > { %v2248_v53 = vrot.slane %v2246_v46, 4  ;;  %v2251_v54 = vrot.slane %v2249_v47, 5 }
 0x3b6   : > { %v1873_v32 = vsel %vm1013_vm5, %v1864_v28, %v1872_v30  ;;  %v2244_v57 = vor.u32 %v2243_v52, %v2240_v51  ;;  %v2382_v4 = vsel %vm1541_vm8, %v2380_v1, %v2381_v2 }
 0x3b7   : > { %5330 = vmatmul.mubr.msk.bf16.vlgmr.msra.gmra.mrb[20].mxu0 %vm1043_vm3, %v1873_v32  ;;  %5352 = vmatpush3.bf16.msra.mxu1 %v5757_v29  ;;  %v2252_v58 = vor.u32 %v2251_v54, %v2248_v53 }
 0x3b8   : > { %5342 = vmatpush3.bf16.msra.mxu0 %v5758_v31  ;;  %5365 = vmatprep.subr.bf16.mxu1 %v6008_v5 }
 0x3b9   : > { %5343 = vmatprep.subr.bf16.mxu0 %v6008_v5  ;;  %5345 = vmatprep.mubr.msk.bf16.mxu0 %vm6009_vm0, %v6008_v5  ;;  %v2253_v61 = vsel %vm1397_vm6, %v2244_v57, %v2252_v58 }
 0x3ba   : > { %5354 = vmatmul.mubr.msk.bf16.vlgmr.msra.gmra.mrb[36].mxu1 %vm1043_vm3, %v1934_v22 }
 0x3bb   : > { %5366 = vmatpush3.bf16.msra.mxu1 %v5759_v36  ;;  %5369 = vmatprep.mubr.msk.bf16.mxu1 %vm6009_vm0, %v6008_v5 }
 0x3bc   : > { %5344 = vmatpush3.bf16.msra.mxu0 %v5760_v37  ;;  %5367 = vmatprep.subr.bf16.mxu1 %v6008_v5 }
 0x3bd   : > { %5357 = vmatprep.subr.bf16.mxu0 %v6008_v5 }
 0x3bf   : > { %5346 = vmatmul.mubr.msk.bf16.vlgmr.msra.gmra.mrb[24].mxu0 %vm1043_vm3, %v1873_v32  ;;  %5368 = vmatpush3.bf16.msra.mxu1 %v5761_v40 }
 0x3c0   : > { %5358 = vmatpush3.bf16.msra.mxu0 %v5762_v41  ;;  %5381 = vmatprep.subr.bf16.mxu1 %v6008_v5 }
 0x3c1   : > { %5359 = vmatprep.subr.bf16.mxu0 %v6008_v5  ;;  %5361 = vmatprep.mubr.msk.bf16.mxu0 %vm6009_vm0, %v6008_v5 }
 0x3c2   : > { %5370 = vmatmul.mubr.msk.bf16.vlgmr.msra.gmra.mrb[40].mxu1 %vm1043_vm3, %v2112_v49 }
 0x3c3   : > { %5382 = vmatpush3.bf16.msra.mxu1 %v5763_v48  ;;  %5385 = vmatprep.mubr.msk.bf16.mxu1 %vm6009_vm0, %v6008_v5 }
 0x3c4   : > { %5360 = vmatpush3.bf16.msra.mxu0 %v5764_v50  ;;  %5383 = vmatprep.subr.bf16.mxu1 %v6008_v5 }
 0x3c5   : > { %5373 = vmatprep.subr.bf16.mxu0 %v6008_v5 }
 0x3c7   : > { %5362 = vmatmul.mubr.msk.bf16.vlgmr.msra.gmra.mrb[28].mxu0 %vm1043_vm3, %v2112_v49  ;;  %5384 = vmatpush3.bf16.msra.mxu1 %v5765_v55 }
 0x3c8   : > { %5374 = vmatpush3.bf16.msra.mxu0 %v5766_v56  ;;  %5397 = vmatprep.subr.bf16.mxu1 %v6008_v5 }
 0x3c9   : > { %5375 = vmatprep.subr.bf16.mxu0 %v6008_v5  ;;  %5377 = vmatprep.mubr.msk.bf16.mxu0 %vm6009_vm0, %v6008_v5 }
 0x3ca   : > { %5386 = vmatmul.mubr.msk.bf16.vlgmr.msra.gmra.mrb[44].mxu1 %vm1043_vm3, %v2253_v61 }
 0x3cb   : > { %5398 = vmatpush3.bf16.msra.mxu1 %v5767_v59  ;;  %5401 = vmatprep.mubr.msk.bf16.mxu1 %vm6009_vm0, %v6008_v5 }
 0x3cc   : > { %5376 = vmatpush3.bf16.msra.mxu0 %v5768_v60  ;;  %5399 = vmatprep.subr.bf16.mxu1 %v6008_v5 }
 0x3cd   : > { %5389 = vmatprep.subr.bf16.mxu0 %v6008_v5 }
 0x3cf   : > { %5378 = vmatmul.mubr.msk.bf16.vlgmr.msra.gmra.mrb[32].mxu0 %vm1043_vm3, %v2253_v61  ;;  %5400 = vmatpush3.bf16.msra.mxu1 %v5769_v63  ;;  %v4847_v61 = vld [vmem:[%s6949_s15 + $0x1] ss:$0 sm:$0xff] }
 0x3d0   : > { %5390 = vmatpush3.bf16.msra.mxu0 %v5770_v0  ;;  %5393 = vmatprep.mubr.msk.bf16.mxu0 %vm6009_vm0, %v6008_v5 }
 0x3d1   : > { %5391 = vmatprep.subr.bf16.mxu0 %v6008_v5  ;;  %5413 = vmatprep.subr.bf16.mxu1 %v6008_v5 }
 0x3d2   : > { %5402 = vmatmul.mubr.msk.bf16.vlgmr.msra.gmra.mrb[48].mxu1 %vm1043_vm3, %v2382_v4 }
 0x3d3   : > { %5417 = vmatprep.mubr.msk.bf16.mxu1 %vm6009_vm0, %v6008_v5  ;;  %5414 = vmatpush3.bf16.msra.mxu1 %v5772_v6 }
 0x3d4   : > { %5392 = vmatpush3.bf16.msra.mxu0 %v5771_v3  ;;  %5415 = vmatprep.subr.bf16.mxu1 %v6008_v5 }
 0x3d5   : > { %5405 = vmatprep.subr.bf16.mxu0 %v6008_v5 }
 0x3d7   : > { %5394 = vmatmul.mubr.msk.bf16.vlgmr.msra.gmra.mrb[36].mxu0 %vm1043_vm3, %v2382_v4  ;;  %5416 = vmatpush3.bf16.msra.mxu1 %v5774_v10 }
 0x3d8   : > { %5409 = vmatprep.mubr.msk.bf16.mxu0 %vm6009_vm0, %v6008_v5  ;;  %5406 = vmatpush3.bf16.msra.mxu0 %v5773_v7 }
 0x3d9   : > { %5407 = vmatprep.subr.bf16.mxu0 %v6008_v5  ;;  %5429 = vmatprep.subr.bf16.mxu1 %v6008_v5 }
 0x3dc   : > { %5408 = vmatpush3.bf16.msra.mxu0 %v5775_v11 }
 0x3dd   : > { %5421 = vmatprep.subr.bf16.mxu0 %v6008_v5 }
 0x485   : > { %v1984_v34 = vpop.f32.mrb[32].mxu1 }
 0x486   : > { %v5339_v12 = vpop.f32.mrb[33].mxu1 }
 0x487   : > { %v1987_v13 = vpop.f32.mrb[34].mxu1 }
 0x488   : > { %v5340_v35 = vpop.f32.mrb[35].mxu1 }
 0x48a   : > { %v1923_v14 = vpop.f32.mrb[20].mxu0 }
 0x48b   : > { %v1985_v15 = vadd.f32 %v1984_v34, %v1923_v14  ;;  %v5331_v16 = vpop.f32.mrb[21].mxu0 }
 0x48c   : > { %v1926_v17 = vpop.f32.mrb[22].mxu0  ;;  %v4845_v16 = vld [vmem:[%s6950_s27 + $0x1] ss:$0 sm:$0xff] }
 0x48d   : > { %v1988_v18 = vadd.f32 %v1987_v13, %v1926_v17  ;;  %v5332_v21 = vpop.f32.mrb[23].mxu0  ;;  %v2095_v22 = vpop.f32.mrb[36].mxu1 }
 0x48e   : > { %v5355_v23 = vpop.f32.mrb[37].mxu1 }
 0x48f   : > { %v2098_v24 = vpop.f32.mrb[38].mxu1 }
 0x490   : > { %v5356_v26 = vpop.f32.mrb[39].mxu1 }
 0x492   : > { %v2042_v27 = vpop.f32.mrb[24].mxu0 }
 0x493   : > { %v2096_v28 = vadd.f32 %v2095_v22, %v2042_v27  ;;  %v5347_v29 = vpop.f32.mrb[25].mxu0 }
 0x494   : > { %v2045_v30 = vpop.f32.mrb[26].mxu0 }
 0x495   : > { %v2099_v31 = vadd.f32 %v2098_v24, %v2045_v30  ;;  %v5348_v32 = vpop.f32.mrb[27].mxu0  ;;  %v2222_v36 = vpop.f32.mrb[40].mxu1 }
 0x496   : > { %v2229_v37 = vadd.f32 %v2222_v36, %v2096_v28  ;;  %v5371_v38 = vpop.f32.mrb[41].mxu1  ;;  %v5776_v36 = vld [vmem:[%s6257_s5 + $0xa0] sm:$0xff]  }
 0x497   : > { %v2225_v39 = vpop.f32.mrb[42].mxu1  ;;  %v5777_v38 = vld [vmem:[%s6257_s5 + $0xa8] sm:$0xff]  }
 0x498   : > { %v2230_v40 = vadd.f32 %v2225_v39, %v2099_v31  ;;  %v5372_v41 = vpop.f32.mrb[43].mxu1  ;;  %v5780_v39 = vld [vmem:[%s6257_s5 + $0xb8] sm:$0xff]  }
 0x499   : > { %v4865_v41 = vld [vmem:[%s6951_s14 + $0x1] ss:$0 sm:$0xff] }
 0x49a   : > { %v2162_v42 = vpop.f32.mrb[28].mxu0 }
 0x49b   : > { %v2169_v43 = vadd.f32 %v2162_v42, %v1985_v15  ;;  %v5363_v44 = vpop.f32.mrb[29].mxu0 }
 0x49c   : > { %v2165_v45 = vpop.f32.mrb[30].mxu0 }
 0x49d   : > { %v2170_v46 = vadd.f32 %v2165_v45, %v1988_v18  ;;  %v5364_v47 = vpop.f32.mrb[31].mxu0  ;;  %v2363_v48 = vpop.f32.mrb[44].mxu1 }
 0x49e   : > { %v2370_v49 = vadd.f32 %v2363_v48, %v2229_v37  ;;  %v5387_v50 = vpop.f32.mrb[45].mxu1  ;;  %v5778_v37 = vld [vmem:[%s6257_s5 + $0xb0] sm:$0xff]  }
 0x49f   : > { %v2366_v51 = vpop.f32.mrb[46].mxu1 }
 0x4a0   : > { %v2371_v52 = vadd.f32 %v2366_v51, %v2230_v40  ;;  %v5388_v53 = vpop.f32.mrb[47].mxu1 }
 0x4a2   : > { %v2303_v54 = vpop.f32.mrb[32].mxu0 }
 0x4a3   : > { %v2310_v55 = vadd.f32 %v2303_v54, %v2169_v43  ;;  %v5379_v56 = vpop.f32.mrb[33].mxu0 }
 0x4a4   : > { %v2306_v57 = vpop.f32.mrb[34].mxu0  ;;  %v5779_v56 = vld [vmem:[%s6263_s18 + $0xa0] sm:$0xff]  }
 0x4a5   : > { %v2311_v58 = vadd.f32 %v2306_v57, %v2170_v46  ;;  %v5380_v59 = vpop.f32.mrb[35].mxu0  ;;  %v2492_v60 = vpop.f32.mrb[48].mxu1 }
 0x4a6   : > { %v2499_v62 = vadd.f32 %v2492_v60, %v2370_v49  ;;  %v5403_v63 = vpop.f32.mrb[49].mxu1 }
 0x4a7   : > { %v2495_v0 = vpop.f32.mrb[50].mxu1 }
 0x4a8   : > { %v2521_v1 = vadd.f32 %v4847_v61, %v2499_v62  ;;  %v2500_v2 = vadd.f32 %v2495_v0, %v2371_v52  ;;  %v5404_v3 = vpop.f32.mrb[51].mxu1 }
 0x4a9   : > { %v5781_v3 = vld [vmem:[%s6263_s18 + $0xa8] sm:$0xff]  }
 0x4aa   : > { %v2523_v4 = vsub.f32 0.0, %v2521_v1  ;;  %v2522_v6 = vadd.f32 %v4847_v61, %v2500_v2  ;;  %v2432_v7 = vpop.f32.mrb[36].mxu0 }
 0x4ab   : > { %v2439_v10 = vadd.f32 %v2432_v7, %v2310_v55  ;;  %v5395_v11 = vpop.f32.mrb[37].mxu0 }
 0x4ac   : > { %v2525_v34 = vmul.f32 1.442695, %v2523_v4  ;;  %v2524_v12 = vsub.f32 0.0, %v2522_v6  ;;  %v2435_v13 = vpop.f32.mrb[38].mxu0  ;;  %v5782_v6 = vld [vmem:[%s6263_s18 + $0xb0] sm:$0xff]   ;;  %v5784_v11 = vld [vmem:[%s6263_s18 + $0xb8] sm:$0xff]  }
 0x4ad   : > { %v2440_v35 = vadd.f32 %v2435_v13, %v2311_v58  ;;  %v5396_v14 = vpop.f32.mrb[39].mxu0  ;;  %v2509_v17 = vadd.f32 %v4845_v16, %v2439_v10  ;;  %v5783_v10 = vld [vmem:[%s6263_s18 + $0xc0] sm:$0xff]   ;;  %v5785_v13 = vld [vmem:[%s6263_s18 + $0xc8] sm:$0xff]  }
 0x4ae   : > { %5836 = vpow2.f32 %v2525_v34  ;;  %v2527_v15 = vmul.f32 1.442695, %v2524_v12 }
 0x4af   : > { %v2510_v21 = vadd.f32 %v4845_v16, %v2440_v35  ;;  %v5786_v35 = vld [vmem:[%s6257_s5 + $0xc0] sm:$0xff]  }
 0x4b0   : > { %5838 = vpow2.f32 %v2527_v15 }
 0x4b1   : > { %5840 = vtanh.f32 %v2509_v17 }
 0x4b8   : > { %v5837_v18 = vpop.eup %5836 }
 0x4b9   : > { %v2529_v22 = vadd.f32 1.0, %v5837_v18 }
 0x4ba   : > { %v5839_v23 = vpop.eup %5838 }
 0x4bb   : > { %5842 = vrcp.f32 %v2529_v22  ;;  %v2530_v24 = vadd.f32 1.0, %v5839_v23  ;;  %v5841_v26 = vpop.eup %5840  ;;  %v5787_v22 = vld [vmem:[%s6263_s18 + $0xd0] sm:$0xff]  }
 0x4bc   : > { %5844 = vtanh.f32 %v2510_v21 }
 0x4bd   : > { %5846 = vrcp.f32 %v2530_v24  ;;  %v5788_v24 = vld [vmem:[%s6257_s5 + $0xc8] sm:$0xff]  }
 0x4c5   : > { %v5843_v27 = vpop.eup %5842 }
 0x4c6   : > { %v5845_v28 = vpop.eup %5844  ;;  %v2533_v29 = vmul.f32 %v5843_v27, %v5841_v26 }
 0x4c7   : > { %v5847_v30 = vpop.eup %5846 }
 0x4c8   : > { %v2534_v31 = vmul.f32 %v5847_v30, %v5845_v28  ;;  %v5789_v30 = vld [vmem:[%s6263_s18 + $0xd8] sm:$0xff]  }
 0x4ca   : > { %v2535_v32 = vpack.c.bf16 %v2534_v31, %v2533_v29  ;;  %v5790_v31 = vld [vmem:[%s6257_s5 + $0xd0] sm:$0xff]  }
 0x4cc   : > { %5410 = vmatmul.mubr.msk.bf16.vlgmr.msra.gmra.mrb[16].mxu0 %vm1043_vm3, %v2535_v32  ;;  %5418 = vmatmul.mubr.msk.bf16.vlgmr.msra.gmra.mrb[52].mxu1 %vm1043_vm3, %v2535_v32 }
 0x4cd   : > { %5433 = vmatprep.mubr.msk.bf16.mxu1 %vm6009_vm0, %v6008_v5  ;;  %5425 = vmatprep.mubr.msk.bf16.mxu0 %vm6009_vm0, %v6008_v5 }
 0x4ce   : > { %5430 = vmatpush3.bf16.msra.mxu1 %v5776_v36  ;;  %5422 = vmatpush3.bf16.msra.mxu0 %v5778_v37  ;;  %v5791_v37 = vld [vmem:[%s6263_s18 + $0xe0] sm:$0xff]  }
 0x4cf   : > { %5431 = vmatprep.subr.bf16.mxu1 %v6008_v5  ;;  %5423 = vmatprep.subr.bf16.mxu0 %v6008_v5 }
 0x4d2   : > { %5432 = vmatpush3.bf16.msra.mxu1 %v5777_v38  ;;  %5424 = vmatpush3.bf16.msra.mxu0 %v5780_v39  ;;  %v5792_v38 = vld [vmem:[%s6257_s5 + $0xd8] sm:$0xff]  }
 0x4d3   : > { %5445 = vmatprep.subr.bf16.mxu1 %v6008_v5  ;;  %5437 = vmatprep.subr.bf16.mxu0 %v6008_v5 }
 0x59f   : > { %v2658_v40 = vpop.f32.mrb[52].mxu1 }
 0x5a0   : > { %v2665_v42 = vadd.f32 %v2658_v40, %v6521_v8  ;;  %v5419_v43 = vpop.f32.mrb[53].mxu1 }
 0x5a1   : > { %v2661_v44 = vpop.f32.mrb[54].mxu1 }
 0x5a2   : > { %v2675_v45 = vadd.f32 %v4865_v41, %v2665_v42  ;;  %v2666_v46 = vadd.f32 %v2661_v44, %v6524_v9  ;;  %v5420_v47 = vpop.f32.mrb[55].mxu1  ;;  %v5794_v42 = vld [vmem:[%s6257_s5 + $0xe0] sm:$0xff]  }
 0x5a3   : > { %v5796_v47 = vld [vmem:[%s6948_s26 + $0x20] sm:$0xff]  }
 0x5a4   : > { %v2676_v48 = vadd.f32 %v4865_v41, %v2666_v46  ;;  %v6630_v49 = vmul.f32 %v2675_v45, %v6398_v25  ;;  %v5793_v41 = vld [vmem:[%s6263_s18 + $0xe8] sm:$0xff]  }
 0x5a5   : > { %v5795_v45 = vld [vmem:[%s6257_s5 + $0xe8] sm:$0xff]  }
 0x5a6   : > { %v6633_v50 = vmul.f32 %v2676_v48, %v6405_v33  ;;  %v5797_v48 = vld [vmem:[%s6320_s28 + $0x20] sm:$0xff]  }
 0x5a8   : > { %v2679_v51 = vpack.c.bf16 %v6633_v50, %v6630_v49 }
 0x5aa   : > { %v2681_v52 = vrot.slane %v2679_v51, 4  ;;  %v5798_v51 = vld [vmem:[%s6948_s26 + $0x28] sm:$0xff]  }
 0x5ac   : > { %2683 = vst.msk [vmem:[#allocation2] sm:$0xf0] %vm874_vm2, %v2681_v52 }
 0x5ad   : > { %2684 = vst.msk [vmem:[#allocation2 + $0x8] sm:$0xf] %vm872_vm1, %v2681_v52  ;;  %v5799_v52 = vld [vmem:[%s6320_s28 + $0x28] sm:$0xff]  }
 0x5b3   : > { %v2685_v8 = vld [vmem:[#allocation2] sm:$0xf8] }
 0x5b4   : > { %v2686_v53 = vld [vmem:[#allocation2 + $0x8] sm:$0x7]  ;;  %v2778_v9 = vrot.slane %v2685_v8, 3  ;;  %v2704_v57 = vshrl.u32 %v2685_v8, 16  ;;  %v2707_v58 = vshll.u32 %v2685_v8, 16 }
 0x5b5   : > { %v2697_v54 = vld [vmem:[#allocation2 + $0x8] sm:$0xf]  ;;  %v2779_v55 = vrot.slane %v2686_v53, 3  ;;  %v2948_v34 = vld [vmem:[#allocation2] sm:$0xf0] }
 0x5b6   : > { %v2712_v59 = vshrl.u32 %v2697_v54, 16  ;;  %v2715_v60 = vshll.u32 %v2697_v54, 16  ;;  %v2706_v62 = vrot.slane %v2704_v57, 3  ;;  %v2709_v63 = vrot.slane %v2707_v58, 4  ;;  %v6656_v12 = vld [vmem:[#allocation2 + $0x8] sm:$0x1f] }
 0x5b7   : > { %v2780_v61 = vsel %vm1090_vm7, %v2778_v9, %v2779_v55  ;;  %v2956_v14 = vrot.slane %v2948_v34, 4  ;;  %v2957_v15 = vrot.slane %v2697_v54, 4  ;;  %v3084_v16 = vshrl.u32 %v2948_v34, 16  ;;  %v3218_v40 = vld [vmem:[#allocation2] sm:$0xe0] }
 0x5b8   : > { %5434 = vmatmul.mubr.msk.bf16.vlgmr.msra.gmra.mrb[56].mxu1 %vm1043_vm3, %v2780_v61  ;;  %v2714_v0 = vrot.slane %v2712_v59, 3  ;;  %v2717_v1 = vrot.slane %v2715_v60, 4  ;;  %v2710_v2 = vor.u32 %v2709_v63, %v2706_v62  ;;  %v3087_v17 = vshll.u32 %v2948_v34, 16 }
 0x5b9   : > { %5446 = vmatpush3.bf16.msra.mxu1 %v5779_v56  ;;  %5449 = vmatprep.mubr.msk.bf16.mxu1 %vm6009_vm0, %v6008_v5  ;;  %v3092_v18 = vshrl.u32 %v6656_v12, 16  ;;  %v3095_v21 = vshll.u32 %v6656_v12, 16  ;;  %v2958_v23 = vsel %vm1269_vm4, %v2956_v14, %v2957_v15  ;;  %v3086_v26 = vrot.slane %v3084_v16, 4 }
 0x5ba   : > { %5447 = vmatprep.subr.bf16.mxu1 %v6008_v5  ;;  %v2718_v4 = vor.u32 %v2717_v1, %v2714_v0  ;;  %v3089_v27 = vrot.slane %v3087_v17, 5  ;;  %v3226_v43 = vrot.slane %v3218_v40, 5  ;;  %v3227_v44 = vrot.slane %v6656_v12, 5 }
 0x5bb   : > { %v3094_v28 = vrot.slane %v3092_v18, 4  ;;  %v3097_v29 = vrot.slane %v3095_v21, 5 }
 0x5bc   : > { %v2719_v7 = vsel %vm1013_vm5, %v2710_v2, %v2718_v4  ;;  %v3090_v32 = vor.u32 %v3089_v27, %v3086_v26  ;;  %v3228_v46 = vsel %vm1541_vm8, %v3226_v43, %v3227_v44 }
 0x5bd   : > { %5426 = vmatmul.mubr.msk.bf16.vlgmr.msra.gmra.mrb[40].mxu0 %vm1043_vm3, %v2719_v7  ;;  %5448 = vmatpush3.bf16.msra.mxu1 %v5781_v3  ;;  %v3098_v36 = vor.u32 %v3097_v29, %v3094_v28 }
 0x5be   : > { %5438 = vmatpush3.bf16.msra.mxu0 %v5782_v6  ;;  %5461 = vmatprep.subr.bf16.mxu1 %v6008_v5 }
 0x5bf   : > { %5439 = vmatprep.subr.bf16.mxu0 %v6008_v5  ;;  %5441 = vmatprep.mubr.msk.bf16.mxu0 %vm6009_vm0, %v6008_v5  ;;  %v3099_v39 = vsel %vm1397_vm6, %v3090_v32, %v3098_v36 }
 0x5c0   : > { %5450 = vmatmul.mubr.msk.bf16.vlgmr.msra.gmra.mrb[60].mxu1 %vm1043_vm3, %v2780_v61 }
 0x5c1   : > { %5462 = vmatpush3.bf16.msra.mxu1 %v5783_v10  ;;  %5465 = vmatprep.mubr.msk.bf16.mxu1 %vm6009_vm0, %v6008_v5 }
 0x5c2   : > { %5440 = vmatpush3.bf16.msra.mxu0 %v5784_v11  ;;  %5463 = vmatprep.subr.bf16.mxu1 %v6008_v5 }
 0x5c3   : > { %5453 = vmatprep.subr.bf16.mxu0 %v6008_v5 }
 0x5c5   : > { %5442 = vmatmul.mubr.msk.bf16.vlgmr.msra.gmra.mrb[44].mxu0 %vm1043_vm3, %v2719_v7  ;;  %5464 = vmatpush3.bf16.msra.mxu1 %v5785_v13 }
 0x5c6   : > { %5454 = vmatpush3.bf16.msra.mxu0 %v5786_v35  ;;  %5477 = vmatprep.subr.bf16.mxu1 %v6008_v5 }
 0x5c7   : > { %5455 = vmatprep.subr.bf16.mxu0 %v6008_v5  ;;  %5457 = vmatprep.mubr.msk.bf16.mxu0 %vm6009_vm0, %v6008_v5 }
 0x5c8   : > { %5466 = vmatmul.mubr.msk.bf16.vlgmr.msra.gmra.mrb[64].mxu1 %vm1043_vm3, %v2958_v23 }
 0x5c9   : > { %5478 = vmatpush3.bf16.msra.mxu1 %v5787_v22  ;;  %5481 = vmatprep.mubr.msk.bf16.mxu1 %vm6009_vm0, %v6008_v5 }
 0x5ca   : > { %5456 = vmatpush3.bf16.msra.mxu0 %v5788_v24  ;;  %5479 = vmatprep.subr.bf16.mxu1 %v6008_v5 }
 0x5cb   : > { %5469 = vmatprep.subr.bf16.mxu0 %v6008_v5 }
 0x5cd   : > { %5458 = vmatmul.mubr.msk.bf16.vlgmr.msra.gmra.mrb[48].mxu0 %vm1043_vm3, %v2958_v23  ;;  %5480 = vmatpush3.bf16.msra.mxu1 %v5789_v30 }
 0x5ce   : > { %5470 = vmatpush3.bf16.msra.mxu0 %v5790_v31  ;;  %5493 = vmatprep.subr.bf16.mxu1 %v6008_v5 }
 0x5cf   : > { %5471 = vmatprep.subr.bf16.mxu0 %v6008_v5  ;;  %5473 = vmatprep.mubr.msk.bf16.mxu0 %vm6009_vm0, %v6008_v5 }
 0x5d0   : > { %5482 = vmatmul.mubr.msk.bf16.vlgmr.msra.gmra.mrb[68].mxu1 %vm1043_vm3, %v3099_v39 }
 0x5d1   : > { %5494 = vmatpush3.bf16.msra.mxu1 %v5791_v37  ;;  %5497 = vmatprep.mubr.msk.bf16.mxu1 %vm6009_vm0, %v6008_v5 }
 0x5d2   : > { %5472 = vmatpush3.bf16.msra.mxu0 %v5792_v38  ;;  %5495 = vmatprep.subr.bf16.mxu1 %v6008_v5 }
 0x5d3   : > { %5485 = vmatprep.subr.bf16.mxu0 %v6008_v5 }
 0x5d5   : > { %5474 = vmatmul.mubr.msk.bf16.vlgmr.msra.gmra.mrb[52].mxu0 %vm1043_vm3, %v3099_v39  ;;  %5496 = vmatpush3.bf16.msra.mxu1 %v5793_v41  ;;  %v4939_v39 = vld [vmem:[%s6949_s15 + $0x2] ss:$0 sm:$0xff] }
 0x5d6   : > { %5486 = vmatpush3.bf16.msra.mxu0 %v5794_v42  ;;  %5489 = vmatprep.mubr.msk.bf16.mxu0 %vm6009_vm0, %v6008_v5 }
 0x5d7   : > { %5487 = vmatprep.subr.bf16.mxu0 %v6008_v5  ;;  %5509 = vmatprep.subr.bf16.mxu1 %v6008_v5 }
 0x5d8   : > { %5498 = vmatmul.mubr.msk.bf16.vlgmr.msra.gmra.mrb[72].mxu1 %vm1043_vm3, %v3228_v46 }
 0x5d9   : > { %5513 = vmatprep.mubr.msk.bf16.mxu1 %vm6009_vm0, %v6008_v5  ;;  %5510 = vmatpush3.bf16.msra.mxu1 %v5796_v47 }
 0x5da   : > { %5488 = vmatpush3.bf16.msra.mxu0 %v5795_v45  ;;  %5511 = vmatprep.subr.bf16.mxu1 %v6008_v5 }
 0x5db   : > { %5501 = vmatprep.subr.bf16.mxu0 %v6008_v5 }
 0x5dd   : > { %5490 = vmatmul.mubr.msk.bf16.vlgmr.msra.gmra.mrb[56].mxu0 %vm1043_vm3, %v3228_v46  ;;  %5512 = vmatpush3.bf16.msra.mxu1 %v5798_v51 }
 0x5de   : > { %5505 = vmatprep.mubr.msk.bf16.mxu0 %vm6009_vm0, %v6008_v5  ;;  %5502 = vmatpush3.bf16.msra.mxu0 %v5797_v48 }
 0x5df   : > { %5503 = vmatprep.subr.bf16.mxu0 %v6008_v5  ;;  %5525 = vmatprep.subr.bf16.mxu1 %v6008_v5 }
 0x5e2   : > { %5504 = vmatpush3.bf16.msra.mxu0 %v5799_v52 }
 0x5e3   : > { %5517 = vmatprep.subr.bf16.mxu0 %v6008_v5 }
 0x68b   : > { %v2830_v8 = vpop.f32.mrb[56].mxu1 }
 0x68c   : > { %v5435_v53 = vpop.f32.mrb[57].mxu1 }
 0x68d   : > { %v2833_v54 = vpop.f32.mrb[58].mxu1 }
 0x68e   : > { %v5436_v9 = vpop.f32.mrb[59].mxu1 }
 0x690   : > { %v2769_v55 = vpop.f32.mrb[40].mxu0 }
 0x691   : > { %v2831_v56 = vadd.f32 %v2830_v8, %v2769_v55  ;;  %v5427_v57 = vpop.f32.mrb[41].mxu0 }
 0x692   : > { %v2772_v58 = vpop.f32.mrb[42].mxu0  ;;  %v4937_v57 = vld [vmem:[%s6950_s27 + $0x2] ss:$0 sm:$0xff] }
 0x693   : > { %v2834_v59 = vadd.f32 %v2833_v54, %v2772_v58  ;;  %v5428_v60 = vpop.f32.mrb[43].mxu0  ;;  %v2941_v61 = vpop.f32.mrb[60].mxu1 }
 0x694   : > { %v5451_v62 = vpop.f32.mrb[61].mxu1 }
 0x695   : > { %v2944_v63 = vpop.f32.mrb[62].mxu1 }
 0x696   : > { %v5452_v0 = vpop.f32.mrb[63].mxu1 }
 0x698   : > { %v2888_v1 = vpop.f32.mrb[44].mxu0 }
 0x699   : > { %v2942_v2 = vadd.f32 %v2941_v61, %v2888_v1  ;;  %v5443_v3 = vpop.f32.mrb[45].mxu0 }
 0x69a   : > { %v2891_v4 = vpop.f32.mrb[46].mxu0 }
 0x69b   : > { %v2945_v6 = vadd.f32 %v2944_v63, %v2891_v4  ;;  %v5444_v7 = vpop.f32.mrb[47].mxu0  ;;  %v3068_v10 = vpop.f32.mrb[64].mxu1 }
 0x69c   : > { %v3075_v11 = vadd.f32 %v3068_v10, %v2942_v2  ;;  %v5467_v34 = vpop.f32.mrb[65].mxu1  ;;  %v5800_v10 = vld [vmem:[%s6257_s5 + $0xf0] sm:$0xff]  }
 0x69d   : > { %v3071_v12 = vpop.f32.mrb[66].mxu1  ;;  %v5801_v34 = vld [vmem:[%s6257_s5 + $0xf8] sm:$0xff]  }
 0x69e   : > { %v3076_v13 = vadd.f32 %v3071_v12, %v2945_v6  ;;  %v5468_v35 = vpop.f32.mrb[67].mxu1  ;;  %v5804_v12 = vld [vmem:[%s6257_s5 + $0x108] sm:$0xff]  }
 0x69f   : > { %v4957_v35 = vld [vmem:[%s6951_s14 + $0x2] ss:$0 sm:$0xff] }
 0x6a0   : > { %v3008_v14 = vpop.f32.mrb[48].mxu0 }
 0x6a1   : > { %v3015_v15 = vadd.f32 %v3008_v14, %v2831_v56  ;;  %v5459_v16 = vpop.f32.mrb[49].mxu0 }
 0x6a2   : > { %v3011_v17 = vpop.f32.mrb[50].mxu0 }
 0x6a3   : > { %v3016_v18 = vadd.f32 %v3011_v17, %v2834_v59  ;;  %v5460_v21 = vpop.f32.mrb[51].mxu0  ;;  %v3209_v22 = vpop.f32.mrb[68].mxu1 }
 0x6a4   : > { %v3216_v23 = vadd.f32 %v3209_v22, %v3075_v11  ;;  %v5483_v24 = vpop.f32.mrb[69].mxu1  ;;  %v5802_v11 = vld [vmem:[%s6257_s5 + $0x100] sm:$0xff]  }
 0x6a5   : > { %v3212_v26 = vpop.f32.mrb[70].mxu1 }
 0x6a6   : > { %v3217_v27 = vadd.f32 %v3212_v26, %v3076_v13  ;;  %v5484_v28 = vpop.f32.mrb[71].mxu1 }
 0x6a8   : > { %v3149_v29 = vpop.f32.mrb[52].mxu0 }
 0x6a9   : > { %v3156_v30 = vadd.f32 %v3149_v29, %v3015_v15  ;;  %v5475_v31 = vpop.f32.mrb[53].mxu0 }
 0x6aa   : > { %v3152_v32 = vpop.f32.mrb[54].mxu0 }
 0x6ab   : > { %v3157_v36 = vadd.f32 %v3152_v32, %v3016_v18  ;;  %v5476_v37 = vpop.f32.mrb[55].mxu0  ;;  %v3338_v38 = vpop.f32.mrb[72].mxu1  ;;  %v5803_v32 = vld [vmem:[%s6263_s18 + $0xf0] sm:$0xff]  }
 0x6ac   : > { %v3345_v40 = vadd.f32 %v3338_v38, %v3216_v23  ;;  %v5499_v41 = vpop.f32.mrb[73].mxu1 }
 0x6ad   : > { %v3341_v42 = vpop.f32.mrb[74].mxu1 }
 0x6ae   : > { %v3367_v43 = vadd.f32 %v4939_v39, %v3345_v40  ;;  %v3346_v44 = vadd.f32 %v3341_v42, %v3217_v27  ;;  %v5500_v45 = vpop.f32.mrb[75].mxu1 }
 0x6af   : > { %v5805_v45 = vld [vmem:[%s6263_s18 + $0xf8] sm:$0xff]  }
 0x6b0   : > { %v3369_v46 = vsub.f32 0.0, %v3367_v43  ;;  %v3368_v47 = vadd.f32 %v4939_v39, %v3346_v44  ;;  %v3278_v48 = vpop.f32.mrb[56].mxu0 }
 0x6b1   : > { %v3285_v51 = vadd.f32 %v3278_v48, %v3156_v30  ;;  %v5491_v52 = vpop.f32.mrb[57].mxu0 }
 0x6b2   : > { %v3371_v8 = vmul.f32 1.442695, %v3369_v46  ;;  %v3370_v53 = vsub.f32 0.0, %v3368_v47  ;;  %v3281_v54 = vpop.f32.mrb[58].mxu0  ;;  %v5806_v47 = vld [vmem:[%s6263_s18 + $0x100] sm:$0xff]   ;;  %v5808_v52 = vld [vmem:[%s6263_s18 + $0x108] sm:$0xff]  }
 0x6b3   : > { %v3286_v9 = vadd.f32 %v3281_v54, %v3157_v36  ;;  %v5492_v55 = vpop.f32.mrb[59].mxu0  ;;  %v3355_v58 = vadd.f32 %v4937_v57, %v3285_v51  ;;  %v5807_v51 = vld [vmem:[%s6263_s18 + $0x110] sm:$0xff]   ;;  %v5809_v54 = vld [vmem:[%s6263_s18 + $0x118] sm:$0xff]  }
 0x6b4   : > { %5848 = vpow2.f32 %v3371_v8  ;;  %v3373_v56 = vmul.f32 1.442695, %v3370_v53 }
 0x6b5   : > { %v3356_v60 = vadd.f32 %v4937_v57, %v3286_v9  ;;  %v5810_v9 = vld [vmem:[%s6257_s5 + $0x110] sm:$0xff]  }
 0x6b6   : > { %5850 = vpow2.f32 %v3373_v56 }
 0x6b7   : > { %5852 = vtanh.f32 %v3355_v58 }
 0x6be   : > { %v5849_v59 = vpop.eup %5848 }
 0x6bf   : > { %v3375_v61 = vadd.f32 1.0, %v5849_v59 }
 0x6c0   : > { %v5851_v62 = vpop.eup %5850 }
 0x6c1   : > { %5854 = vrcp.f32 %v3375_v61  ;;  %v3376_v63 = vadd.f32 1.0, %v5851_v62  ;;  %v5853_v0 = vpop.eup %5852  ;;  %v5811_v61 = vld [vmem:[%s6263_s18 + $0x120] sm:$0xff]  }
 0x6c2   : > { %5856 = vtanh.f32 %v3356_v60 }
 0x6c3   : > { %5858 = vrcp.f32 %v3376_v63  ;;  %v5812_v63 = vld [vmem:[%s6257_s5 + $0x118] sm:$0xff]  }
 0x6cb   : > { %v5855_v1 = vpop.eup %5854 }
 0x6cc   : > { %v5857_v2 = vpop.eup %5856  ;;  %v3379_v3 = vmul.f32 %v5855_v1, %v5853_v0 }
 0x6cd   : > { %v5859_v4 = vpop.eup %5858 }
 0x6ce   : > { %v3380_v6 = vmul.f32 %v5859_v4, %v5857_v2  ;;  %v5813_v4 = vld [vmem:[%s6263_s18 + $0x128] sm:$0xff]  }
 0x6d0   : > { %v3381_v7 = vpack.c.bf16 %v3380_v6, %v3379_v3  ;;  %v5814_v6 = vld [vmem:[%s6257_s5 + $0x120] sm:$0xff]  }
 0x6d2   : > { %5506 = vmatmul.mubr.msk.bf16.vlgmr.msra.gmra.mrb[16].mxu0 %vm1043_vm3, %v3381_v7  ;;  %5514 = vmatmul.mubr.msk.bf16.vlgmr.msra.gmra.mrb[76].mxu1 %vm1043_vm3, %v3381_v7 }
 0x6d3   : > { %5529 = vmatprep.mubr.msk.bf16.mxu1 %vm6009_vm0, %v6008_v5  ;;  %5521 = vmatprep.mubr.msk.bf16.mxu0 %vm6009_vm0, %v6008_v5 }
 0x6d4   : > { %5526 = vmatpush3.bf16.msra.mxu1 %v5800_v10  ;;  %5518 = vmatpush3.bf16.msra.mxu0 %v5802_v11  ;;  %v5815_v11 = vld [vmem:[%s6263_s18 + $0x130] sm:$0xff]  }
 0x6d5   : > { %5527 = vmatprep.subr.bf16.mxu1 %v6008_v5  ;;  %5519 = vmatprep.subr.bf16.mxu0 %v6008_v5 }
 0x6d8   : > { %5528 = vmatpush3.bf16.msra.mxu1 %v5801_v34  ;;  %5520 = vmatpush3.bf16.msra.mxu0 %v5804_v12  ;;  %v5816_v34 = vld [vmem:[%s6257_s5 + $0x128] sm:$0xff]  }
 0x6d9   : > { %5541 = vmatprep.subr.bf16.mxu1 %v6008_v5  ;;  %5533 = vmatprep.subr.bf16.mxu0 %v6008_v5 }
 0x7a5   : > { %v3504_v13 = vpop.f32.mrb[76].mxu1 }
 0x7a6   : > { %v3511_v14 = vadd.f32 %v3504_v13, %v6630_v49  ;;  %v5515_v15 = vpop.f32.mrb[77].mxu1 }
 0x7a7   : > { %v3507_v16 = vpop.f32.mrb[78].mxu1 }
 0x7a8   : > { %v3521_v17 = vadd.f32 %v4957_v35, %v3511_v14  ;;  %v3512_v18 = vadd.f32 %v3507_v16, %v6633_v50  ;;  %v5516_v21 = vpop.f32.mrb[79].mxu1  ;;  %v5818_v14 = vld [vmem:[%s6257_s5 + $0x130] sm:$0xff]  }
 0x7a9   : > { %v5820_v21 = vld [vmem:[%s6320_s28 + $0x30] sm:$0xff]  }
 0x7aa   : > { %v3522_v22 = vadd.f32 %v4957_v35, %v3512_v18  ;;  %v3523_v23 = vmul.f32 %v3521_v17, %v6398_v25  ;;  %v5817_v35 = vld [vmem:[%s6263_s18 + $0x138] sm:$0xff]  }
 0x7ab   : > { %v5819_v17 = vld [vmem:[%s6257_s5 + $0x138] sm:$0xff]  }
 0x7ac   : > { %v3524_v24 = vmul.f32 %v3522_v22, %v6405_v33  ;;  %v5821_v22 = vld [vmem:[%s6320_s28 + $0x38] sm:$0xff]  }
 0x7ae   : > { %v3525_v26 = vpack.c.bf16 %v3524_v24, %v3523_v23 }
 0x7b0   : > { %v3527_v27 = vrot.slane %v3525_v26, 4 }
 0x7b2   : > { %3529 = vst.msk [vmem:[#allocation2] sm:$0xf0] %vm874_vm2, %v3527_v27 }
 0x7b3   : > { %3530 = vst.msk [vmem:[#allocation2 + $0x8] sm:$0xf] %vm872_vm1, %v3527_v27 }
 0x7b9   : > { %v3531_v28 = vld [vmem:[#allocation2] sm:$0xf8] }
 0x7ba   : > { %v3532_v49 = vld [vmem:[#allocation2 + $0x8] sm:$0x7]  ;;  %v3624_v30 = vrot.slane %v3531_v28, 3  ;;  %v3550_v50 = vshrl.u32 %v3531_v28, 16  ;;  %v3553_v36 = vshll.u32 %v3531_v28, 16 }
 0x7bb   : > { %v3543_v29 = vld [vmem:[#allocation2 + $0x8] sm:$0xf]  ;;  %v3625_v31 = vrot.slane %v3532_v49, 3  ;;  %v3794_v8 = vld [vmem:[#allocation2] sm:$0xf0] }
 0x7bc   : > { %v3558_v37 = vshrl.u32 %v3543_v29, 16  ;;  %v3561_v38 = vshll.u32 %v3543_v29, 16  ;;  %v3552_v40 = vrot.slane %v3550_v50, 3  ;;  %v3555_v41 = vrot.slane %v3553_v36, 4  ;;  %v6759_v53 = vld [vmem:[#allocation2 + $0x8] sm:$0x1f] }
 0x7bd   : > { %v3626_v39 = vsel %vm1090_vm7, %v3624_v30, %v3625_v31  ;;  %v3802_v55 = vrot.slane %v3794_v8, 4  ;;  %v3803_v56 = vrot.slane %v3543_v29, 4  ;;  %v3930_v57 = vshrl.u32 %v3794_v8, 16  ;;  %v4064_v13 = vld [vmem:[#allocation2] sm:$0xe0] }
 0x7be   : > { %5530 = vmatmul.mubr.msk.bf16.vlgmr.msra.gmra.mrb[80].mxu1 %vm1043_vm3, %v3626_v39  ;;  %v3560_v42 = vrot.slane %v3558_v37, 3  ;;  %v3563_v43 = vrot.slane %v3561_v38, 4  ;;  %v3556_v44 = vor.u32 %v3555_v41, %v3552_v40  ;;  %v3933_v58 = vshll.u32 %v3794_v8, 16 }
 0x7bf   : > { %5542 = vmatpush3.bf16.msra.mxu1 %v5803_v32  ;;  %5545 = vmatprep.mubr.msk.bf16.mxu1 %vm6009_vm0, %v6008_v5  ;;  %v3938_v59 = vshrl.u32 %v6759_v53, 16  ;;  %v3941_v60 = vshll.u32 %v6759_v53, 16  ;;  %v3804_v62 = vsel %vm1269_vm4, %v3802_v55, %v3803_v56  ;;  %v3932_v0 = vrot.slane %v3930_v57, 4 }
 0x7c0   : > { %5543 = vmatprep.subr.bf16.mxu1 %v6008_v5  ;;  %v3564_v46 = vor.u32 %v3563_v43, %v3560_v42  ;;  %v3935_v1 = vrot.slane %v3933_v58, 5  ;;  %v4072_v15 = vrot.slane %v4064_v13, 5  ;;  %v4073_v16 = vrot.slane %v6759_v53, 5 }
 0x7c1   : > { %v3940_v2 = vrot.slane %v3938_v59, 4  ;;  %v3943_v3 = vrot.slane %v3941_v60, 5 }
 0x7c2   : > { %v3565_v48 = vsel %vm1013_vm5, %v3556_v44, %v3564_v46  ;;  %v3936_v7 = vor.u32 %v3935_v1, %v3932_v0  ;;  %v4074_v18 = vsel %vm1541_vm8, %v4072_v15, %v4073_v16 }
 0x7c3   : > { %5522 = vmatmul.mubr.msk.bf16.vlgmr.msra.gmra.mrb[60].mxu0 %vm1043_vm3, %v3565_v48  ;;  %5544 = vmatpush3.bf16.msra.mxu1 %v5805_v45  ;;  %v3944_v10 = vor.u32 %v3943_v3, %v3940_v2 }
 0x7c4   : > { %5534 = vmatpush3.bf16.msra.mxu0 %v5806_v47  ;;  %5557 = vmatprep.subr.bf16.mxu1 %v6008_v5 }
 0x7c5   : > { %5535 = vmatprep.subr.bf16.mxu0 %v6008_v5  ;;  %5537 = vmatprep.mubr.msk.bf16.mxu0 %vm6009_vm0, %v6008_v5  ;;  %v3945_v12 = vsel %vm1397_vm6, %v3936_v7, %v3944_v10  ;;  %v5031_v7 = vld [vmem:[%s6949_s15 + $0x3] ss:$0 sm:$0xff] }
 0x7c6   : > { %5546 = vmatmul.mubr.msk.bf16.vlgmr.msra.gmra.mrb[84].mxu1 %vm1043_vm3, %v3626_v39 }
 0x7c7   : > { %5558 = vmatpush3.bf16.msra.mxu1 %v5807_v51  ;;  %5561 = vmatprep.mubr.msk.bf16.mxu1 %vm6009_vm0, %v6008_v5 }
 0x7c8   : > { %5536 = vmatpush3.bf16.msra.mxu0 %v5808_v52  ;;  %5559 = vmatprep.subr.bf16.mxu1 %v6008_v5 }
 0x7c9   : > { %5549 = vmatprep.subr.bf16.mxu0 %v6008_v5 }
 0x7cb   : > { %5538 = vmatmul.mubr.msk.bf16.vlgmr.msra.gmra.mrb[64].mxu0 %vm1043_vm3, %v3565_v48  ;;  %5560 = vmatpush3.bf16.msra.mxu1 %v5809_v54 }
 0x7cc   : > { %5550 = vmatpush3.bf16.msra.mxu0 %v5810_v9  ;;  %5573 = vmatprep.subr.bf16.mxu1 %v6008_v5 }
 0x7cd   : > { %5551 = vmatprep.subr.bf16.mxu0 %v6008_v5  ;;  %5553 = vmatprep.mubr.msk.bf16.mxu0 %vm6009_vm0, %v6008_v5 }
 0x7ce   : > { %5562 = vmatmul.mubr.msk.bf16.vlgmr.msra.gmra.mrb[88].mxu1 %vm1043_vm3, %v3804_v62 }
 0x7cf   : > { %5574 = vmatpush3.bf16.msra.mxu1 %v5811_v61  ;;  %5577 = vmatprep.mubr.msk.bf16.mxu1 %vm6009_vm0, %v6008_v5 }
 0x7d0   : > { %5552 = vmatpush3.bf16.msra.mxu0 %v5812_v63  ;;  %5575 = vmatprep.subr.bf16.mxu1 %v6008_v5 }
 0x7d1   : > { %5565 = vmatprep.subr.bf16.mxu0 %v6008_v5 }
 0x7d3   : > { %5554 = vmatmul.mubr.msk.bf16.vlgmr.msra.gmra.mrb[68].mxu0 %vm1043_vm3, %v3804_v62  ;;  %5576 = vmatpush3.bf16.msra.mxu1 %v5813_v4 }
 0x7d4   : > { %5566 = vmatpush3.bf16.msra.mxu0 %v5814_v6  ;;  %5589 = vmatprep.subr.bf16.mxu1 %v6008_v5 }
 0x7d5   : > { %5567 = vmatprep.subr.bf16.mxu0 %v6008_v5  ;;  %5569 = vmatprep.mubr.msk.bf16.mxu0 %vm6009_vm0, %v6008_v5 }
 0x7d6   : > { %5578 = vmatmul.mubr.msk.bf16.vlgmr.msra.gmra.mrb[92].mxu1 %vm1043_vm3, %v3945_v12 }
 0x7d7   : > { %5590 = vmatpush3.bf16.msra.mxu1 %v5815_v11  ;;  %5593 = vmatprep.mubr.msk.bf16.mxu1 %vm6009_vm0, %v6008_v5 }
 0x7d8   : > { %5568 = vmatpush3.bf16.msra.mxu0 %v5816_v34  ;;  %5591 = vmatprep.subr.bf16.mxu1 %v6008_v5 }
 0x7d9   : > { %5581 = vmatprep.subr.bf16.mxu0 %v6008_v5 }
 0x7db   : > { %5570 = vmatmul.mubr.msk.bf16.vlgmr.msra.gmra.mrb[72].mxu0 %vm1043_vm3, %v3945_v12  ;;  %5592 = vmatpush3.bf16.msra.mxu1 %v5817_v35 }
 0x7dc   : > { %5582 = vmatpush3.bf16.msra.mxu0 %v5818_v14  ;;  %5585 = vmatprep.mubr.msk.bf16.mxu0 %vm6009_vm0, %v6008_v5 }
 0x7dd   : > { %5583 = vmatprep.subr.bf16.mxu0 %v6008_v5  ;;  %5605 = vmatprep.subr.bf16.mxu1 %v6008_v5 }
 0x7de   : > { %5594 = vmatmul.mubr.msk.bf16.vlgmr.msra.gmra.mrb[96].mxu1 %vm1043_vm3, %v4074_v18 }
 0x7df   : > { %5609 = vmatprep.mubr.msk.bf16.mxu1 %vm6009_vm0, %v6008_v5 }
 0x7e0   : > { %5584 = vmatpush3.bf16.msra.mxu0 %v5819_v17 }
 0x7e1   : > { %5597 = vmatprep.subr.bf16.mxu0 %v6008_v5 }
 0x7e3   : > { %5586 = vmatmul.mubr.msk.bf16.vlgmr.msra.gmra.mrb[76].mxu0 %vm1043_vm3, %v4074_v18 }
 0x7e4   : > { %5601 = vmatprep.mubr.msk.bf16.mxu0 %vm6009_vm0, %v6008_v5  ;;  %5598 = vmatpush3.bf16.msra.mxu0 %v5820_v21 }
 0x7e5   : > { %5599 = vmatprep.subr.bf16.mxu0 %v6008_v5 }
 0x7e8   : > { %5600 = vmatpush3.bf16.msra.mxu0 %v5821_v22 }
 0x891   : > { %v3676_v23 = vpop.f32.mrb[80].mxu1 }
 0x892   : > { %v5531_v24 = vpop.f32.mrb[81].mxu1 }
 0x893   : > { %v3679_v26 = vpop.f32.mrb[82].mxu1 }
 0x894   : > { %v5532_v27 = vpop.f32.mrb[83].mxu1 }
 0x896   : > { %v3615_v28 = vpop.f32.mrb[60].mxu0 }
 0x897   : > { %v3677_v49 = vadd.f32 %v3676_v23, %v3615_v28  ;;  %v5523_v29 = vpop.f32.mrb[61].mxu0  ;;  %v5029_v28 = vld [vmem:[%s6950_s27 + $0x3] ss:$0 sm:$0xff] }
 0x898   : > { %v3618_v30 = vpop.f32.mrb[62].mxu0 }
 0x899   : > { %v3680_v31 = vadd.f32 %v3679_v26, %v3618_v30  ;;  %v5524_v32 = vpop.f32.mrb[63].mxu0  ;;  %v3787_v50 = vpop.f32.mrb[84].mxu1 }
 0x89a   : > { %v5547_v36 = vpop.f32.mrb[85].mxu1 }
 0x89b   : > { %v3790_v37 = vpop.f32.mrb[86].mxu1 }
 0x89c   : > { %v5548_v38 = vpop.f32.mrb[87].mxu1 }
 0x89e   : > { %v3734_v39 = vpop.f32.mrb[64].mxu0 }
 0x89f   : > { %v3788_v40 = vadd.f32 %v3787_v50, %v3734_v39  ;;  %v5539_v41 = vpop.f32.mrb[65].mxu0 }
 0x8a0   : > { %v3737_v42 = vpop.f32.mrb[66].mxu0 }
 0x8a1   : > { %v3791_v43 = vadd.f32 %v3790_v37, %v3737_v42  ;;  %v5540_v44 = vpop.f32.mrb[67].mxu0  ;;  %v3914_v45 = vpop.f32.mrb[88].mxu1 }
 0x8a2   : > { %v3921_v46 = vadd.f32 %v3914_v45, %v3788_v40  ;;  %v5563_v47 = vpop.f32.mrb[89].mxu1  ;;  %v5823_v44 = vld [vmem:[%s6331_s8 + $0x8] sm:$0xff]   ;;  %v4766_v45 = vld [vmem:[%s6325_s23] ss:$0 sm:$0xff] }
 0x8a3   : > { %v3917_v48 = vpop.f32.mrb[90].mxu1 }
 0x8a4   : > { %v3922_v51 = vadd.f32 %v3917_v48, %v3791_v43  ;;  %v5564_v52 = vpop.f32.mrb[91].mxu1  ;;  %v5822_v43 = vld [vmem:[%s6331_s8] sm:$0xff]  }
 0x8a5   : > { %5606 = vmatpush3.bf16.msra.mxu1 %v5822_v43  ;;  %v4945_v48 = vld [vmem:[%s6325_s23 + $0x2] ss:$0 sm:$0xff]  ;;  %v5037_v52 = vld [vmem:[%s6325_s23 + $0x3] ss:$0 sm:$0xff] }
 0x8a6   : > { %v3854_v8 = vpop.f32.mrb[68].mxu0  ;;  %5607 = vmatprep.subr.bf16.mxu1 %v6008_v5 }
 0x8a7   : > { %v3861_v53 = vadd.f32 %v3854_v8, %v3677_v49  ;;  %v5555_v54 = vpop.f32.mrb[69].mxu0 }
 0x8a8   : > { %v3857_v9 = vpop.f32.mrb[70].mxu0 }
 0x8a9   : > { %v3862_v55 = vadd.f32 %v3857_v9, %v3680_v31  ;;  %v5556_v56 = vpop.f32.mrb[71].mxu0  ;;  %v4055_v57 = vpop.f32.mrb[92].mxu1  ;;  %5608 = vmatpush3.bf16.msra.mxu1 %v5823_v44 }
 0x8aa   : > { %v4062_v58 = vadd.f32 %v4055_v57, %v3921_v46  ;;  %v5579_v59 = vpop.f32.mrb[93].mxu1  ;;  %v4853_v46 = vld [vmem:[%s6325_s23 + $0x1] ss:$0 sm:$0xff] }
 0x8ab   : > { %v4058_v60 = vpop.f32.mrb[94].mxu1  ;;  %v5613_v47 = vadd.f32 %v4853_v46, %v4766_v45 }
 0x8ac   : > { %v4063_v61 = vadd.f32 %v4058_v60, %v3922_v51  ;;  %v5580_v62 = vpop.f32.mrb[95].mxu1  ;;  %v5041_v60 = vld [vmem:[%s832_s10] ss:$0 sm:$0xff] }
 0x8ad   : > { %v5614_v51 = vadd.f32 %v5613_v47, %v4945_v48 }
 0x8ae   : > { %v3995_v63 = vpop.f32.mrb[72].mxu0 }
 0x8af   : > { %v4002_v0 = vadd.f32 %v3995_v63, %v3861_v53  ;;  %v5571_v1 = vpop.f32.mrb[73].mxu0  ;;  %v5615_v8 = vadd.f32 %v5614_v51, %v5037_v52 }
 0x8b0   : > { %v3998_v2 = vpop.f32.mrb[74].mxu0 }
 0x8b1   : > { %v4003_v3 = vadd.f32 %v3998_v2, %v3862_v55  ;;  %v5572_v4 = vpop.f32.mrb[75].mxu0  ;;  %v4184_v6 = vpop.f32.mrb[96].mxu1  ;;  %v4371_v2 = vmul.f32 %v6383_v19, %v6398_v25 }
 0x8b2   : > { %v4191_v10 = vadd.f32 %v4184_v6, %v4062_v58  ;;  %v5595_v11 = vpop.f32.mrb[97].mxu1 }
 0x8b3   : > { %v4187_v34 = vpop.f32.mrb[98].mxu1 }
 0x8b4   : > { %v4213_v12 = vadd.f32 %v5031_v7, %v4191_v10  ;;  %v4192_v13 = vadd.f32 %v4187_v34, %v4063_v61  ;;  %v5596_v35 = vpop.f32.mrb[99].mxu1  ;;  %v4372_v10 = vmul.f32 %v6386_v20, %v6405_v33 }
 0x8b6   : > { %v4215_v14 = vsub.f32 0.0, %v4213_v12  ;;  %v4214_v15 = vadd.f32 %v5031_v7, %v4192_v13  ;;  %v4124_v16 = vpop.f32.mrb[76].mxu0 }
 0x8b7   : > { %v4131_v17 = vadd.f32 %v4124_v16, %v4002_v0  ;;  %v5587_v18 = vpop.f32.mrb[77].mxu0 }
 0x8b8   : > { %v4217_v21 = vmul.f32 1.442695, %v4215_v14  ;;  %v4216_v22 = vsub.f32 0.0, %v4214_v15  ;;  %v4127_v23 = vpop.f32.mrb[78].mxu0 }
 0x8b9   : > { %v4132_v24 = vadd.f32 %v4127_v23, %v4003_v3  ;;  %v5588_v26 = vpop.f32.mrb[79].mxu0  ;;  %v4201_v49 = vadd.f32 %v5029_v28, %v4131_v17 }
 0x8ba   : > { %5860 = vpow2.f32 %v4217_v21  ;;  %v4219_v27 = vmul.f32 1.442695, %v4216_v22 }
 0x8bb   : > { %v4202_v30 = vadd.f32 %v5029_v28, %v4132_v24 }
 0x8bc   : > { %5862 = vpow2.f32 %v4219_v27 }
 0x8bd   : > { %5864 = vtanh.f32 %v4201_v49 }
 0x8c4   : > { %v5861_v29 = vpop.eup %5860 }
 0x8c5   : > { %v4221_v31 = vadd.f32 1.0, %v5861_v29 }
 0x8c6   : > { %v5863_v32 = vpop.eup %5862 }
 0x8c7   : > { %5866 = vrcp.f32 %v4221_v31  ;;  %v4222_v50 = vadd.f32 1.0, %v5863_v32  ;;  %v5865_v36 = vpop.eup %5864 }
 0x8c8   : > { %5868 = vtanh.f32 %v4202_v30 }
 0x8c9   : > { %5870 = vrcp.f32 %v4222_v50 }
 0x8d1   : > { %v5867_v37 = vpop.eup %5866 }
 0x8d2   : > { %v5869_v38 = vpop.eup %5868  ;;  %v4225_v39 = vmul.f32 %v5867_v37, %v5865_v36 }
 0x8d3   : > { %v5871_v40 = vpop.eup %5870 }
 0x8d4   : > { %v4226_v41 = vmul.f32 %v5871_v40, %v5869_v38 }
 0x8d6   : > { %v4227_v42 = vpack.c.bf16 %v4226_v41, %v4225_v39 }
 0x8d8   : > { %5602 = vmatmul.mubr.msk.bf16.vlgmr.msra.gmra.mrb[16].mxu0 %vm1043_vm3, %v4227_v42 }
 0x9ab   : > { %v4290_v53 = vpop.f32.mrb[16].mxu0 }
 0x9ac   : > { %v5616_v54 = vadd.f32 %v5615_v8, %v4290_v53  ;;  %v5603_v9 = vpop.f32.mrb[17].mxu0 }
 0x9ad   : > { %v4293_v55 = vpop.f32.mrb[18].mxu0 }
 0x9ae   : > { %v5620_v56 = vadd.f32 %v5615_v8, %v4293_v55  ;;  %v5604_v57 = vpop.f32.mrb[19].mxu0  ;;  %v4299_v58 = vmul.f32 %v5616_v54, %v6398_v25 }
 0x9b0   : > { %v4300_v5 = vmul.f32 %v5620_v56, %v6405_v33 }
 0x9b2   : > { %v4301_v59 = vpack.c.bf16 %v4300_v5, %v4299_v58 }
 0x9b4   : > { %5610 = vmatmul.mubr.msk.bf16.vlgmr.msra.gmra.mrb[100].mxu1 %vm1043_vm3, %v4301_v59 }
 0xa87   : > { %v4362_v61 = vpop.f32.mrb[100].mxu1 }
 0xa88   : > { %v4363_v62 = vadd.f32 %v5041_v60, %v4362_v61  ;;  %v5611_v63 = vpop.f32.mrb[101].mxu1 }
 0xa89   : > { %v4365_v0 = vpop.f32.mrb[102].mxu1 }
 0xa8a   : > { %v4369_v1 = vmul.f32 %v4363_v62, %v6398_v25  ;;  %v4366_v3 = vadd.f32 %v5041_v60, %v4365_v0  ;;  %v5612_v4 = vpop.f32.mrb[103].mxu1 }
 0xa8c   : > { %v4373_v6 = vadd.f32 %v4371_v2, %v4369_v1  ;;  %v4370_v7 = vmul.f32 %v4366_v3, %v6405_v33 }
 0xa8e   : > { %4375 = vst [vmem:[%s6340_s17] sm:$0xff] %v4373_v6  ;;  %v4374_v11 = vadd.f32 %v4372_v10, %v4370_v7 }
 0xa90   : > { %4376 = vst [vmem:[%s6340_s17 + $0x8] sm:$0xff] %v4374_v11 }
 0xa91 PF: > { %s6953_s10 = sld [smem:[#allocation13_spill]]  ;;  %s6954_s21 = sld [smem:[#allocation9_spill]] }
 0xa92   : > { %s6955_s22 = sld [smem:[#allocation10_spill]]  ;;  %s6956_s23 = sld [smem:[#allocation16_spill]] }
 0xa93   : > { %s6957_s24 = sld [smem:[#allocation11_spill]]  ;;  %s6958_s25 = sld [smem:[#allocation12_spill]] }
 0xa94   : > { %s6959_s26 = sld [smem:[#allocation14_spill]]  ;;  %s6960_s27 = sld [smem:[#allocation15_spill]] }
 0xa97   : > { %s33_s28 = sadd.s32 1, %s6953_s10  }
 0xa98   : > { %p30_p8 = scmp.ge.s32.totalorder %s33_s28, 10  }
 0xa9a   :  { %32 = sbr.rel (!%p30_p8) target bundleno = 24 (0x18), region = 242 }
 0xaa1   :  { %4416 = vsyncpa [#allocation4], 1 }
 0xaa2   :  { %4418 = vsyncpa [#allocation4 + $0x1], 1 }
 0xaa3   :  { %4419 = vsyncpa [#allocation6], 1 }
 0xaa4   :  { %4421 = vsyncpa [#allocation6 + $0x1], 1 }

</bundles_post_ra>
